<compile_context>
chip_gen: v7x
topology: tpu7x:2x2x1
jax: 0.10.0
libtpu: 0.0.40
codegen_flags: <defaults>
</compile_context>

<pallas_src>
import functools

import jax
import jax.numpy as jnp
from jax.experimental import pallas as pl
from jax.experimental.pallas import tpu as pltpu


def _round_up(x, m):
    return (x + m - 1) // m * m


# ---------------------------------------------------------------------------
# Pallas kernels
# ---------------------------------------------------------------------------
def conv_pool_gemm_kernel(x_ref, w_ref, b_ref, scale_ref, shift_ref, o_ref):
    """One conv block: MaxPool2x2(BN_eval(ReLU(Conv(x)))).
    x_ref holds the im2col patches grouped by pool quadrant: (4, tm, K).
    Pool is fused as a 4-way max over per-quadrant GEMM results."""
    w = w_ref[...]
    b = b_ref[...]
    scale = scale_ref[...]
    shift = shift_ref[...]

    def quadrant(j):
        y = jnp.dot(x_ref[j], w, preferred_element_type=jnp.float32)
        y = jnp.maximum(y + b, 0.0)            # Conv -> ReLU
        return y * scale + shift               # -> BatchNorm (eval, folded)

    y = jnp.maximum(jnp.maximum(quadrant(0), quadrant(1)),
                    jnp.maximum(quadrant(2), quadrant(3)))   # -> MaxPool(2,2)
    o_ref[...] = y.astype(o_ref.dtype)


def conv3_fc_head_kernel(x3_ref, cw_ref, cb_ref, cs_ref, ct_ref,
                         w1_ref, b1_ref, w2_ref, b2_ref, w3_ref, b3_ref,
                         w4_ref, b4_ref, w5_ref, b5_ref, o_ref):
    """conv3 block (quadrant GEMMs + ReLU + BN + 2x2 pool) -> flatten ->
    fc1..fc4 (Linear+ReLU; Dropout is an eval identity) -> fc5 -> Softmax."""
    cw = cw_ref[...]

    def quadrant(j):
        y = jnp.dot(x3_ref[j], cw, preferred_element_type=jnp.float32)
        y = jnp.maximum(y + cb_ref[...], 0.0)
        return y * cs_ref[...] + ct_ref[...]

    # (B, 128) f32; channels >= 64 are exactly zero == flattened conv output.
    h = jnp.maximum(jnp.maximum(quadrant(0), quadrant(1)),
                    jnp.maximum(quadrant(2), quadrant(3)))

    for w_ref, b_ref in ((w1_ref, b1_ref), (w2_ref, b2_ref),
                         (w3_ref, b3_ref), (w4_ref, b4_ref)):
        h = jnp.dot(h.astype(jnp.bfloat16), w_ref[...],
                    preferred_element_type=jnp.float32)
        h = jnp.maximum(h + b_ref[...], 0.0)

    y = jnp.dot(h.astype(jnp.bfloat16), w5_ref[...],
                preferred_element_type=jnp.float32) + b5_ref[...]
    # Softmax over the lane axis; padded logits carry a -1e30 bias -> exp == 0.
    m = jnp.max(y, axis=-1, keepdims=True)
    e = jnp.exp(y - m)
    o_ref[...] = e / jnp.sum(e, axis=-1, keepdims=True)


# ---------------------------------------------------------------------------
# Pallas wrappers
# ---------------------------------------------------------------------------
def fused_conv_pool_gemm(quad_patches, w, b, scale, shift):
    """quad_patches: (4, M, K) bf16, K multiple of 128; w: (K, NP) bf16 with NP
    a multiple of 128.  Returns (M, NP) bf16 pooled conv-block output."""
    _, M, K = quad_patches.shape
    NP = w.shape[1]
    if M >= 512:
        # >=2 parallel M-blocks (v7x dual TensorCore) with ~256-row tiles so
        # BlockSpec double-buffering hides the patch DMA (v5e HBM).
        nblk = max(2, pl.cdiv(M, 256))
    else:
        nblk = 1
    tm = _round_up(pl.cdiv(M, nblk), 16)       # bf16 sublane packing (16 rows)
    Mp = nblk * tm
    if Mp > M:
        quad_patches = jnp.pad(quad_patches, ((0, 0), (0, Mp - M), (0, 0)))

    out = pl.pallas_call(
        conv_pool_gemm_kernel,
        out_shape=jax.ShapeDtypeStruct((Mp, NP), jnp.bfloat16),
        grid_spec=pltpu.PrefetchScalarGridSpec(
            num_scalar_prefetch=0,
            grid=(nblk,),
            in_specs=[pl.BlockSpec((4, tm, K), lambda i: (0, i, 0)),
                      pl.BlockSpec((K, NP), lambda i: (0, 0)),
                      pl.BlockSpec((1, NP), lambda i: (0, 0)),
                      pl.BlockSpec((1, NP), lambda i: (0, 0)),
                      pl.BlockSpec((1, NP), lambda i: (0, 0))],
            out_specs=pl.BlockSpec((tm, NP), lambda i: (i, 0)),
        ),
        compiler_params=pltpu.CompilerParams(
            dimension_semantics=("parallel",)),
    )(quad_patches, w, b, scale, shift)
    return out[:M]


def conv3_fc_head(patches3, prep):
    """conv3 block + whole FC stack + softmax as a single pallas_call with all
    operands pinned to VMEM (whole-array blocks, no grid)."""
    B = patches3.shape[1]
    args = [patches3,
            prep["conv3"]["w"], prep["conv3"]["b"],
            prep["conv3"]["scale"], prep["conv3"]["shift"]]
    for name in ("fc1", "fc2", "fc3", "fc4", "fc5"):
        args += [prep[name]["w"], prep[name]["b"]]
    n_out = prep["fc5"]["w"].shape[1]          # 128 (lane-padded action_dim)
    vmem = pl.BlockSpec(memory_space=pltpu.MemorySpace.VMEM)
    return pl.pallas_call(
        conv3_fc_head_kernel,
        out_shape=jax.ShapeDtypeStruct((B, n_out), jnp.float32),
        in_specs=[vmem] * len(args),
        out_specs=vmem,
    )(*args)


# ---------------------------------------------------------------------------
# JAX glue: pool-aware im2col + conv-block driver
# ---------------------------------------------------------------------------
def pool_im2col_nhwc(x, kh, kw, sh, sw):
    """im2col for Conv2d(k, s) whose output feeds MaxPool2d(2, 2) (floor mode).
    Returns quadrant-grouped patches (4, B*PH*PW, kh*kw*C): quadrant (dh, dw)
    holds the patches of conv-output position (2p+dh, 2q+dw), so the pooled
    block is max_quadrant(BN(ReLU(patches @ W))) and the pre-pool activation is
    never materialized in HBM."""
    B, H, W, C = x.shape
    OH = (H - kh) // sh + 1
    OW = (W - kw) // sw + 1
    PH, PW = OH // 2, OW // 2
    cols = [x[:, i:i + sh * OH:sh, j:j + sw * OW:sw, :]
            for i in range(kh) for j in range(kw)]
    p = jnp.stack(cols, axis=3).reshape(B, OH, OW, kh * kw * C)
    quads = [p[:, dh:2 * PH:2, dw:2 * PW:2, :].reshape(B * PH * PW, kh * kw * C)
             for dh in range(2) for dw in range(2)]
    return jnp.stack(quads, axis=0), PH, PW


def conv_block(x, p, *, kh, kw, sh, sw, cout):
    """Conv2d -> ReLU -> BatchNorm2d(eval) -> MaxPool2d(2,2); NHWC in/out.
    Lane padding (channels >= cout, exactly 0) is dropped only when forming the
    next layer's patches."""
    B = x.shape[0]
    q, PH, PW = pool_im2col_nhwc(x, kh, kw, sh, sw)
    y = fused_conv_pool_gemm(q, p["w"], p["b"], p["scale"], p["shift"])
    return y.reshape(B, PH, PW, -1)[..., :cout]


def actor_forward(prep, x, action_dim):
    # x: (B, 3, 210, 160) float32 NCHW (as in the PyTorch module)
    x = jnp.transpose(x, (0, 2, 3, 1))                    # NHWC
    x = jnp.pad(x, ((0, 0), (0, 0), (0, 0), (0, 1)))      # Cin 3 -> 4 => K=256
    x = x.astype(jnp.bfloat16)
    x = conv_block(x, prep["conv1"], kh=8, kw=8, sh=4, sw=4, cout=32)  # (B,25,19,32)
    x = conv_block(x, prep["conv2"], kh=4, kw=4, sh=2, sw=2, cout=64)  # (B,5,4,64)
    # conv3 block is folded into the FC-head kernel; lane-pad K 576 -> 640.
    q3, _, _ = pool_im2col_nhwc(x, 3, 3, 1, 1)            # (4, B, 576)
    K3 = prep["conv3"]["w"].shape[0]
    q3 = jnp.pad(q3, ((0, 0), (0, 0), (0, K3 - q3.shape[2])))
    # TODO(synk): Dropout layers are eval-mode identities; BatchNorm uses
    # running statistics (eval) folded into per-channel scale/shift epilogues.
    probs = conv3_fc_head(q3, prep)                       # (B, 128) f32
    probs = probs[:, :action_dim]                         # drop padded logits
    return jnp.squeeze(probs)                             # matches x.squeeze()


# ---------------------------------------------------------------------------
# Parameter init (shapes from Actor.__init__) and one-time preprocessing
# ---------------------------------------------------------------------------
def init_params(key, action_dim):
    def conv_p(k, cout, cin, kh, kw):
        k1, k2, k3, k4, k5, k6 = jax.random.split(k, 6)
        fan_in = cin * kh * kw
        w = jax.random.normal(k1, (cout, cin, kh, kw), jnp.float32) / jnp.sqrt(fan_in)
        b = 0.01 * jax.random.normal(k2, (cout,), jnp.float32)
        gamma = 1.0 + 0.1 * jax.random.normal(k3, (cout,), jnp.float32)
        beta = 0.1 * jax.random.normal(k4, (cout,), jnp.float32)
        rmean = 0.1 * jax.random.normal(k5, (cout,), jnp.float32)
        rvar = 1.0 + 0.1 * jnp.abs(jax.random.normal(k6, (cout,), jnp.float32))
        return (w, b, gamma, beta, rmean, rvar)

    def fc_p(k, fin, fout):
        k1, k2 = jax.random.split(k)
        w = jax.random.normal(k1, (fout, fin), jnp.float32) / jnp.sqrt(fin)
        b = 0.01 * jax.random.normal(k2, (fout,), jnp.float32)
        return (w, b)

    ks = jax.random.split(key, 8)
    return {
        "conv1": conv_p(ks[0], 32, 3, 8, 8),
        "conv2": conv_p(ks[1], 64, 32, 4, 4),
        "conv3": conv_p(ks[2], 64, 64, 3, 3),
        "fc1": fc_p(ks[3], 64, 512),     # conv_out_size = 64 for 3x210x160 input
        "fc2": fc_p(ks[4], 512, 200),
        "fc3": fc_p(ks[5], 200, 100),
        "fc4": fc_p(ks[6], 100, 50),
        "fc5": fc_p(ks[7], 50, action_dim),
    }


def prepare_params(params):
    """One-time prep: BN fold (Conv->ReLU->BN order), GEMM layout, lane-pad
    every K/N to a multiple of 128, bf16 weights (f32 bias/scale/shift)."""
    prep = {}
    cin_pads = {"conv1": 4, "conv2": 32, "conv3": 64}      # conv1 Cin 3->4
    for name, cinp in cin_pads.items():
        w, b, gamma, beta, rmean, rvar = params[name]
        cout, cin, kh, kw = w.shape
        wm = jnp.transpose(w, (2, 3, 1, 0))                 # (kh, kw, cin, cout)
        wm = jnp.pad(wm, ((0, 0), (0, 0), (0, cinp - cin), (0, 0)))
        wm = wm.reshape(kh * kw * cinp, cout)
        Kp = _round_up(wm.shape[0], 128)
        Np = _round_up(cout, 128)
        wm = jnp.pad(wm, ((0, Kp - wm.shape[0]), (0, Np - cout)))
        scale = gamma / jnp.sqrt(rvar + 1e-5)
        shift = beta - rmean * scale
        prep[name] = {
            "w": wm.astype(jnp.bfloat16),
            "b": jnp.pad(b, (0, Np - cout)).reshape(1, -1).astype(jnp.float32),
            "scale": jnp.pad(scale, (0, Np - cout)).reshape(1, -1).astype(jnp.float32),
            "shift": jnp.pad(shift, (0, Np - cout)).reshape(1, -1).astype(jnp.float32),
        }
    for name in ("fc1", "fc2", "fc3", "fc4", "fc5"):
        w, b = params[name]
        fout, fin = w.shape
        finp, foutp = _round_up(fin, 128), _round_up(fout, 128)
        wt = jnp.pad(w.T, ((0, finp - fin), (0, foutp - fout)))
        if name == "fc5":
            # padded logits get a large finite negative bias -> softmax ~ 0
            bp = jnp.concatenate(
                [b, jnp.full((foutp - fout,), -1e30, jnp.float32)])
        else:
            bp = jnp.pad(b, (0, foutp - fout))
        prep[name] = {"w": wt.astype(jnp.bfloat16),
                      "b": bp.reshape(1, -1).astype(jnp.float32)}
    return prep


if __name__ == "__main__":
    action_dim = 6            # Pong action space
    batch = 2                 # spatial 3x210x160 is fixed by the module
    key = jax.random.PRNGKey(0)
    pkey, xkey = jax.random.split(key)
    params = init_params(pkey, action_dim)
    prep = prepare_params(params)
    x = jax.random.normal(xkey, (batch, 3, 210, 160), jnp.float32)

    fwd = jax.jit(functools.partial(actor_forward, action_dim=action_dim))
    out = jax.block_until_ready(fwd(prep, x))

    assert out.shape == (batch, action_dim), out.shape
    assert bool(jnp.all(jnp.isfinite(out)))
    assert bool(jnp.allclose(jnp.sum(out, axis=-1), 1.0, atol=1e-4))
    print("KERNEL_OK")
</pallas_src>

<mosaic_0001>
module attributes {stable_mosaic.version = 11 : i64} {
  func.func @conv_pool_gemm_kernel(%arg0: i32, %arg1: memref<4x240x256xbf16, #tpu.memory_space<vmem>>, %arg2: memref<256x128xbf16, #tpu.memory_space<vmem>>, %arg3: memref<1x128xf32, #tpu.memory_space<vmem>>, %arg4: memref<1x128xf32, #tpu.memory_space<vmem>>, %arg5: memref<1x128xf32, #tpu.memory_space<vmem>>, %arg6: memref<240x128xbf16, #tpu.memory_space<vmem>>) attributes {dimension_semantics = [#tpu.dimension_semantics<parallel>], iteration_bounds = array<i64: 4>, scalar_prefetch = 0 : i64, scratch_operands = 0 : i64, tpu.core_type = #tpu.core_type<tc>, window_params = [{transform_indices = @transform_0, window_bounds = array<i64: 4, 240, 256>}, {pipeline_mode = #tpu.pipeline_mode<synchronous>, transform_indices = @transform_1, window_bounds = array<i64: 256, 128>}, {pipeline_mode = #tpu.pipeline_mode<synchronous>, transform_indices = @transform_2, window_bounds = array<i64: 1, 128>}, {pipeline_mode = #tpu.pipeline_mode<synchronous>, transform_indices = @transform_3, window_bounds = array<i64: 1, 128>}, {pipeline_mode = #tpu.pipeline_mode<synchronous>, transform_indices = @transform_4, window_bounds = array<i64: 1, 128>}, {transform_indices = @transform_5, window_bounds = array<i64: 240, 128>}]} {
    %c0 = arith.constant 0 : index
    %c0_0 = arith.constant 0 : index
    %0 = vector.load %arg2[%c0, %c0_0] : memref<256x128xbf16, #tpu.memory_space<vmem>>, vector<256x128xbf16>
    %c0_1 = arith.constant 0 : index
    %c0_2 = arith.constant 0 : index
    %1 = vector.load %arg3[%c0_1, %c0_2] : memref<1x128xf32, #tpu.memory_space<vmem>>, vector<1x128xf32>
    %c0_3 = arith.constant 0 : index
    %c0_4 = arith.constant 0 : index
    %2 = vector.load %arg4[%c0_3, %c0_4] : memref<1x128xf32, #tpu.memory_space<vmem>>, vector<1x128xf32>
    %c0_5 = arith.constant 0 : index
    %c0_6 = arith.constant 0 : index
    %3 = vector.load %arg5[%c0_5, %c0_6] : memref<1x128xf32, #tpu.memory_space<vmem>>, vector<1x128xf32>
    %c0_7 = arith.constant 0 : index
    %c0_8 = arith.constant 0 : index
    %c0_9 = arith.constant 0 : index
    %4 = vector.load %arg1[%c0_7, %c0_8, %c0_9] : memref<4x240x256xbf16, #tpu.memory_space<vmem>>, vector<1x240x256xbf16>
    %5 = vector.shape_cast %4 : vector<1x240x256xbf16> to vector<240x256xbf16>
    %cst = arith.constant dense<0.000000e+00> : vector<240x128xf32>
    %6 = tpu.matmul %5, %0, %cst {dimension_numbers = #tpu.dot_dimension_numbers<[1], [0], [0], [1], [0, 0, 1, 1], [], []>} : vector<240x256xbf16>, vector<256x128xbf16>, vector<240x128xf32> -> vector<240x128xf32>
    %7 = vector.broadcast %1 : vector<1x128xf32> to vector<240x128xf32>
    %8 = arith.addf %6, %7 : vector<240x128xf32>
    %cst_10 = arith.constant 0.000000e+00 : f32
    %9 = vector.broadcast %cst_10 : f32 to vector<240x128xf32>
    %10 = arith.maximumf %8, %9 : vector<240x128xf32>
    %11 = vector.broadcast %2 : vector<1x128xf32> to vector<240x128xf32>
    %12 = arith.mulf %10, %11 : vector<240x128xf32>
    %13 = vector.broadcast %3 : vector<1x128xf32> to vector<240x128xf32>
    %14 = arith.addf %12, %13 : vector<240x128xf32>
    %c1 = arith.constant 1 : index
    %c0_11 = arith.constant 0 : index
    %c0_12 = arith.constant 0 : index
    %15 = vector.load %arg1[%c1, %c0_11, %c0_12] : memref<4x240x256xbf16, #tpu.memory_space<vmem>>, vector<1x240x256xbf16>
    %16 = vector.shape_cast %15 : vector<1x240x256xbf16> to vector<240x256xbf16>
    %cst_13 = arith.constant dense<0.000000e+00> : vector<240x128xf32>
    %17 = tpu.matmul %16, %0, %cst_13 {dimension_numbers = #tpu.dot_dimension_numbers<[1], [0], [0], [1], [0, 0, 1, 1], [], []>} : vector<240x256xbf16>, vector<256x128xbf16>, vector<240x128xf32> -> vector<240x128xf32>
    %18 = vector.broadcast %1 : vector<1x128xf32> to vector<240x128xf32>
    %19 = arith.addf %17, %18 : vector<240x128xf32>
    %cst_14 = arith.constant 0.000000e+00 : f32
    %20 = vector.broadcast %cst_14 : f32 to vector<240x128xf32>
    %21 = arith.maximumf %19, %20 : vector<240x128xf32>
    %22 = vector.broadcast %2 : vector<1x128xf32> to vector<240x128xf32>
    %23 = arith.mulf %21, %22 : vector<240x128xf32>
    %24 = vector.broadcast %3 : vector<1x128xf32> to vector<240x128xf32>
    %25 = arith.addf %23, %24 : vector<240x128xf32>
    %26 = arith.maximumf %14, %25 : vector<240x128xf32>
    %c2 = arith.constant 2 : index
    %c0_15 = arith.constant 0 : index
    %c0_16 = arith.constant 0 : index
    %27 = vector.load %arg1[%c2, %c0_15, %c0_16] : memref<4x240x256xbf16, #tpu.memory_space<vmem>>, vector<1x240x256xbf16>
    %28 = vector.shape_cast %27 : vector<1x240x256xbf16> to vector<240x256xbf16>
    %cst_17 = arith.constant dense<0.000000e+00> : vector<240x128xf32>
    %29 = tpu.matmul %28, %0, %cst_17 {dimension_numbers = #tpu.dot_dimension_numbers<[1], [0], [0], [1], [0, 0, 1, 1], [], []>} : vector<240x256xbf16>, vector<256x128xbf16>, vector<240x128xf32> -> vector<240x128xf32>
    %30 = vector.broadcast %1 : vector<1x128xf32> to vector<240x128xf32>
    %31 = arith.addf %29, %30 : vector<240x128xf32>
    %cst_18 = arith.constant 0.000000e+00 : f32
    %32 = vector.broadcast %cst_18 : f32 to vector<240x128xf32>
    %33 = arith.maximumf %31, %32 : vector<240x128xf32>
    %34 = vector.broadcast %2 : vector<1x128xf32> to vector<240x128xf32>
    %35 = arith.mulf %33, %34 : vector<240x128xf32>
    %36 = vector.broadcast %3 : vector<1x128xf32> to vector<240x128xf32>
    %37 = arith.addf %35, %36 : vector<240x128xf32>
    %c3 = arith.constant 3 : index
    %c0_19 = arith.constant 0 : index
    %c0_20 = arith.constant 0 : index
    %38 = vector.load %arg1[%c3, %c0_19, %c0_20] : memref<4x240x256xbf16, #tpu.memory_space<vmem>>, vector<1x240x256xbf16>
    %39 = vector.shape_cast %38 : vector<1x240x256xbf16> to vector<240x256xbf16>
    %cst_21 = arith.constant dense<0.000000e+00> : vector<240x128xf32>
    %40 = tpu.matmul %39, %0, %cst_21 {dimension_numbers = #tpu.dot_dimension_numbers<[1], [0], [0], [1], [0, 0, 1, 1], [], []>} : vector<240x256xbf16>, vector<256x128xbf16>, vector<240x128xf32> -> vector<240x128xf32>
    %41 = vector.broadcast %1 : vector<1x128xf32> to vector<240x128xf32>
    %42 = arith.addf %40, %41 : vector<240x128xf32>
    %cst_22 = arith.constant 0.000000e+00 : f32
    %43 = vector.broadcast %cst_22 : f32 to vector<240x128xf32>
    %44 = arith.maximumf %42, %43 : vector<240x128xf32>
    %45 = vector.broadcast %2 : vector<1x128xf32> to vector<240x128xf32>
    %46 = arith.mulf %44, %45 : vector<240x128xf32>
    %47 = vector.broadcast %3 : vector<1x128xf32> to vector<240x128xf32>
    %48 = arith.addf %46, %47 : vector<240x128xf32>
    %49 = arith.maximumf %37, %48 : vector<240x128xf32>
    %50 = arith.maximumf %26, %49 : vector<240x128xf32>
    %51 = arith.truncf %50 : vector<240x128xf32> to vector<240x128xbf16>
    %c0_23 = arith.constant 0 : index
    %c0_24 = arith.constant 0 : index
    %52 = vector.load %arg6[%c0_23, %c0_24] : memref<240x128xbf16, #tpu.memory_space<vmem>>, vector<240x128xbf16>
    tpu.vector_store %arg6[%c0_23, %c0_24], %51 {strides = array<i32>} : memref<240x128xbf16, #tpu.memory_space<vmem>>, vector<240x128xbf16>,
    return
  }
  func.func @transform_0(%arg0: i32) -> (i32, i32, i32) {
    %c0_i32 = arith.constant 0 : i32
    %c0_i32_0 = arith.constant 0 : i32
    %c0_i32_1 = arith.constant 0 : i32
    return %c0_i32, %arg0, %c0_i32_0 : i32, i32, i32
  }
  func.func @transform_1(%arg0: i32) -> (i32, i32) {
    %c0_i32 = arith.constant 0 : i32
    %c0_i32_0 = arith.constant 0 : i32
    %c0_i32_1 = arith.constant 0 : i32
    return %c0_i32, %c0_i32_0 : i32, i32
  }
  func.func @transform_2(%arg0: i32) -> (i32, i32) {
    %c0_i32 = arith.constant 0 : i32
    %c0_i32_0 = arith.constant 0 : i32
    %c0_i32_1 = arith.constant 0 : i32
    return %c0_i32, %c0_i32_0 : i32, i32
  }
  func.func @transform_3(%arg0: i32) -> (i32, i32) {
    %c0_i32 = arith.constant 0 : i32
    %c0_i32_0 = arith.constant 0 : i32
    %c0_i32_1 = arith.constant 0 : i32
    return %c0_i32, %c0_i32_0 : i32, i32
  }
  func.func @transform_4(%arg0: i32) -> (i32, i32) {
    %c0_i32 = arith.constant 0 : i32
    %c0_i32_0 = arith.constant 0 : i32
    %c0_i32_1 = arith.constant 0 : i32
    return %c0_i32, %c0_i32_0 : i32, i32
  }
  func.func @transform_5(%arg0: i32) -> (i32, i32) {
    %c0_i32 = arith.constant 0 : i32
    %c0_i32_0 = arith.constant 0 : i32
    return %arg0, %c0_i32 : i32, i32
  }
}

module attributes {stable_mosaic.version = 11 : i64} {
  func.func @conv_pool_gemm_kernel(%arg0: i32, %arg1: memref<4x48x512xbf16, #tpu.memory_space<vmem>>, %arg2: memref<512x128xbf16, #tpu.memory_space<vmem>>, %arg3: memref<1x128xf32, #tpu.memory_space<vmem>>, %arg4: memref<1x128xf32, #tpu.memory_space<vmem>>, %arg5: memref<1x128xf32, #tpu.memory_space<vmem>>, %arg6: memref<48x128xbf16, #tpu.memory_space<vmem>>) attributes {dimension_semantics = [#tpu.dimension_semantics<parallel>], iteration_bounds = array<i64: 1>, scalar_prefetch = 0 : i64, scratch_operands = 0 : i64, tpu.core_type = #tpu.core_type<tc>, window_params = [{transform_indices = @transform_0, window_bounds = array<i64: 4, 48, 512>}, {pipeline_mode = #tpu.pipeline_mode<synchronous>, transform_indices = @transform_1, window_bounds = array<i64: 512, 128>}, {pipeline_mode = #tpu.pipeline_mode<synchronous>, transform_indices = @transform_2, window_bounds = array<i64: 1, 128>}, {pipeline_mode = #tpu.pipeline_mode<synchronous>, transform_indices = @transform_3, window_bounds = array<i64: 1, 128>}, {pipeline_mode = #tpu.pipeline_mode<synchronous>, transform_indices = @transform_4, window_bounds = array<i64: 1, 128>}, {transform_indices = @transform_5, window_bounds = array<i64: 48, 128>}]} {
    %c0 = arith.constant 0 : index
    %c0_0 = arith.constant 0 : index
    %0 = vector.load %arg2[%c0, %c0_0] : memref<512x128xbf16, #tpu.memory_space<vmem>>, vector<512x128xbf16>
    %c0_1 = arith.constant 0 : index
    %c0_2 = arith.constant 0 : index
    %1 = vector.load %arg3[%c0_1, %c0_2] : memref<1x128xf32, #tpu.memory_space<vmem>>, vector<1x128xf32>
    %c0_3 = arith.constant 0 : index
    %c0_4 = arith.constant 0 : index
    %2 = vector.load %arg4[%c0_3, %c0_4] : memref<1x128xf32, #tpu.memory_space<vmem>>, vector<1x128xf32>
    %c0_5 = arith.constant 0 : index
    %c0_6 = arith.constant 0 : index
    %3 = vector.load %arg5[%c0_5, %c0_6] : memref<1x128xf32, #tpu.memory_space<vmem>>, vector<1x128xf32>
    %c0_7 = arith.constant 0 : index
    %c0_8 = arith.constant 0 : index
    %c0_9 = arith.constant 0 : index
    %4 = vector.load %arg1[%c0_7, %c0_8, %c0_9] : memref<4x48x512xbf16, #tpu.memory_space<vmem>>, vector<1x48x512xbf16>
    %5 = vector.shape_cast %4 : vector<1x48x512xbf16> to vector<48x512xbf16>
    %cst = arith.constant dense<0.000000e+00> : vector<48x128xf32>
    %6 = tpu.matmul %5, %0, %cst {dimension_numbers = #tpu.dot_dimension_numbers<[1], [0], [0], [1], [0, 0, 1, 1], [], []>} : vector<48x512xbf16>, vector<512x128xbf16>, vector<48x128xf32> -> vector<48x128xf32>
    %7 = vector.broadcast %1 : vector<1x128xf32> to vector<48x128xf32>
    %8 = arith.addf %6, %7 : vector<48x128xf32>
    %cst_10 = arith.constant 0.000000e+00 : f32
    %9 = vector.broadcast %cst_10 : f32 to vector<48x128xf32>
    %10 = arith.maximumf %8, %9 : vector<48x128xf32>
    %11 = vector.broadcast %2 : vector<1x128xf32> to vector<48x128xf32>
    %12 = arith.mulf %10, %11 : vector<48x128xf32>
    %13 = vector.broadcast %3 : vector<1x128xf32> to vector<48x128xf32>
    %14 = arith.addf %12, %13 : vector<48x128xf32>
    %c1 = arith.constant 1 : index
    %c0_11 = arith.constant 0 : index
    %c0_12 = arith.constant 0 : index
    %15 = vector.load %arg1[%c1, %c0_11, %c0_12] : memref<4x48x512xbf16, #tpu.memory_space<vmem>>, vector<1x48x512xbf16>
    %16 = vector.shape_cast %15 : vector<1x48x512xbf16> to vector<48x512xbf16>
    %cst_13 = arith.constant dense<0.000000e+00> : vector<48x128xf32>
    %17 = tpu.matmul %16, %0, %cst_13 {dimension_numbers = #tpu.dot_dimension_numbers<[1], [0], [0], [1], [0, 0, 1, 1], [], []>} : vector<48x512xbf16>, vector<512x128xbf16>, vector<48x128xf32> -> vector<48x128xf32>
    %18 = vector.broadcast %1 : vector<1x128xf32> to vector<48x128xf32>
    %19 = arith.addf %17, %18 : vector<48x128xf32>
    %cst_14 = arith.constant 0.000000e+00 : f32
    %20 = vector.broadcast %cst_14 : f32 to vector<48x128xf32>
    %21 = arith.maximumf %19, %20 : vector<48x128xf32>
    %22 = vector.broadcast %2 : vector<1x128xf32> to vector<48x128xf32>
    %23 = arith.mulf %21, %22 : vector<48x128xf32>
    %24 = vector.broadcast %3 : vector<1x128xf32> to vector<48x128xf32>
    %25 = arith.addf %23, %24 : vector<48x128xf32>
    %26 = arith.maximumf %14, %25 : vector<48x128xf32>
    %c2 = arith.constant 2 : index
    %c0_15 = arith.constant 0 : index
    %c0_16 = arith.constant 0 : index
    %27 = vector.load %arg1[%c2, %c0_15, %c0_16] : memref<4x48x512xbf16, #tpu.memory_space<vmem>>, vector<1x48x512xbf16>
    %28 = vector.shape_cast %27 : vector<1x48x512xbf16> to vector<48x512xbf16>
    %cst_17 = arith.constant dense<0.000000e+00> : vector<48x128xf32>
    %29 = tpu.matmul %28, %0, %cst_17 {dimension_numbers = #tpu.dot_dimension_numbers<[1], [0], [0], [1], [0, 0, 1, 1], [], []>} : vector<48x512xbf16>, vector<512x128xbf16>, vector<48x128xf32> -> vector<48x128xf32>
    %30 = vector.broadcast %1 : vector<1x128xf32> to vector<48x128xf32>
    %31 = arith.addf %29, %30 : vector<48x128xf32>
    %cst_18 = arith.constant 0.000000e+00 : f32
    %32 = vector.broadcast %cst_18 : f32 to vector<48x128xf32>
    %33 = arith.maximumf %31, %32 : vector<48x128xf32>
    %34 = vector.broadcast %2 : vector<1x128xf32> to vector<48x128xf32>
    %35 = arith.mulf %33, %34 : vector<48x128xf32>
    %36 = vector.broadcast %3 : vector<1x128xf32> to vector<48x128xf32>
    %37 = arith.addf %35, %36 : vector<48x128xf32>
    %c3 = arith.constant 3 : index
    %c0_19 = arith.constant 0 : index
    %c0_20 = arith.constant 0 : index
    %38 = vector.load %arg1[%c3, %c0_19, %c0_20] : memref<4x48x512xbf16, #tpu.memory_space<vmem>>, vector<1x48x512xbf16>
    %39 = vector.shape_cast %38 : vector<1x48x512xbf16> to vector<48x512xbf16>
    %cst_21 = arith.constant dense<0.000000e+00> : vector<48x128xf32>
    %40 = tpu.matmul %39, %0, %cst_21 {dimension_numbers = #tpu.dot_dimension_numbers<[1], [0], [0], [1], [0, 0, 1, 1], [], []>} : vector<48x512xbf16>, vector<512x128xbf16>, vector<48x128xf32> -> vector<48x128xf32>
    %41 = vector.broadcast %1 : vector<1x128xf32> to vector<48x128xf32>
    %42 = arith.addf %40, %41 : vector<48x128xf32>
    %cst_22 = arith.constant 0.000000e+00 : f32
    %43 = vector.broadcast %cst_22 : f32 to vector<48x128xf32>
    %44 = arith.maximumf %42, %43 : vector<48x128xf32>
    %45 = vector.broadcast %2 : vector<1x128xf32> to vector<48x128xf32>
    %46 = arith.mulf %44, %45 : vector<48x128xf32>
    %47 = vector.broadcast %3 : vector<1x128xf32> to vector<48x128xf32>
    %48 = arith.addf %46, %47 : vector<48x128xf32>
    %49 = arith.maximumf %37, %48 : vector<48x128xf32>
    %50 = arith.maximumf %26, %49 : vector<48x128xf32>
    %51 = arith.truncf %50 : vector<48x128xf32> to vector<48x128xbf16>
    %c0_23 = arith.constant 0 : index
    %c0_24 = arith.constant 0 : index
    %52 = vector.load %arg6[%c0_23, %c0_24] : memref<48x128xbf16, #tpu.memory_space<vmem>>, vector<48x128xbf16>
    tpu.vector_store %arg6[%c0_23, %c0_24], %51 {strides = array<i32>} : memref<48x128xbf16, #tpu.memory_space<vmem>>, vector<48x128xbf16>,
    return
  }
  func.func @transform_0(%arg0: i32) -> (i32, i32, i32) {
    %c0_i32 = arith.constant 0 : i32
    %c0_i32_0 = arith.constant 0 : i32
    %c0_i32_1 = arith.constant 0 : i32
    return %c0_i32, %arg0, %c0_i32_0 : i32, i32, i32
  }
  func.func @transform_1(%arg0: i32) -> (i32, i32) {
    %c0_i32 = arith.constant 0 : i32
    %c0_i32_0 = arith.constant 0 : i32
    %c0_i32_1 = arith.constant 0 : i32
    return %c0_i32, %c0_i32_0 : i32, i32
  }
  func.func @transform_2(%arg0: i32) -> (i32, i32) {
    %c0_i32 = arith.constant 0 : i32
    %c0_i32_0 = arith.constant 0 : i32
    %c0_i32_1 = arith.constant 0 : i32
    return %c0_i32, %c0_i32_0 : i32, i32
  }
  func.func @transform_3(%arg0: i32) -> (i32, i32) {
    %c0_i32 = arith.constant 0 : i32
    %c0_i32_0 = arith.constant 0 : i32
    %c0_i32_1 = arith.constant 0 : i32
    return %c0_i32, %c0_i32_0 : i32, i32
  }
  func.func @transform_4(%arg0: i32) -> (i32, i32) {
    %c0_i32 = arith.constant 0 : i32
    %c0_i32_0 = arith.constant 0 : i32
    %c0_i32_1 = arith.constant 0 : i32
    return %c0_i32, %c0_i32_0 : i32, i32
  }
  func.func @transform_5(%arg0: i32) -> (i32, i32) {
    %c0_i32 = arith.constant 0 : i32
    %c0_i32_0 = arith.constant 0 : i32
    return %arg0, %c0_i32 : i32, i32
  }
}

module attributes {stable_mosaic.version = 11 : i64} {
  func.func @conv3_fc_head_kernel(%arg0: memref<4x2x640xbf16, #tpu.memory_space<vmem>>, %arg1: memref<640x128xbf16, #tpu.memory_space<vmem>>, %arg2: memref<1x128xf32, #tpu.memory_space<vmem>>, %arg3: memref<1x128xf32, #tpu.memory_space<vmem>>, %arg4: memref<1x128xf32, #tpu.memory_space<vmem>>, %arg5: memref<128x512xbf16, #tpu.memory_space<vmem>>, %arg6: memref<1x512xf32, #tpu.memory_space<vmem>>, %arg7: memref<512x256xbf16, #tpu.memory_space<vmem>>, %arg8: memref<1x256xf32, #tpu.memory_space<vmem>>, %arg9: memref<256x128xbf16, #tpu.memory_space<vmem>>, %arg10: memref<1x128xf32, #tpu.memory_space<vmem>>, %arg11: memref<128x128xbf16, #tpu.memory_space<vmem>>, %arg12: memref<1x128xf32, #tpu.memory_space<vmem>>, %arg13: memref<128x128xbf16, #tpu.memory_space<vmem>>, %arg14: memref<1x128xf32, #tpu.memory_space<vmem>>, %arg15: memref<2x128xf32, #tpu.memory_space<vmem>>) attributes {dimension_semantics = [], scalar_prefetch = 0 : i64, scratch_operands = 0 : i64, tpu.core_type = #tpu.core_type<tc>} {
    %c0 = arith.constant 0 : index
    %c0_0 = arith.constant 0 : index
    %0 = vector.load %arg1[%c0, %c0_0] : memref<640x128xbf16, #tpu.memory_space<vmem>>, vector<640x128xbf16>
    %c0_1 = arith.constant 0 : index
    %c0_2 = arith.constant 0 : index
    %c0_3 = arith.constant 0 : index
    %1 = vector.load %arg0[%c0_1, %c0_2, %c0_3] : memref<4x2x640xbf16, #tpu.memory_space<vmem>>, vector<1x2x640xbf16>
    %2 = vector.shape_cast %1 : vector<1x2x640xbf16> to vector<2x640xbf16>
    %cst = arith.constant dense<0.000000e+00> : vector<2x128xf32>
    %3 = tpu.matmul %2, %0, %cst {dimension_numbers = #tpu.dot_dimension_numbers<[1], [0], [0], [1], [0, 0, 1, 1], [], []>} : vector<2x640xbf16>, vector<640x128xbf16>, vector<2x128xf32> -> vector<2x128xf32>
    %c0_4 = arith.constant 0 : index
    %c0_5 = arith.constant 0 : index
    %4 = vector.load %arg2[%c0_4, %c0_5] : memref<1x128xf32, #tpu.memory_space<vmem>>, vector<1x128xf32>
    %5 = vector.broadcast %4 : vector<1x128xf32> to vector<2x128xf32>
    %6 = arith.addf %3, %5 : vector<2x128xf32>
    %cst_6 = arith.constant 0.000000e+00 : f32
    %7 = vector.broadcast %cst_6 : f32 to vector<2x128xf32>
    %8 = arith.maximumf %6, %7 : vector<2x128xf32>
    %c0_7 = arith.constant 0 : index
    %c0_8 = arith.constant 0 : index
    %9 = vector.load %arg3[%c0_7, %c0_8] : memref<1x128xf32, #tpu.memory_space<vmem>>, vector<1x128xf32>
    %10 = vector.broadcast %9 : vector<1x128xf32> to vector<2x128xf32>
    %11 = arith.mulf %8, %10 : vector<2x128xf32>
    %c0_9 = arith.constant 0 : index
    %c0_10 = arith.constant 0 : index
    %12 = vector.load %arg4[%c0_9, %c0_10] : memref<1x128xf32, #tpu.memory_space<vmem>>, vector<1x128xf32>
    %13 = vector.broadcast %12 : vector<1x128xf32> to vector<2x128xf32>
    %14 = arith.addf %11, %13 : vector<2x128xf32>
    %c1 = arith.constant 1 : index
    %c0_11 = arith.constant 0 : index
    %c0_12 = arith.constant 0 : index
    %15 = vector.load %arg0[%c1, %c0_11, %c0_12] : memref<4x2x640xbf16, #tpu.memory_space<vmem>>, vector<1x2x640xbf16>
    %16 = vector.shape_cast %15 : vector<1x2x640xbf16> to vector<2x640xbf16>
    %cst_13 = arith.constant dense<0.000000e+00> : vector<2x128xf32>
    %17 = tpu.matmul %16, %0, %cst_13 {dimension_numbers = #tpu.dot_dimension_numbers<[1], [0], [0], [1], [0, 0, 1, 1], [], []>} : vector<2x640xbf16>, vector<640x128xbf16>, vector<2x128xf32> -> vector<2x128xf32>
    %c0_14 = arith.constant 0 : index
    %c0_15 = arith.constant 0 : index
    %18 = vector.load %arg2[%c0_14, %c0_15] : memref<1x128xf32, #tpu.memory_space<vmem>>, vector<1x128xf32>
    %19 = vector.broadcast %18 : vector<1x128xf32> to vector<2x128xf32>
    %20 = arith.addf %17, %19 : vector<2x128xf32>
    %cst_16 = arith.constant 0.000000e+00 : f32
    %21 = vector.broadcast %cst_16 : f32 to vector<2x128xf32>
    %22 = arith.maximumf %20, %21 : vector<2x128xf32>
    %c0_17 = arith.constant 0 : index
    %c0_18 = arith.constant 0 : index
    %23 = vector.load %arg3[%c0_17, %c0_18] : memref<1x128xf32, #tpu.memory_space<vmem>>, vector<1x128xf32>
    %24 = vector.broadcast %23 : vector<1x128xf32> to vector<2x128xf32>
    %25 = arith.mulf %22, %24 : vector<2x128xf32>
    %c0_19 = arith.constant 0 : index
    %c0_20 = arith.constant 0 : index
    %26 = vector.load %arg4[%c0_19, %c0_20] : memref<1x128xf32, #tpu.memory_space<vmem>>, vector<1x128xf32>
    %27 = vector.broadcast %26 : vector<1x128xf32> to vector<2x128xf32>
    %28 = arith.addf %25, %27 : vector<2x128xf32>
    %29 = arith.maximumf %14, %28 : vector<2x128xf32>
    %c2 = arith.constant 2 : index
    %c0_21 = arith.constant 0 : index
    %c0_22 = arith.constant 0 : index
    %30 = vector.load %arg0[%c2, %c0_21, %c0_22] : memref<4x2x640xbf16, #tpu.memory_space<vmem>>, vector<1x2x640xbf16>
    %31 = vector.shape_cast %30 : vector<1x2x640xbf16> to vector<2x640xbf16>
    %cst_23 = arith.constant dense<0.000000e+00> : vector<2x128xf32>
    %32 = tpu.matmul %31, %0, %cst_23 {dimension_numbers = #tpu.dot_dimension_numbers<[1], [0], [0], [1], [0, 0, 1, 1], [], []>} : vector<2x640xbf16>, vector<640x128xbf16>, vector<2x128xf32> -> vector<2x128xf32>
    %c0_24 = arith.constant 0 : index
    %c0_25 = arith.constant 0 : index
    %33 = vector.load %arg2[%c0_24, %c0_25] : memref<1x128xf32, #tpu.memory_space<vmem>>, vector<1x128xf32>
    %34 = vector.broadcast %33 : vector<1x128xf32> to vector<2x128xf32>
    %35 = arith.addf %32, %34 : vector<2x128xf32>
    %cst_26 = arith.constant 0.000000e+00 : f32
    %36 = vector.broadcast %cst_26 : f32 to vector<2x128xf32>
    %37 = arith.maximumf %35, %36 : vector<2x128xf32>
    %c0_27 = arith.constant 0 : index
    %c0_28 = arith.constant 0 : index
    %38 = vector.load %arg3[%c0_27, %c0_28] : memref<1x128xf32, #tpu.memory_space<vmem>>, vector<1x128xf32>
    %39 = vector.broadcast %38 : vector<1x128xf32> to vector<2x128xf32>
    %40 = arith.mulf %37, %39 : vector<2x128xf32>
    %c0_29 = arith.constant 0 : index
    %c0_30 = arith.constant 0 : index
    %41 = vector.load %arg4[%c0_29, %c0_30] : memref<1x128xf32, #tpu.memory_space<vmem>>, vector<1x128xf32>
    %42 = vector.broadcast %41 : vector<1x128xf32> to vector<2x128xf32>
    %43 = arith.addf %40, %42 : vector<2x128xf32>
    %c3 = arith.constant 3 : index
    %c0_31 = arith.constant 0 : index
    %c0_32 = arith.constant 0 : index
    %44 = vector.load %arg0[%c3, %c0_31, %c0_32] : memref<4x2x640xbf16, #tpu.memory_space<vmem>>, vector<1x2x640xbf16>
    %45 = vector.shape_cast %44 : vector<1x2x640xbf16> to vector<2x640xbf16>
    %cst_33 = arith.constant dense<0.000000e+00> : vector<2x128xf32>
    %46 = tpu.matmul %45, %0, %cst_33 {dimension_numbers = #tpu.dot_dimension_numbers<[1], [0], [0], [1], [0, 0, 1, 1], [], []>} : vector<2x640xbf16>, vector<640x128xbf16>, vector<2x128xf32> -> vector<2x128xf32>
    %c0_34 = arith.constant 0 : index
    %c0_35 = arith.constant 0 : index
    %47 = vector.load %arg2[%c0_34, %c0_35] : memref<1x128xf32, #tpu.memory_space<vmem>>, vector<1x128xf32>
    %48 = vector.broadcast %47 : vector<1x128xf32> to vector<2x128xf32>
    %49 = arith.addf %46, %48 : vector<2x128xf32>
    %cst_36 = arith.constant 0.000000e+00 : f32
    %50 = vector.broadcast %cst_36 : f32 to vector<2x128xf32>
    %51 = arith.maximumf %49, %50 : vector<2x128xf32>
    %c0_37 = arith.constant 0 : index
    %c0_38 = arith.constant 0 : index
    %52 = vector.load %arg3[%c0_37, %c0_38] : memref<1x128xf32, #tpu.memory_space<vmem>>, vector<1x128xf32>
    %53 = vector.broadcast %52 : vector<1x128xf32> to vector<2x128xf32>
    %54 = arith.mulf %51, %53 : vector<2x128xf32>
    %c0_39 = arith.constant 0 : index
    %c0_40 = arith.constant 0 : index
    %55 = vector.load %arg4[%c0_39, %c0_40] : memref<1x128xf32, #tpu.memory_space<vmem>>, vector<1x128xf32>
    %56 = vector.broadcast %55 : vector<1x128xf32> to vector<2x128xf32>
    %57 = arith.addf %54, %56 : vector<2x128xf32>
    %58 = arith.maximumf %43, %57 : vector<2x128xf32>
    %59 = arith.maximumf %29, %58 : vector<2x128xf32>
    %60 = arith.truncf %59 : vector<2x128xf32> to vector<2x128xbf16>
    %c0_41 = arith.constant 0 : index
    %c0_42 = arith.constant 0 : index
    %61 = vector.load %arg5[%c0_41, %c0_42] : memref<128x512xbf16, #tpu.memory_space<vmem>>, vector<128x512xbf16>
    %cst_43 = arith.constant dense<0.000000e+00> : vector<2x512xf32>
    %62 = tpu.matmul %60, %61, %cst_43 {dimension_numbers = #tpu.dot_dimension_numbers<[1], [0], [0], [1], [0, 0, 1, 1], [], []>} : vector<2x128xbf16>, vector<128x512xbf16>, vector<2x512xf32> -> vector<2x512xf32>
    %c0_44 = arith.constant 0 : index
    %c0_45 = arith.constant 0 : index
    %63 = vector.load %arg6[%c0_44, %c0_45] : memref<1x512xf32, #tpu.memory_space<vmem>>, vector<1x512xf32>
    %64 = vector.broadcast %63 : vector<1x512xf32> to vector<2x512xf32>
    %65 = arith.addf %62, %64 : vector<2x512xf32>
    %cst_46 = arith.constant 0.000000e+00 : f32
    %66 = vector.broadcast %cst_46 : f32 to vector<2x512xf32>
    %67 = arith.maximumf %65, %66 : vector<2x512xf32>
    %68 = arith.truncf %67 : vector<2x512xf32> to vector<2x512xbf16>
    %c0_47 = arith.constant 0 : index
    %c0_48 = arith.constant 0 : index
    %69 = vector.load %arg7[%c0_47, %c0_48] : memref<512x256xbf16, #tpu.memory_space<vmem>>, vector<512x256xbf16>
    %cst_49 = arith.constant dense<0.000000e+00> : vector<2x256xf32>
    %70 = tpu.matmul %68, %69, %cst_49 {dimension_numbers = #tpu.dot_dimension_numbers<[1], [0], [0], [1], [0, 0, 1, 1], [], []>} : vector<2x512xbf16>, vector<512x256xbf16>, vector<2x256xf32> -> vector<2x256xf32>
    %c0_50 = arith.constant 0 : index
    %c0_51 = arith.constant 0 : index
    %71 = vector.load %arg8[%c0_50, %c0_51] : memref<1x256xf32, #tpu.memory_space<vmem>>, vector<1x256xf32>
    %72 = vector.broadcast %71 : vector<1x256xf32> to vector<2x256xf32>
    %73 = arith.addf %70, %72 : vector<2x256xf32>
    %cst_52 = arith.constant 0.000000e+00 : f32
    %74 = vector.broadcast %cst_52 : f32 to vector<2x256xf32>
    %75 = arith.maximumf %73, %74 : vector<2x256xf32>
    %76 = arith.truncf %75 : vector<2x256xf32> to vector<2x256xbf16>
    %c0_53 = arith.constant 0 : index
    %c0_54 = arith.constant 0 : index
    %77 = vector.load %arg9[%c0_53, %c0_54] : memref<256x128xbf16, #tpu.memory_space<vmem>>, vector<256x128xbf16>
    %cst_55 = arith.constant dense<0.000000e+00> : vector<2x128xf32>
    %78 = tpu.matmul %76, %77, %cst_55 {dimension_numbers = #tpu.dot_dimension_numbers<[1], [0], [0], [1], [0, 0, 1, 1], [], []>} : vector<2x256xbf16>, vector<256x128xbf16>, vector<2x128xf32> -> vector<2x128xf32>
    %c0_56 = arith.constant 0 : index
    %c0_57 = arith.constant 0 : index
    %79 = vector.load %arg10[%c0_56, %c0_57] : memref<1x128xf32, #tpu.memory_space<vmem>>, vector<1x128xf32>
    %80 = vector.broadcast %79 : vector<1x128xf32> to vector<2x128xf32>
    %81 = arith.addf %78, %80 : vector<2x128xf32>
    %cst_58 = arith.constant 0.000000e+00 : f32
    %82 = vector.broadcast %cst_58 : f32 to vector<2x128xf32>
    %83 = arith.maximumf %81, %82 : vector<2x128xf32>
    %84 = arith.truncf %83 : vector<2x128xf32> to vector<2x128xbf16>
    %c0_59 = arith.constant 0 : index
    %c0_60 = arith.constant 0 : index
    %85 = vector.load %arg11[%c0_59, %c0_60] : memref<128x128xbf16, #tpu.memory_space<vmem>>, vector<128x128xbf16>
    %cst_61 = arith.constant dense<0.000000e+00> : vector<2x128xf32>
    %86 = tpu.matmul %84, %85, %cst_61 {dimension_numbers = #tpu.dot_dimension_numbers<[1], [0], [0], [1], [0, 0, 1, 1], [], []>} : vector<2x128xbf16>, vector<128x128xbf16>, vector<2x128xf32> -> vector<2x128xf32>
    %c0_62 = arith.constant 0 : index
    %c0_63 = arith.constant 0 : index
    %87 = vector.load %arg12[%c0_62, %c0_63] : memref<1x128xf32, #tpu.memory_space<vmem>>, vector<1x128xf32>
    %88 = vector.broadcast %87 : vector<1x128xf32> to vector<2x128xf32>
    %89 = arith.addf %86, %88 : vector<2x128xf32>
    %cst_64 = arith.constant 0.000000e+00 : f32
    %90 = vector.broadcast %cst_64 : f32 to vector<2x128xf32>
    %91 = arith.maximumf %89, %90 : vector<2x128xf32>
    %92 = arith.truncf %91 : vector<2x128xf32> to vector<2x128xbf16>
    %c0_65 = arith.constant 0 : index
    %c0_66 = arith.constant 0 : index
    %93 = vector.load %arg13[%c0_65, %c0_66] : memref<128x128xbf16, #tpu.memory_space<vmem>>, vector<128x128xbf16>
    %cst_67 = arith.constant dense<0.000000e+00> : vector<2x128xf32>
    %94 = tpu.matmul %92, %93, %cst_67 {dimension_numbers = #tpu.dot_dimension_numbers<[1], [0], [0], [1], [0, 0, 1, 1], [], []>} : vector<2x128xbf16>, vector<128x128xbf16>, vector<2x128xf32> -> vector<2x128xf32>
    %c0_68 = arith.constant 0 : index
    %c0_69 = arith.constant 0 : index
    %95 = vector.load %arg14[%c0_68, %c0_69] : memref<1x128xf32, #tpu.memory_space<vmem>>, vector<1x128xf32>
    %96 = vector.broadcast %95 : vector<1x128xf32> to vector<2x128xf32>
    %97 = arith.addf %94, %96 : vector<2x128xf32>
    %cst_70 = arith.constant dense<0xFF800000> : vector<2xf32>
    %98 = vector.multi_reduction <maximumf>, %97, %cst_70 [1] : vector<2x128xf32> to vector<2xf32>
    %99 = vector.shape_cast %98 : vector<2xf32> to vector<2x1xf32>
    %100 = vector.broadcast %99 : vector<2x1xf32> to vector<2x128xf32>
    %101 = arith.subf %97, %100 : vector<2x128xf32>
    %102 = math.exp %101 : vector<2x128xf32>
    %cst_71 = arith.constant dense<0.000000e+00> : vector<2xf32>
    %103 = vector.multi_reduction <add>, %102, %cst_71 [1] : vector<2x128xf32> to vector<2xf32>
    %104 = vector.shape_cast %103 : vector<2xf32> to vector<2x1xf32>
    %105 = vector.broadcast %104 : vector<2x1xf32> to vector<2x128xf32>
    %106 = arith.divf %102, %105 : vector<2x128xf32>
    %c0_72 = arith.constant 0 : index
    %c0_73 = arith.constant 0 : index
    %107 = vector.load %arg15[%c0_72, %c0_73] : memref<2x128xf32, #tpu.memory_space<vmem>>, vector<2x128xf32>
    tpu.vector_store %arg15[%c0_72, %c0_73], %106 {strides = array<i32>} : memref<2x128xf32, #tpu.memory_space<vmem>>, vector<2x128xf32>,
    return
  }
}

</mosaic_0001>

<bundles_post_ra>
// kernel: actor_forward.3
= control target key start
LH: loop header
LB: loop body
LE: loop exit
PB: predicated region body
PF: predicated region fallthrough
CT: control target
= control target key end

     0   :  { %s3980_s18 = smov 0   ;;  %s3982_s19 = smov 0   ;;  %s5216_s0 = inlined_call_operand.vmem [shape: bf16[4,960,256], index: 0, kind: input, shape index: {}]   ;;  %s5217_s1 = inlined_call_operand.vmem [shape: bf16[256,128], index: 1, kind: input, shape index: {}]   ;;  %s5218_s2 = inlined_call_operand.vmem [shape: f32[1,128], index: 2, kind: input, shape index: {}]   ;;  %s5219_s3 = inlined_call_operand.vmem [shape: f32[1,128], index: 3, kind: input, shape index: {}]   ;;  %s5220_s4 = inlined_call_operand.vmem [shape: f32[1,128], index: 4, kind: input, shape index: {}]   ;;  %s5221_s5 = inlined_call_operand.vmem [shape: bf16[960,128], index: 5, kind: output, shape index: {}]  }
   0x1   :  { %s3984_s20 = smov 0  }
   0x2 LB: > { %s2886_s21 = sadd.s32 4294967295, %s3948_s20   ;;  %s3997_s22 = sadd.s32 1, %s3948_s20   ;;  %s3948_s20 = sphi %s3984_s20, %s5320_s20   ;;  %s3944_s19 = sphi %s3982_s19, %s5319_s19   ;;  %s3940_s18 = sphi %s3980_s18, %s5318_s18  }
   0x3   : > { %s19_s23 = ssub.s32 %s3948_s20, %s3997_s22  ;;  %s22_s24 = sadd.s32 1, %s3944_s19 }
   0x4   : > { %p20_p0 = scmp.eq.s32.totalorder %s19_s23, 0  ;;  %p29_p1 = scmp.ne.s32.totalorder %s3944_s19, %s3940_s18 }
   0x5   : > { %p30_p2 = scmp.eq.s32.totalorder %s3948_s20, 0  ;;  %p2889_p4 = scmp.ge.s32.totalorder %s3948_s20, 4 }
   0x6   : > { %s4006_s25 = scalar_select %p20_p0, %s3944_s19, %s22_s24  }
   0x7   : > { %p31_p3 = por %p30_p2, %p29_p1  ;;  %177 = sbr.rel (%p2889_p4) target bundleno = 79 (0x4f), region = 32 }
   0xe   : > { %180 = sbr.rel (!%p31_p3) target bundleno = 79 (0x4f), region = 36  ;;  %s182_s26 = sand.u32 (%p31_p3), 1, %s3944_s19  }
   0xf   : > { %s3262_s27 = smul.u32 (%p31_p3), 240, %s3948_s20 }
  0x10   : > { %s3701_s28 = smul.u32 (%p31_p3), 960, %s182_s26 }
  0x11   : > { %s4014_s6 = scalar_lea.vmem (%p31_p3), %s5216_s0, %s3262_s27 }
  0x12   : > { %v454_v0 = vld [vmem:[%s4014_s6] sm:$0xff] (%p31_p3)  ;;  %v456_v1 = vld [vmem:[%s4014_s6 + $0x8] sm:$0xff] (%p31_p3)  ;;  %v458_v2 = vld [vmem:[%s4014_s6 + $0x10] sm:$0xff] (%p31_p3)  ;;  %s4019_s7 = scalar_lea.vmem (%p31_p3), [#allocation2], %s3701_s28 }
  0x13   : > { %455 = vst [vmem:[%s4019_s7] sm:$0xff] (%p31_p3), %v454_v0  ;;  %457 = vst [vmem:[%s4019_s7 + $0x8] sm:$0xff] (%p31_p3), %v456_v1  ;;  %v460_v3 = vld [vmem:[%s4014_s6 + $0x18] sm:$0xff] (%p31_p3)  ;;  %v462_v4 = vld [vmem:[%s4014_s6 + $0x20] sm:$0xff] (%p31_p3) }
  0x14   : > { %459 = vst [vmem:[%s4019_s7 + $0x10] sm:$0xff] (%p31_p3), %v458_v2  ;;  %v464_v5 = vld [vmem:[%s4014_s6 + $0x28] sm:$0xff] (%p31_p3)  ;;  %461 = vst [vmem:[%s4019_s7 + $0x18] sm:$0xff] (%p31_p3), %v460_v3  ;;  %v466_v6 = vld [vmem:[%s4014_s6 + $0x30] sm:$0xff] (%p31_p3) }
  0x15   : > { %463 = vst [vmem:[%s4019_s7 + $0x20] sm:$0xff] %v462_v4  ;;  %465 = vst [vmem:[%s4019_s7 + $0x28] sm:$0xff] %v464_v5  ;;  %v468_v7 = vld [vmem:[%s4014_s6 + $0x38] sm:$0xff]  ;;  %v470_v8 = vld [vmem:[%s4014_s6 + $0x40] sm:$0xff] }
  0x16   : > { %467 = vst [vmem:[%s4019_s7 + $0x30] sm:$0xff] %v466_v6  ;;  %469 = vst [vmem:[%s4019_s7 + $0x38] sm:$0xff] %v468_v7  ;;  %v472_v9 = vld [vmem:[%s4014_s6 + $0x48] sm:$0xff]  ;;  %v474_v10 = vld [vmem:[%s4014_s6 + $0x50] sm:$0xff] }
  0x17   : > { %471 = vst [vmem:[%s4019_s7 + $0x40] sm:$0xff] %v470_v8  ;;  %v476_v11 = vld [vmem:[%s4014_s6 + $0x58] sm:$0xff]  ;;  %473 = vst [vmem:[%s4019_s7 + $0x48] sm:$0xff] %v472_v9  ;;  %v478_v12 = vld [vmem:[%s4014_s6 + $0x60] sm:$0xff] }
  0x18   : > { %475 = vst [vmem:[%s4019_s7 + $0x50] sm:$0xff] %v474_v10  ;;  %477 = vst [vmem:[%s4019_s7 + $0x58] sm:$0xff] %v476_v11  ;;  %v480_v13 = vld [vmem:[%s4014_s6 + $0x68] sm:$0xff]  ;;  %v482_v14 = vld [vmem:[%s4014_s6 + $0x70] sm:$0xff] }
  0x19   : > { %479 = vst [vmem:[%s4019_s7 + $0x60] sm:$0xff] %v478_v12  ;;  %481 = vst [vmem:[%s4019_s7 + $0x68] sm:$0xff] %v480_v13  ;;  %v484_v15 = vld [vmem:[%s4014_s6 + $0x78] sm:$0xff]  ;;  %v486_v16 = vld [vmem:[%s4014_s6 + $0x80] sm:$0xff] }
  0x1a   : > { %483 = vst [vmem:[%s4019_s7 + $0x70] sm:$0xff] %v482_v14  ;;  %v488_v17 = vld [vmem:[%s4014_s6 + $0x88] sm:$0xff]  ;;  %485 = vst [vmem:[%s4019_s7 + $0x78] sm:$0xff] %v484_v15  ;;  %v490_v18 = vld [vmem:[%s4014_s6 + $0x90] sm:$0xff] }
  0x1b   : > { %487 = vst [vmem:[%s4019_s7 + $0x80] sm:$0xff] %v486_v16  ;;  %489 = vst [vmem:[%s4019_s7 + $0x88] sm:$0xff] %v488_v17  ;;  %v492_v19 = vld [vmem:[%s4014_s6 + $0x98] sm:$0xff]  ;;  %v494_v20 = vld [vmem:[%s4014_s6 + $0xa0] sm:$0xff] }
  0x1c   : > { %491 = vst [vmem:[%s4019_s7 + $0x90] sm:$0xff] %v490_v18  ;;  %493 = vst [vmem:[%s4019_s7 + $0x98] sm:$0xff] %v492_v19  ;;  %v496_v21 = vld [vmem:[%s4014_s6 + $0xa8] sm:$0xff]  ;;  %v498_v22 = vld [vmem:[%s4014_s6 + $0xb0] sm:$0xff] }
  0x1d   : > { %495 = vst [vmem:[%s4019_s7 + $0xa0] sm:$0xff] %v494_v20  ;;  %v500_v23 = vld [vmem:[%s4014_s6 + $0xb8] sm:$0xff]  ;;  %497 = vst [vmem:[%s4019_s7 + $0xa8] sm:$0xff] %v496_v21  ;;  %v502_v24 = vld [vmem:[%s4014_s6 + $0xc0] sm:$0xff] }
  0x1e   : > { %499 = vst [vmem:[%s4019_s7 + $0xb0] sm:$0xff] %v498_v22  ;;  %501 = vst [vmem:[%s4019_s7 + $0xb8] sm:$0xff] %v500_v23  ;;  %v504_v25 = vld [vmem:[%s4014_s6 + $0xc8] sm:$0xff]  ;;  %v506_v26 = vld [vmem:[%s4014_s6 + $0xd0] sm:$0xff] }
  0x1f   : > { %503 = vst [vmem:[%s4019_s7 + $0xc0] sm:$0xff] %v502_v24  ;;  %505 = vst [vmem:[%s4019_s7 + $0xc8] sm:$0xff] %v504_v25  ;;  %v508_v27 = vld [vmem:[%s4014_s6 + $0xd8] sm:$0xff]  ;;  %v510_v28 = vld [vmem:[%s4014_s6 + $0xe0] sm:$0xff] }
  0x20   : > { %507 = vst [vmem:[%s4019_s7 + $0xd0] sm:$0xff] %v506_v26  ;;  %v512_v29 = vld [vmem:[%s4014_s6 + $0xe8] sm:$0xff]  ;;  %509 = vst [vmem:[%s4019_s7 + $0xd8] sm:$0xff] %v508_v27  ;;  %v514_v30 = vld [vmem:[%s4014_s6 + $0x3c0] sm:$0xff] }
  0x21   : > { %511 = vst [vmem:[%s4019_s7 + $0xe0] sm:$0xff] %v510_v28  ;;  %513 = vst [vmem:[%s4019_s7 + $0xe8] sm:$0xff] %v512_v29  ;;  %v516_v31 = vld [vmem:[%s4014_s6 + $0x3c8] sm:$0xff]  ;;  %v518_v32 = vld [vmem:[%s4014_s6 + $0x3d0] sm:$0xff] }
  0x22   : > { %515 = vst [vmem:[%s4019_s7 + $0xf0] sm:$0xff] %v514_v30  ;;  %517 = vst [vmem:[%s4019_s7 + $0xf8] sm:$0xff] %v516_v31  ;;  %v520_v33 = vld [vmem:[%s4014_s6 + $0x3d8] sm:$0xff]  ;;  %v522_v34 = vld [vmem:[%s4014_s6 + $0x3e0] sm:$0xff] }
  0x23   : > { %519 = vst [vmem:[%s4019_s7 + $0x100] sm:$0xff] %v518_v32  ;;  %v524_v35 = vld [vmem:[%s4014_s6 + $0x3e8] sm:$0xff]  ;;  %521 = vst [vmem:[%s4019_s7 + $0x108] sm:$0xff] %v520_v33  ;;  %v526_v36 = vld [vmem:[%s4014_s6 + $0x3f0] sm:$0xff] }
  0x24   : > { %523 = vst [vmem:[%s4019_s7 + $0x110] sm:$0xff] %v522_v34  ;;  %525 = vst [vmem:[%s4019_s7 + $0x118] sm:$0xff] %v524_v35  ;;  %v528_v37 = vld [vmem:[%s4014_s6 + $0x3f8] sm:$0xff]  ;;  %v530_v38 = vld [vmem:[%s4014_s6 + $0x400] sm:$0xff] }
  0x25   : > { %527 = vst [vmem:[%s4019_s7 + $0x120] sm:$0xff] %v526_v36  ;;  %529 = vst [vmem:[%s4019_s7 + $0x128] sm:$0xff] %v528_v37  ;;  %v532_v39 = vld [vmem:[%s4014_s6 + $0x408] sm:$0xff]  ;;  %v534_v40 = vld [vmem:[%s4014_s6 + $0x410] sm:$0xff] }
  0x26   : > { %531 = vst [vmem:[%s4019_s7 + $0x130] sm:$0xff] %v530_v38  ;;  %v536_v41 = vld [vmem:[%s4014_s6 + $0x418] sm:$0xff]  ;;  %533 = vst [vmem:[%s4019_s7 + $0x138] sm:$0xff] %v532_v39  ;;  %v538_v42 = vld [vmem:[%s4014_s6 + $0x420] sm:$0xff] }
  0x27   : > { %535 = vst [vmem:[%s4019_s7 + $0x140] sm:$0xff] %v534_v40  ;;  %537 = vst [vmem:[%s4019_s7 + $0x148] sm:$0xff] %v536_v41  ;;  %v540_v43 = vld [vmem:[%s4014_s6 + $0x428] sm:$0xff]  ;;  %v542_v44 = vld [vmem:[%s4014_s6 + $0x430] sm:$0xff] }
  0x28   : > { %539 = vst [vmem:[%s4019_s7 + $0x150] sm:$0xff] %v538_v42  ;;  %541 = vst [vmem:[%s4019_s7 + $0x158] sm:$0xff] %v540_v43  ;;  %v544_v45 = vld [vmem:[%s4014_s6 + $0x438] sm:$0xff]  ;;  %v546_v46 = vld [vmem:[%s4014_s6 + $0x440] sm:$0xff] }
  0x29   : > { %543 = vst [vmem:[%s4019_s7 + $0x160] sm:$0xff] %v542_v44  ;;  %v548_v47 = vld [vmem:[%s4014_s6 + $0x448] sm:$0xff]  ;;  %545 = vst [vmem:[%s4019_s7 + $0x168] sm:$0xff] %v544_v45  ;;  %v550_v48 = vld [vmem:[%s4014_s6 + $0x450] sm:$0xff] }
  0x2a   : > { %547 = vst [vmem:[%s4019_s7 + $0x170] sm:$0xff] %v546_v46  ;;  %549 = vst [vmem:[%s4019_s7 + $0x178] sm:$0xff] %v548_v47  ;;  %v552_v49 = vld [vmem:[%s4014_s6 + $0x458] sm:$0xff]  ;;  %v554_v50 = vld [vmem:[%s4014_s6 + $0x460] sm:$0xff] }
  0x2b   : > { %551 = vst [vmem:[%s4019_s7 + $0x180] sm:$0xff] %v550_v48  ;;  %553 = vst [vmem:[%s4019_s7 + $0x188] sm:$0xff] %v552_v49  ;;  %v556_v51 = vld [vmem:[%s4014_s6 + $0x468] sm:$0xff]  ;;  %v558_v52 = vld [vmem:[%s4014_s6 + $0x470] sm:$0xff] }
  0x2c   : > { %555 = vst [vmem:[%s4019_s7 + $0x190] sm:$0xff] %v554_v50  ;;  %v560_v53 = vld [vmem:[%s4014_s6 + $0x478] sm:$0xff]  ;;  %557 = vst [vmem:[%s4019_s7 + $0x198] sm:$0xff] %v556_v51  ;;  %v562_v54 = vld [vmem:[%s4014_s6 + $0x480] sm:$0xff] }
  0x2d   : > { %559 = vst [vmem:[%s4019_s7 + $0x1a0] sm:$0xff] %v558_v52  ;;  %561 = vst [vmem:[%s4019_s7 + $0x1a8] sm:$0xff] %v560_v53  ;;  %v564_v55 = vld [vmem:[%s4014_s6 + $0x488] sm:$0xff]  ;;  %v566_v56 = vld [vmem:[%s4014_s6 + $0x490] sm:$0xff] }
  0x2e   : > { %563 = vst [vmem:[%s4019_s7 + $0x1b0] sm:$0xff] %v562_v54  ;;  %565 = vst [vmem:[%s4019_s7 + $0x1b8] sm:$0xff] %v564_v55  ;;  %v568_v57 = vld [vmem:[%s4014_s6 + $0x498] sm:$0xff]  ;;  %v570_v58 = vld [vmem:[%s4014_s6 + $0x4a0] sm:$0xff] }
  0x2f   : > { %567 = vst [vmem:[%s4019_s7 + $0x1c0] sm:$0xff] %v566_v56  ;;  %v572_v59 = vld [vmem:[%s4014_s6 + $0x4a8] sm:$0xff]  ;;  %569 = vst [vmem:[%s4019_s7 + $0x1c8] sm:$0xff] %v568_v57  ;;  %v574_v60 = vld [vmem:[%s4014_s6 + $0x780] sm:$0xff] }
  0x30   : > { %571 = vst [vmem:[%s4019_s7 + $0x1d0] sm:$0xff] %v570_v58  ;;  %573 = vst [vmem:[%s4019_s7 + $0x1d8] sm:$0xff] %v572_v59  ;;  %v576_v61 = vld [vmem:[%s4014_s6 + $0x788] sm:$0xff]  ;;  %v578_v62 = vld [vmem:[%s4014_s6 + $0x790] sm:$0xff] }
  0x31   : > { %575 = vst [vmem:[%s4019_s7 + $0x1e0] sm:$0xff] %v574_v60  ;;  %577 = vst [vmem:[%s4019_s7 + $0x1e8] sm:$0xff] %v576_v61  ;;  %v580_v63 = vld [vmem:[%s4014_s6 + $0x798] sm:$0xff]  ;;  %v582_v0 = vld [vmem:[%s4014_s6 + $0x7a0] sm:$0xff] }
  0x32   : > { %579 = vst [vmem:[%s4019_s7 + $0x1f0] sm:$0xff] %v578_v62  ;;  %v584_v1 = vld [vmem:[%s4014_s6 + $0x7a8] sm:$0xff]  ;;  %581 = vst [vmem:[%s4019_s7 + $0x1f8] sm:$0xff] %v580_v63  ;;  %v586_v2 = vld [vmem:[%s4014_s6 + $0x7b0] sm:$0xff] }
  0x33   : > { %583 = vst [vmem:[%s4019_s7 + $0x200] sm:$0xff] %v582_v0  ;;  %585 = vst [vmem:[%s4019_s7 + $0x208] sm:$0xff] %v584_v1  ;;  %v588_v3 = vld [vmem:[%s4014_s6 + $0x7b8] sm:$0xff]  ;;  %v590_v4 = vld [vmem:[%s4014_s6 + $0x7c0] sm:$0xff] }
  0x34   : > { %587 = vst [vmem:[%s4019_s7 + $0x210] sm:$0xff] %v586_v2  ;;  %589 = vst [vmem:[%s4019_s7 + $0x218] sm:$0xff] %v588_v3  ;;  %v592_v5 = vld [vmem:[%s4014_s6 + $0x7c8] sm:$0xff]  ;;  %v594_v6 = vld [vmem:[%s4014_s6 + $0x7d0] sm:$0xff] }
  0x35   : > { %591 = vst [vmem:[%s4019_s7 + $0x220] sm:$0xff] %v590_v4  ;;  %v596_v7 = vld [vmem:[%s4014_s6 + $0x7d8] sm:$0xff]  ;;  %593 = vst [vmem:[%s4019_s7 + $0x228] sm:$0xff] %v592_v5  ;;  %v598_v8 = vld [vmem:[%s4014_s6 + $0x7e0] sm:$0xff] }
  0x36   : > { %595 = vst [vmem:[%s4019_s7 + $0x230] sm:$0xff] %v594_v6  ;;  %597 = vst [vmem:[%s4019_s7 + $0x238] sm:$0xff] %v596_v7  ;;  %v600_v9 = vld [vmem:[%s4014_s6 + $0x7e8] sm:$0xff]  ;;  %v602_v10 = vld [vmem:[%s4014_s6 + $0x7f0] sm:$0xff] }
  0x37   : > { %599 = vst [vmem:[%s4019_s7 + $0x240] sm:$0xff] %v598_v8  ;;  %601 = vst [vmem:[%s4019_s7 + $0x248] sm:$0xff] %v600_v9  ;;  %v604_v11 = vld [vmem:[%s4014_s6 + $0x7f8] sm:$0xff]  ;;  %v606_v12 = vld [vmem:[%s4014_s6 + $0x800] sm:$0xff] }
  0x38   : > { %603 = vst [vmem:[%s4019_s7 + $0x250] sm:$0xff] %v602_v10  ;;  %v608_v13 = vld [vmem:[%s4014_s6 + $0x808] sm:$0xff]  ;;  %605 = vst [vmem:[%s4019_s7 + $0x258] sm:$0xff] %v604_v11  ;;  %v610_v14 = vld [vmem:[%s4014_s6 + $0x810] sm:$0xff] }
  0x39   : > { %607 = vst [vmem:[%s4019_s7 + $0x260] sm:$0xff] %v606_v12  ;;  %609 = vst [vmem:[%s4019_s7 + $0x268] sm:$0xff] %v608_v13  ;;  %v612_v15 = vld [vmem:[%s4014_s6 + $0x818] sm:$0xff]  ;;  %v614_v16 = vld [vmem:[%s4014_s6 + $0x820] sm:$0xff] }
  0x3a   : > { %611 = vst [vmem:[%s4019_s7 + $0x270] sm:$0xff] %v610_v14  ;;  %613 = vst [vmem:[%s4019_s7 + $0x278] sm:$0xff] %v612_v15  ;;  %v616_v17 = vld [vmem:[%s4014_s6 + $0x828] sm:$0xff]  ;;  %v618_v18 = vld [vmem:[%s4014_s6 + $0x830] sm:$0xff] }
  0x3b   : > { %615 = vst [vmem:[%s4019_s7 + $0x280] sm:$0xff] %v614_v16  ;;  %v620_v19 = vld [vmem:[%s4014_s6 + $0x838] sm:$0xff]  ;;  %617 = vst [vmem:[%s4019_s7 + $0x288] sm:$0xff] %v616_v17  ;;  %v622_v20 = vld [vmem:[%s4014_s6 + $0x840] sm:$0xff] }
  0x3c   : > { %619 = vst [vmem:[%s4019_s7 + $0x290] sm:$0xff] %v618_v18  ;;  %621 = vst [vmem:[%s4019_s7 + $0x298] sm:$0xff] %v620_v19  ;;  %v624_v21 = vld [vmem:[%s4014_s6 + $0x848] sm:$0xff]  ;;  %v626_v22 = vld [vmem:[%s4014_s6 + $0x850] sm:$0xff] }
  0x3d   : > { %623 = vst [vmem:[%s4019_s7 + $0x2a0] sm:$0xff] %v622_v20  ;;  %625 = vst [vmem:[%s4019_s7 + $0x2a8] sm:$0xff] %v624_v21  ;;  %v628_v23 = vld [vmem:[%s4014_s6 + $0x858] sm:$0xff]  ;;  %v630_v24 = vld [vmem:[%s4014_s6 + $0x860] sm:$0xff] }
  0x3e   : > { %627 = vst [vmem:[%s4019_s7 + $0x2b0] sm:$0xff] %v626_v22  ;;  %v632_v25 = vld [vmem:[%s4014_s6 + $0x868] sm:$0xff]  ;;  %629 = vst [vmem:[%s4019_s7 + $0x2b8] sm:$0xff] %v628_v23  ;;  %v634_v26 = vld [vmem:[%s4014_s6 + $0xb40] sm:$0xff] }
  0x3f   : > { %631 = vst [vmem:[%s4019_s7 + $0x2c0] sm:$0xff] %v630_v24  ;;  %633 = vst [vmem:[%s4019_s7 + $0x2c8] sm:$0xff] %v632_v25  ;;  %v636_v27 = vld [vmem:[%s4014_s6 + $0xb48] sm:$0xff]  ;;  %v638_v28 = vld [vmem:[%s4014_s6 + $0xb50] sm:$0xff] }
  0x40   : > { %635 = vst [vmem:[%s4019_s7 + $0x2d0] sm:$0xff] %v634_v26  ;;  %637 = vst [vmem:[%s4019_s7 + $0x2d8] sm:$0xff] %v636_v27  ;;  %v640_v29 = vld [vmem:[%s4014_s6 + $0xb58] sm:$0xff]  ;;  %v642_v30 = vld [vmem:[%s4014_s6 + $0xb60] sm:$0xff] }
  0x41   : > { %639 = vst [vmem:[%s4019_s7 + $0x2e0] sm:$0xff] %v638_v28  ;;  %v644_v31 = vld [vmem:[%s4014_s6 + $0xb68] sm:$0xff]  ;;  %641 = vst [vmem:[%s4019_s7 + $0x2e8] sm:$0xff] %v640_v29  ;;  %v646_v32 = vld [vmem:[%s4014_s6 + $0xb70] sm:$0xff] }
  0x42   : > { %643 = vst [vmem:[%s4019_s7 + $0x2f0] sm:$0xff] %v642_v30  ;;  %645 = vst [vmem:[%s4019_s7 + $0x2f8] sm:$0xff] %v644_v31  ;;  %v648_v33 = vld [vmem:[%s4014_s6 + $0xb78] sm:$0xff]  ;;  %v650_v34 = vld [vmem:[%s4014_s6 + $0xb80] sm:$0xff] }
  0x43   : > { %647 = vst [vmem:[%s4019_s7 + $0x300] sm:$0xff] %v646_v32  ;;  %649 = vst [vmem:[%s4019_s7 + $0x308] sm:$0xff] %v648_v33  ;;  %v652_v35 = vld [vmem:[%s4014_s6 + $0xb88] sm:$0xff]  ;;  %v654_v36 = vld [vmem:[%s4014_s6 + $0xb90] sm:$0xff] }
  0x44   : > { %651 = vst [vmem:[%s4019_s7 + $0x310] sm:$0xff] %v650_v34  ;;  %v656_v37 = vld [vmem:[%s4014_s6 + $0xb98] sm:$0xff]  ;;  %653 = vst [vmem:[%s4019_s7 + $0x318] sm:$0xff] %v652_v35  ;;  %v658_v38 = vld [vmem:[%s4014_s6 + $0xba0] sm:$0xff] }
  0x45   : > { %655 = vst [vmem:[%s4019_s7 + $0x320] sm:$0xff] %v654_v36  ;;  %657 = vst [vmem:[%s4019_s7 + $0x328] sm:$0xff] %v656_v37  ;;  %v660_v39 = vld [vmem:[%s4014_s6 + $0xba8] sm:$0xff]  ;;  %v662_v40 = vld [vmem:[%s4014_s6 + $0xbb0] sm:$0xff] }
  0x46   : > { %659 = vst [vmem:[%s4019_s7 + $0x330] sm:$0xff] %v658_v38  ;;  %661 = vst [vmem:[%s4019_s7 + $0x338] sm:$0xff] %v660_v39  ;;  %v664_v41 = vld [vmem:[%s4014_s6 + $0xbb8] sm:$0xff]  ;;  %v666_v42 = vld [vmem:[%s4014_s6 + $0xbc0] sm:$0xff] }
  0x47   : > { %663 = vst [vmem:[%s4019_s7 + $0x340] sm:$0xff] %v662_v40  ;;  %v668_v43 = vld [vmem:[%s4014_s6 + $0xbc8] sm:$0xff]  ;;  %665 = vst [vmem:[%s4019_s7 + $0x348] sm:$0xff] %v664_v41  ;;  %v670_v44 = vld [vmem:[%s4014_s6 + $0xbd0] sm:$0xff] }
  0x48   : > { %667 = vst [vmem:[%s4019_s7 + $0x350] sm:$0xff] %v666_v42  ;;  %669 = vst [vmem:[%s4019_s7 + $0x358] sm:$0xff] %v668_v43  ;;  %v672_v45 = vld [vmem:[%s4014_s6 + $0xbd8] sm:$0xff]  ;;  %v674_v46 = vld [vmem:[%s4014_s6 + $0xbe0] sm:$0xff] }
  0x49   : > { %671 = vst [vmem:[%s4019_s7 + $0x360] sm:$0xff] %v670_v44  ;;  %673 = vst [vmem:[%s4019_s7 + $0x368] sm:$0xff] %v672_v45  ;;  %v676_v47 = vld [vmem:[%s4014_s6 + $0xbe8] sm:$0xff]  ;;  %v678_v48 = vld [vmem:[%s4014_s6 + $0xbf0] sm:$0xff] }
  0x4a   : > { %675 = vst [vmem:[%s4019_s7 + $0x370] sm:$0xff] %v674_v46  ;;  %v680_v49 = vld [vmem:[%s4014_s6 + $0xbf8] sm:$0xff]  ;;  %677 = vst [vmem:[%s4019_s7 + $0x378] sm:$0xff] %v676_v47  ;;  %v682_v50 = vld [vmem:[%s4014_s6 + $0xc00] sm:$0xff] }
  0x4b   : > { %679 = vst [vmem:[%s4019_s7 + $0x380] sm:$0xff] %v678_v48  ;;  %681 = vst [vmem:[%s4019_s7 + $0x388] sm:$0xff] %v680_v49  ;;  %v684_v51 = vld [vmem:[%s4014_s6 + $0xc08] sm:$0xff]  ;;  %v686_v52 = vld [vmem:[%s4014_s6 + $0xc10] sm:$0xff] }
  0x4c   : > { %683 = vst [vmem:[%s4019_s7 + $0x390] sm:$0xff] %v682_v50  ;;  %685 = vst [vmem:[%s4019_s7 + $0x398] sm:$0xff] %v684_v51  ;;  %v688_v53 = vld [vmem:[%s4014_s6 + $0xc18] sm:$0xff]  ;;  %v690_v54 = vld [vmem:[%s4014_s6 + $0xc20] sm:$0xff] }
  0x4d   : > { %687 = vst [vmem:[%s4019_s7 + $0x3a0] sm:$0xff] %v686_v52  ;;  %v692_v55 = vld [vmem:[%s4014_s6 + $0xc28] sm:$0xff]  ;;  %689 = vst [vmem:[%s4019_s7 + $0x3a8] sm:$0xff] %v688_v53 }
  0x4e   : > { %691 = vst [vmem:[%s4019_s7 + $0x3b0] sm:$0xff] %v690_v54  ;;  %693 = vst [vmem:[%s4019_s7 + $0x3b8] sm:$0xff] %v692_v55 }
  0x4f PF: > { %p2892_p5 = scmp.ge.s32.totalorder %s3948_s20, 1  ;;  %p698_p6 = scmp.lt.s32.totalorder %s3948_s20, 5 }
  0x51   : > { %p699_p7 = pnand %p2892_p5, %p698_p6 }
  0x53   : > { %702 = sbr.rel (%p699_p7) target bundleno = 588 (0x24c), region = 74 }
  0x5a   : > { %v3727_v56 = vld [vmem:[%s5217_s1 + $0x40] sm:$0xff]   ;;  %v4269_v58 = vld [vmem:[%s5217_s1 + $0x48] sm:$0xff]   ;;  %v4281_v60 = vld [vmem:[%s5217_s1 + $0x50] sm:$0xff]   ;;  %s705_s26 = sand.u32 1, %s3940_s18   ;;  %s4882_s9 = smul.u32 30, %s2886_s21 }
  0x5b   : > { %v3728_v57 = vld [vmem:[%s5217_s1] sm:$0xff]   ;;  %3277 = vmatprep.subr.bf16.mxu0 %v3727_v56  ;;  %3383 = vmatprep.subr.bf16.mxu1 %v3727_v56  ;;  %v4274_v59 = vld [vmem:[%s5217_s1 + $0x8] sm:$0xff]   ;;  %v4288_v61 = vld [vmem:[%s5217_s1 + $0x10] sm:$0xff]   ;;  %s3702_s29 = smul.u32 960, %s705_s26 }
  0x5c   : > { %3278 = vmatpush3.bf16.msra.mxu0 %v3728_v57  ;;  %3384 = vmatpush3.bf16.msra.mxu1 %v3728_v57  ;;  %v4296_v62 = vld [vmem:[%s5217_s1 + $0x58] sm:$0xff]   ;;  %v4310_v0 = vld [vmem:[%s5217_s1 + $0x60] sm:$0xff]   ;;  %v4324_v2 = vld [vmem:[%s5217_s1 + $0x68] sm:$0xff]   ;;  %p734_p8 = scmp.lt.s32.totalorder %s4882_s9, 119 }
  0x5d   : > { %3279 = vmatprep.subr.bf16.mxu0 %v4269_v58  ;;  %3385 = vmatprep.subr.bf16.mxu1 %v4269_v58  ;;  %v4303_v63 = vld [vmem:[%s5217_s1 + $0x18] sm:$0xff]   ;;  %v4317_v1 = vld [vmem:[%s5217_s1 + $0x20] sm:$0xff]   ;;  %s4326_s12 = scalar_lea.vmem [#allocation2], %s3702_s29  ;;  %v4335_v5 = vld [vmem:[%s5217_s1 + $0x28] sm:$0xff]  }
  0x5e   : > { %v3745_v3 = vld [vmem:[%s4326_s12 + $0x4] ss:$8 sps:$4 sm:$0xff]   ;;  %v3748_v4 = vld [vmem:[%s4326_s12 + $0xf4] ss:$8 sps:$4 sm:$0xff]   ;;  %v3743_v10 = vld [vmem:[%s4326_s12] ss:$8 sps:$4 sm:$0xff]  }
  0x5f   : > { %v4342_v6 = vld [vmem:[%s5217_s1 + $0x70] sm:$0xff]   ;;  %1089 = vmatprep.mubr.bf16.mxu0 %v3745_v3  ;;  %1525 = vmatprep.mubr.bf16.mxu1 %v3748_v4  ;;  %v4356_v8 = vld [vmem:[%s5217_s1 + $0x78] sm:$0xff]   ;;  %v3751_v13 = vld [vmem:[%s4326_s12 + $0x104] ss:$8 sps:$4 sm:$0xff]   ;;  %s5322_s9 = smov (!%p734_p8, %s4882_s9), 119 }
  0x60   : > { %3280 = vmatpush3.bf16.msra.mxu0 %v4274_v59  ;;  %3386 = vmatpush3.bf16.msra.mxu1 %v4274_v59  ;;  %v4349_v7 = vld [vmem:[%s5217_s1 + $0x30] sm:$0xff]   ;;  %v4363_v9 = vld [vmem:[%s5217_s1 + $0x38] sm:$0xff]   ;;  %v3754_v15 = vld [vmem:[%s4326_s12 + $0x100] ss:$8 sps:$4 sm:$0xff]   ;;  %s2893_s10 = sshll.u32 %s5322_s9, 2 }
  0x61   : > { %3281 = vmatprep.subr.bf16.mxu0 %v4281_v60  ;;  %3387 = vmatprep.subr.bf16.mxu1 %v4281_v60  ;;  %v3746_v11 = vld [vmem:[%s4326_s12 + $0xf0] ss:$8 sps:$4 sm:$0xff]   ;;  %v3749_v12 = vld [vmem:[%s4326_s12 + $0x14] ss:$8 sps:$4 sm:$0xff]   ;;  %v3755_v16 = vld [vmem:[%s4326_s12 + $0x24] ss:$8 sps:$4 sm:$0xff]   ;;  %s4933_s13 = scalar_lea.vmem %s5221_s5, %s2893_s10 }
  0x62   : > { %v3753_v14 = vld [vmem:[%s4326_s12 + $0x10] ss:$8 sps:$4 sm:$0xff]   ;;  %v3757_v17 = vld [vmem:[%s4326_s12 + $0x114] ss:$8 sps:$4 sm:$0xff]   ;;  %v3759_v18 = vld [vmem:[%s4326_s12 + $0x20] ss:$8 sps:$4 sm:$0xff]  }
  0x63   : > { %v3760_v19 = vld [vmem:[%s4326_s12 + $0x110] ss:$8 sps:$4 sm:$0xff]   ;;  %v3761_v20 = vld [vmem:[%s4326_s12 + $0x34] ss:$8 sps:$4 sm:$0xff]   ;;  %v3763_v21 = vld [vmem:[%s4326_s12 + $0x124] ss:$8 sps:$4 sm:$0xff]  }
  0x64   : > { %3282 = vmatpush3.bf16.msra.mxu0 %v4288_v61  ;;  %3388 = vmatpush3.bf16.msra.mxu1 %v4288_v61  ;;  %v3765_v22 = vld [vmem:[%s4326_s12 + $0x30] ss:$8 sps:$4 sm:$0xff]   ;;  %v3766_v23 = vld [vmem:[%s4326_s12 + $0x120] ss:$8 sps:$4 sm:$0xff]   ;;  %v3767_v24 = vld [vmem:[%s4326_s12 + $0x44] ss:$8 sps:$4 sm:$0xff]  }
  0x65   : > { %3283 = vmatprep.subr.bf16.mxu0 %v4296_v62  ;;  %3389 = vmatprep.subr.bf16.mxu1 %v4296_v62  ;;  %v3769_v25 = vld [vmem:[%s4326_s12 + $0x134] ss:$8 sps:$4 sm:$0xff]   ;;  %v3771_v26 = vld [vmem:[%s4326_s12 + $0x40] ss:$8 sps:$4 sm:$0xff]   ;;  %v3772_v27 = vld [vmem:[%s4326_s12 + $0x130] ss:$8 sps:$4 sm:$0xff]  }
  0x66   : > { %v3773_v28 = vld [vmem:[%s4326_s12 + $0x54] ss:$8 sps:$4 sm:$0xff]   ;;  %v3775_v29 = vld [vmem:[%s4326_s12 + $0x144] ss:$8 sps:$4 sm:$0xff]   ;;  %v3777_v30 = vld [vmem:[%s4326_s12 + $0x50] ss:$8 sps:$4 sm:$0xff]  }
  0x67   : > { %v3778_v31 = vld [vmem:[%s4326_s12 + $0x140] ss:$8 sps:$4 sm:$0xff]   ;;  %v3779_v32 = vld [vmem:[%s4326_s12 + $0x64] ss:$8 sps:$4 sm:$0xff]   ;;  %v3781_v33 = vld [vmem:[%s4326_s12 + $0x154] ss:$8 sps:$4 sm:$0xff]  }
  0x68   : > { %3284 = vmatpush3.bf16.msra.mxu0 %v4303_v63  ;;  %3390 = vmatpush3.bf16.msra.mxu1 %v4303_v63  ;;  %v3783_v34 = vld [vmem:[%s4326_s12 + $0x60] ss:$8 sps:$4 sm:$0xff]   ;;  %v3784_v35 = vld [vmem:[%s4326_s12 + $0x150] ss:$8 sps:$4 sm:$0xff]   ;;  %v3785_v36 = vld [vmem:[%s4326_s12 + $0x74] ss:$8 sps:$4 sm:$0xff]  }
  0x69   : > { %3285 = vmatprep.subr.bf16.mxu0 %v4310_v0  ;;  %3391 = vmatprep.subr.bf16.mxu1 %v4310_v0  ;;  %v3787_v37 = vld [vmem:[%s4326_s12 + $0x164] ss:$8 sps:$4 sm:$0xff]   ;;  %v3789_v38 = vld [vmem:[%s4326_s12 + $0x70] ss:$8 sps:$4 sm:$0xff]   ;;  %v3790_v39 = vld [vmem:[%s4326_s12 + $0x160] ss:$8 sps:$4 sm:$0xff]  }
  0x6a   : > { %v3791_v40 = vld [vmem:[%s4326_s12 + $0x84] ss:$8 sps:$4 sm:$0xff]   ;;  %v3793_v41 = vld [vmem:[%s4326_s12 + $0x174] ss:$8 sps:$4 sm:$0xff]   ;;  %v3795_v42 = vld [vmem:[%s4326_s12 + $0x80] ss:$8 sps:$4 sm:$0xff]  }
  0x6b   : > { %v3796_v43 = vld [vmem:[%s4326_s12 + $0x170] ss:$8 sps:$4 sm:$0xff]   ;;  %v3797_v44 = vld [vmem:[%s4326_s12 + $0x94] ss:$8 sps:$4 sm:$0xff]   ;;  %v3799_v45 = vld [vmem:[%s4326_s12 + $0x184] ss:$8 sps:$4 sm:$0xff]  }
  0x6c   : > { %3286 = vmatpush3.bf16.msra.mxu0 %v4317_v1  ;;  %3392 = vmatpush3.bf16.msra.mxu1 %v4317_v1  ;;  %v3801_v46 = vld [vmem:[%s4326_s12 + $0x90] ss:$8 sps:$4 sm:$0xff]   ;;  %v3802_v47 = vld [vmem:[%s4326_s12 + $0x180] ss:$8 sps:$4 sm:$0xff]   ;;  %v3803_v48 = vld [vmem:[%s4326_s12 + $0xa4] ss:$8 sps:$4 sm:$0xff]  }
  0x6d   : > { %3287 = vmatprep.subr.bf16.mxu0 %v4324_v2  ;;  %3393 = vmatprep.subr.bf16.mxu1 %v4324_v2  ;;  %v3805_v49 = vld [vmem:[%s4326_s12 + $0x194] ss:$8 sps:$4 sm:$0xff]   ;;  %v3807_v50 = vld [vmem:[%s4326_s12 + $0xa0] ss:$8 sps:$4 sm:$0xff]   ;;  %v3808_v51 = vld [vmem:[%s4326_s12 + $0x190] ss:$8 sps:$4 sm:$0xff]  }
  0x6e   : > { %v3809_v52 = vld [vmem:[%s4326_s12 + $0xb4] ss:$8 sps:$4 sm:$0xff]   ;;  %v3811_v53 = vld [vmem:[%s4326_s12 + $0x1a4] ss:$8 sps:$4 sm:$0xff]   ;;  %v3813_v54 = vld [vmem:[%s4326_s12 + $0xb0] ss:$8 sps:$4 sm:$0xff]  }
  0x6f   : > { %v3814_v55 = vld [vmem:[%s4326_s12 + $0x1a0] ss:$8 sps:$4 sm:$0xff]   ;;  %v3832_v3 = vld [vmem:[%s4326_s12 + $0x1d0] ss:$8 sps:$4 sm:$0xff]   ;;  %v3835_v4 = vld [vmem:[%s4326_s12 + $0x1e4] ss:$8 sps:$4 sm:$0xff]  }
  0x70   : > { %3288 = vmatpush3.bf16.msra.mxu0 %v4335_v5  ;;  %3394 = vmatpush3.bf16.msra.mxu1 %v4335_v5 }
  0x71   : > { %3289 = vmatprep.subr.bf16.mxu0 %v4342_v6  ;;  %3395 = vmatprep.subr.bf16.mxu1 %v4342_v6 }
  0x74   : > { %3290 = vmatpush3.bf16.msra.mxu0 %v4349_v7  ;;  %3396 = vmatpush3.bf16.msra.mxu1 %v4349_v7 }
  0x75   : > { %3291 = vmatprep.subr.bf16.mxu0 %v4356_v8  ;;  %3397 = vmatprep.subr.bf16.mxu1 %v4356_v8 }
  0x78   : > { %3292 = vmatpush3.bf16.msra.mxu0 %v4363_v9  ;;  %3398 = vmatpush3.bf16.msra.mxu1 %v4363_v9 }
  0x79   : > { %3489 = vmatprep.subr.bf16.mxu0 %v3727_v56  ;;  %3595 = vmatprep.subr.bf16.mxu1 %v3727_v56  ;;  %v3815_v56 = vld [vmem:[%s4326_s12 + $0xc4] ss:$8 sps:$4 sm:$0xff]  }
  0x7b   : > { %1090 = vmatmul.mubr.bf16.vlgmr.msra.gmra.mrb[0].mxu0 %v3743_v10  ;;  %1526 = vmatmul.mubr.bf16.vlgmr.msra.gmra.mrb[0].mxu1 %v3746_v11  ;;  %v3843_v10 = vld [vmem:[%s4326_s12 + $0x1f0] ss:$8 sps:$4 sm:$0xff]   ;;  %v3844_v11 = vld [vmem:[%s4326_s12 + $0x2e0] ss:$8 sps:$4 sm:$0xff]  }
  0x7c   : > { %3490 = vmatpush3.bf16.msra.mxu0 %v3728_v57  ;;  %3596 = vmatpush3.bf16.msra.mxu1 %v3728_v57  ;;  %v3817_v57 = vld [vmem:[%s4326_s12 + $0x1b4] ss:$8 sps:$4 sm:$0xff]  }
  0x7d   : > { %1097 = vmatprep.mubr.bf16.mxu0 %v3749_v12  ;;  %1533 = vmatprep.mubr.bf16.mxu1 %v3751_v13  ;;  %v3845_v12 = vld [vmem:[%s4326_s12 + $0x204] ss:$8 sps:$4 sm:$0xff]   ;;  %v3847_v13 = vld [vmem:[%s4326_s12 + $0x2f4] ss:$8 sps:$4 sm:$0xff]  }
  0x7e   : > { %3491 = vmatprep.subr.bf16.mxu0 %v4269_v58  ;;  %3597 = vmatprep.subr.bf16.mxu1 %v4269_v58  ;;  %v3819_v58 = vld [vmem:[%s4326_s12 + $0xc0] ss:$8 sps:$4 sm:$0xff]  }
  0x80   : > { %3492 = vmatpush3.bf16.msra.mxu0 %v4274_v59  ;;  %3598 = vmatpush3.bf16.msra.mxu1 %v4274_v59  ;;  %v3820_v59 = vld [vmem:[%s4326_s12 + $0x1b0] ss:$8 sps:$4 sm:$0xff]  }
  0x81   : > { %3493 = vmatprep.subr.bf16.mxu0 %v4281_v60  ;;  %3599 = vmatprep.subr.bf16.mxu1 %v4281_v60  ;;  %v3821_v60 = vld [vmem:[%s4326_s12 + $0xd4] ss:$8 sps:$4 sm:$0xff]  }
  0x83   : > { %1098 = vmatmul.mubr.bf16.gmra.mrb[4].mxu0 %v3753_v14  ;;  %1534 = vmatmul.mubr.bf16.gmra.mrb[4].mxu1 %v3754_v15  ;;  %v3849_v14 = vld [vmem:[%s4326_s12 + $0x200] ss:$8 sps:$4 sm:$0xff]   ;;  %v3850_v15 = vld [vmem:[%s4326_s12 + $0x2f0] ss:$8 sps:$4 sm:$0xff]  }
  0x84   : > { %1105 = vmatprep.mubr.bf16.mxu0 %v3755_v16  ;;  %1541 = vmatprep.mubr.bf16.mxu1 %v3757_v17  ;;  %v3851_v16 = vld [vmem:[%s4326_s12 + $0x214] ss:$8 sps:$4 sm:$0xff]   ;;  %v3853_v17 = vld [vmem:[%s4326_s12 + $0x304] ss:$8 sps:$4 sm:$0xff]  }
  0x85   : > { %3494 = vmatpush3.bf16.msra.mxu0 %v4288_v61  ;;  %3600 = vmatpush3.bf16.msra.mxu1 %v4288_v61  ;;  %v3823_v61 = vld [vmem:[%s4326_s12 + $0x1c4] ss:$8 sps:$4 sm:$0xff]  }
  0x86   : > { %3495 = vmatprep.subr.bf16.mxu0 %v4296_v62  ;;  %3601 = vmatprep.subr.bf16.mxu1 %v4296_v62  ;;  %v3825_v62 = vld [vmem:[%s4326_s12 + $0xd0] ss:$8 sps:$4 sm:$0xff]  }
  0x89   : > { %3496 = vmatpush3.bf16.msra.mxu0 %v4303_v63  ;;  %3602 = vmatpush3.bf16.msra.mxu1 %v4303_v63  ;;  %v3826_v63 = vld [vmem:[%s4326_s12 + $0x1c0] ss:$8 sps:$4 sm:$0xff]  }
  0x8a   : > { %3497 = vmatprep.subr.bf16.mxu0 %v4310_v0  ;;  %3603 = vmatprep.subr.bf16.mxu1 %v4310_v0  ;;  %v3827_v0 = vld [vmem:[%s4326_s12 + $0xe4] ss:$8 sps:$4 sm:$0xff]  }
  0x8b   : > { %1106 = vmatmul.mubr.bf16.gmra.mrb[8].mxu0 %v3759_v18  ;;  %1542 = vmatmul.mubr.bf16.gmra.mrb[8].mxu1 %v3760_v19  ;;  %v3855_v18 = vld [vmem:[%s4326_s12 + $0x210] ss:$8 sps:$4 sm:$0xff]   ;;  %v3856_v19 = vld [vmem:[%s4326_s12 + $0x300] ss:$8 sps:$4 sm:$0xff]  }
  0x8c   : > { %1113 = vmatprep.mubr.bf16.mxu0 %v3761_v20  ;;  %1549 = vmatprep.mubr.bf16.mxu1 %v3763_v21  ;;  %v3857_v20 = vld [vmem:[%s4326_s12 + $0x224] ss:$8 sps:$4 sm:$0xff]   ;;  %v3859_v21 = vld [vmem:[%s4326_s12 + $0x314] ss:$8 sps:$4 sm:$0xff]  }
  0x8d   : > { %3498 = vmatpush3.bf16.msra.mxu0 %v4317_v1  ;;  %3604 = vmatpush3.bf16.msra.mxu1 %v4317_v1  ;;  %v3829_v1 = vld [vmem:[%s4326_s12 + $0x1d4] ss:$8 sps:$4 sm:$0xff]  }
  0x8e   : > { %3499 = vmatprep.subr.bf16.mxu0 %v4324_v2  ;;  %3605 = vmatprep.subr.bf16.mxu1 %v4324_v2  ;;  %v3831_v2 = vld [vmem:[%s4326_s12 + $0xe0] ss:$8 sps:$4 sm:$0xff]  }
  0x91   : > { %3500 = vmatpush3.bf16.msra.mxu0 %v4335_v5  ;;  %3606 = vmatpush3.bf16.msra.mxu1 %v4335_v5  ;;  %v3838_v5 = vld [vmem:[%s4326_s12 + $0x2d4] ss:$8 sps:$4 sm:$0xff]  }
  0x92   : > { %3501 = vmatprep.subr.bf16.mxu0 %v4342_v6  ;;  %3607 = vmatprep.subr.bf16.mxu1 %v4342_v6  ;;  %v3833_v6 = vld [vmem:[%s4326_s12 + $0x1e0] ss:$8 sps:$4 sm:$0xff]  }
  0x93   : > { %1114 = vmatmul.mubr.bf16.gmra.mrb[12].mxu0 %v3765_v22  ;;  %1550 = vmatmul.mubr.bf16.gmra.mrb[12].mxu1 %v3766_v23  ;;  %v3861_v22 = vld [vmem:[%s4326_s12 + $0x220] ss:$8 sps:$4 sm:$0xff]   ;;  %v3862_v23 = vld [vmem:[%s4326_s12 + $0x310] ss:$8 sps:$4 sm:$0xff]  }
  0x94   : > { %1121 = vmatprep.mubr.bf16.mxu0 %v3767_v24  ;;  %1557 = vmatprep.mubr.bf16.mxu1 %v3769_v25  ;;  %v3863_v24 = vld [vmem:[%s4326_s12 + $0x234] ss:$8 sps:$4 sm:$0xff]   ;;  %v3865_v25 = vld [vmem:[%s4326_s12 + $0x324] ss:$8 sps:$4 sm:$0xff]  }
  0x95   : > { %3502 = vmatpush3.bf16.msra.mxu0 %v4349_v7  ;;  %3608 = vmatpush3.bf16.msra.mxu1 %v4349_v7  ;;  %v3836_v7 = vld [vmem:[%s4326_s12 + $0x2d0] ss:$8 sps:$4 sm:$0xff]  }
  0x96   : > { %3503 = vmatprep.subr.bf16.mxu0 %v4356_v8  ;;  %3609 = vmatprep.subr.bf16.mxu1 %v4356_v8  ;;  %v3839_v8 = vld [vmem:[%s4326_s12 + $0x1f4] ss:$8 sps:$4 sm:$0xff]  }
  0x99   : > { %3504 = vmatpush3.bf16.msra.mxu0 %v4363_v9  ;;  %3610 = vmatpush3.bf16.msra.mxu1 %v4363_v9  ;;  %v3841_v9 = vld [vmem:[%s4326_s12 + $0x2e4] ss:$8 sps:$4 sm:$0xff]  }
  0x9b   : > { %1122 = vmatmul.mubr.bf16.gmra.mrb[16].mxu0 %v3771_v26  ;;  %1558 = vmatmul.mubr.bf16.gmra.mrb[16].mxu1 %v3772_v27  ;;  %v3867_v26 = vld [vmem:[%s4326_s12 + $0x230] ss:$8 sps:$4 sm:$0xff]   ;;  %v3868_v27 = vld [vmem:[%s4326_s12 + $0x320] ss:$8 sps:$4 sm:$0xff]  }
  0x9c   : > { %1129 = vmatprep.mubr.bf16.mxu0 %v3773_v28  ;;  %1565 = vmatprep.mubr.bf16.mxu1 %v3775_v29  ;;  %v3869_v28 = vld [vmem:[%s4326_s12 + $0x244] ss:$8 sps:$4 sm:$0xff]   ;;  %v3871_v29 = vld [vmem:[%s4326_s12 + $0x334] ss:$8 sps:$4 sm:$0xff]  }
  0xa3   : > { %1130 = vmatmul.mubr.bf16.gmra.mrb[20].mxu0 %v3777_v30  ;;  %1566 = vmatmul.mubr.bf16.gmra.mrb[20].mxu1 %v3778_v31  ;;  %v3873_v30 = vld [vmem:[%s4326_s12 + $0x240] ss:$8 sps:$4 sm:$0xff]   ;;  %v3874_v31 = vld [vmem:[%s4326_s12 + $0x330] ss:$8 sps:$4 sm:$0xff]  }
  0xa4   : > { %1137 = vmatprep.mubr.bf16.mxu0 %v3779_v32  ;;  %1573 = vmatprep.mubr.bf16.mxu1 %v3781_v33  ;;  %v3875_v32 = vld [vmem:[%s4326_s12 + $0x254] ss:$8 sps:$4 sm:$0xff]   ;;  %v3877_v33 = vld [vmem:[%s4326_s12 + $0x344] ss:$8 sps:$4 sm:$0xff]  }
  0xab   : > { %1138 = vmatmul.mubr.bf16.gmra.mrb[24].mxu0 %v3783_v34  ;;  %1574 = vmatmul.mubr.bf16.gmra.mrb[24].mxu1 %v3784_v35  ;;  %v3879_v34 = vld [vmem:[%s4326_s12 + $0x250] ss:$8 sps:$4 sm:$0xff]   ;;  %v3880_v35 = vld [vmem:[%s4326_s12 + $0x340] ss:$8 sps:$4 sm:$0xff]  }
  0xac   : > { %1145 = vmatprep.mubr.bf16.mxu0 %v3785_v36  ;;  %1581 = vmatprep.mubr.bf16.mxu1 %v3787_v37  ;;  %v3881_v36 = vld [vmem:[%s4326_s12 + $0x264] ss:$8 sps:$4 sm:$0xff]   ;;  %v3883_v37 = vld [vmem:[%s4326_s12 + $0x354] ss:$8 sps:$4 sm:$0xff]  }
  0xb3   : > { %1146 = vmatmul.mubr.bf16.gmra.mrb[28].mxu0 %v3789_v38  ;;  %1582 = vmatmul.mubr.bf16.gmra.mrb[28].mxu1 %v3790_v39  ;;  %v3885_v38 = vld [vmem:[%s4326_s12 + $0x260] ss:$8 sps:$4 sm:$0xff]   ;;  %v3886_v39 = vld [vmem:[%s4326_s12 + $0x350] ss:$8 sps:$4 sm:$0xff]  }
  0xb4   : > { %1153 = vmatprep.mubr.bf16.mxu0 %v3791_v40  ;;  %1589 = vmatprep.mubr.bf16.mxu1 %v3793_v41  ;;  %v3887_v40 = vld [vmem:[%s4326_s12 + $0x274] ss:$8 sps:$4 sm:$0xff]   ;;  %v3889_v41 = vld [vmem:[%s4326_s12 + $0x364] ss:$8 sps:$4 sm:$0xff]  }
  0xbb   : > { %1154 = vmatmul.mubr.bf16.gmra.mrb[32].mxu0 %v3795_v42  ;;  %1590 = vmatmul.mubr.bf16.gmra.mrb[32].mxu1 %v3796_v43  ;;  %v3891_v42 = vld [vmem:[%s4326_s12 + $0x270] ss:$8 sps:$4 sm:$0xff]   ;;  %v3892_v43 = vld [vmem:[%s4326_s12 + $0x360] ss:$8 sps:$4 sm:$0xff]  }
  0xbc   : > { %1161 = vmatprep.mubr.bf16.mxu0 %v3797_v44  ;;  %1597 = vmatprep.mubr.bf16.mxu1 %v3799_v45  ;;  %v3893_v44 = vld [vmem:[%s4326_s12 + $0x284] ss:$8 sps:$4 sm:$0xff]   ;;  %v3895_v45 = vld [vmem:[%s4326_s12 + $0x374] ss:$8 sps:$4 sm:$0xff]  }
  0xc3   : > { %1162 = vmatmul.mubr.bf16.gmra.mrb[36].mxu0 %v3801_v46  ;;  %1598 = vmatmul.mubr.bf16.gmra.mrb[36].mxu1 %v3802_v47  ;;  %v3897_v46 = vld [vmem:[%s4326_s12 + $0x280] ss:$8 sps:$4 sm:$0xff]   ;;  %v3898_v47 = vld [vmem:[%s4326_s12 + $0x370] ss:$8 sps:$4 sm:$0xff]  }
  0xc4   : > { %1169 = vmatprep.mubr.bf16.mxu0 %v3803_v48  ;;  %1605 = vmatprep.mubr.bf16.mxu1 %v3805_v49  ;;  %v3899_v48 = vld [vmem:[%s4326_s12 + $0x294] ss:$8 sps:$4 sm:$0xff]   ;;  %v3901_v49 = vld [vmem:[%s4326_s12 + $0x384] ss:$8 sps:$4 sm:$0xff]  }
  0xcb   : > { %1170 = vmatmul.mubr.bf16.gmra.mrb[40].mxu0 %v3807_v50  ;;  %1606 = vmatmul.mubr.bf16.gmra.mrb[40].mxu1 %v3808_v51  ;;  %v3903_v50 = vld [vmem:[%s4326_s12 + $0x290] ss:$8 sps:$4 sm:$0xff]   ;;  %v3904_v51 = vld [vmem:[%s4326_s12 + $0x380] ss:$8 sps:$4 sm:$0xff]  }
  0xcc   : > { %1177 = vmatprep.mubr.bf16.mxu0 %v3809_v52  ;;  %1613 = vmatprep.mubr.bf16.mxu1 %v3811_v53  ;;  %v3905_v52 = vld [vmem:[%s4326_s12 + $0x2a4] ss:$8 sps:$4 sm:$0xff]   ;;  %v3907_v53 = vld [vmem:[%s4326_s12 + $0x394] ss:$8 sps:$4 sm:$0xff]  }
  0xd3   : > { %1178 = vmatmul.mubr.bf16.gmra.mrb[44].mxu0 %v3813_v54  ;;  %1614 = vmatmul.mubr.bf16.gmra.mrb[44].mxu1 %v3814_v55 }
  0xd4   : > { %1185 = vmatprep.mubr.bf16.mxu0 %v3815_v56  ;;  %1621 = vmatprep.mubr.bf16.mxu1 %v3817_v57  ;;  %v4508_v56 = vld [vmem:[%s5218_s2] ss:$0 sm:$0xff] }
  0xdb   : > { %1186 = vmatmul.mubr.bf16.gmra.mrb[48].mxu0 %v3819_v58  ;;  %1622 = vmatmul.mubr.bf16.gmra.mrb[48].mxu1 %v3820_v59  ;;  %v3909_v59 = vld [vmem:[%s4326_s12 + $0x2a0] ss:$8 sps:$4 sm:$0xff]  }
  0xdc   : > { %1193 = vmatprep.mubr.bf16.mxu0 %v3821_v60  ;;  %1629 = vmatprep.mubr.bf16.mxu1 %v3823_v61  ;;  %v3910_v60 = vld [vmem:[%s4326_s12 + $0x390] ss:$8 sps:$4 sm:$0xff]  }
  0xe3   : > { %1194 = vmatmul.mubr.bf16.gmra.mrb[52].mxu0 %v3825_v62  ;;  %1630 = vmatmul.mubr.bf16.gmra.mrb[52].mxu1 %v3826_v63 }
  0xe4   : > { %1201 = vmatprep.mubr.bf16.mxu0 %v3827_v0  ;;  %1637 = vmatprep.mubr.bf16.mxu1 %v3829_v1  ;;  %v3911_v1 = vld [vmem:[%s4326_s12 + $0x2b4] ss:$8 sps:$4 sm:$0xff]  }
  0xeb   : > { %1202 = vmatmul.mubr.bf16.gmra.mrb[56].mxu0 %v3831_v2  ;;  %1638 = vmatmul.mubr.bf16.gmra.mrb[56].mxu1 %v3832_v3  ;;  %v3913_v2 = vld [vmem:[%s4326_s12 + $0x3a4] ss:$8 sps:$4 sm:$0xff]  }
  0xec   : > { %1979 = vmatprep.mubr.bf16.mxu0 %v3835_v4  ;;  %2403 = vmatprep.mubr.bf16.mxu1 %v3838_v5 }
  0xf3   : > { %1980 = vmatmul.mubr.bf16.vlgmr.msra.gmra.mrb[60].mxu0 %v3833_v6  ;;  %2404 = vmatmul.mubr.bf16.vlgmr.msra.gmra.mrb[60].mxu1 %v3836_v7 }
  0xf4   : > { %1987 = vmatprep.mubr.bf16.mxu0 %v3839_v8  ;;  %2411 = vmatprep.mubr.bf16.mxu1 %v3841_v9  ;;  %v4519_v9 = vld [vmem:[%s5219_s3] ss:$0 sm:$0xff] }
  0xfb   : > { %1988 = vmatmul.mubr.bf16.gmra.mrb[64].mxu0 %v3843_v10  ;;  %2412 = vmatmul.mubr.bf16.gmra.mrb[64].mxu1 %v3844_v11 }
  0xfc   : > { %1995 = vmatprep.mubr.bf16.mxu0 %v3845_v12  ;;  %2419 = vmatprep.mubr.bf16.mxu1 %v3847_v13 }
 0x103   : > { %1996 = vmatmul.mubr.bf16.gmra.mrb[68].mxu0 %v3849_v14  ;;  %2420 = vmatmul.mubr.bf16.gmra.mrb[68].mxu1 %v3850_v15  ;;  %v4526_v14 = vld [vmem:[%s5220_s4] ss:$0 sm:$0xff] }
 0x104   : > { %2003 = vmatprep.mubr.bf16.mxu0 %v3851_v16  ;;  %2427 = vmatprep.mubr.bf16.mxu1 %v3853_v17 }
 0x10b   : > { %2004 = vmatmul.mubr.bf16.gmra.mrb[72].mxu0 %v3855_v18  ;;  %2428 = vmatmul.mubr.bf16.gmra.mrb[72].mxu1 %v3856_v19 }
 0x10c   : > { %2011 = vmatprep.mubr.bf16.mxu0 %v3857_v20  ;;  %2435 = vmatprep.mubr.bf16.mxu1 %v3859_v21 }
 0x113   : > { %2012 = vmatmul.mubr.bf16.gmra.mrb[76].mxu0 %v3861_v22  ;;  %2436 = vmatmul.mubr.bf16.gmra.mrb[76].mxu1 %v3862_v23  ;;  %v3915_v23 = vld [vmem:[%s4326_s12 + $0x2b0] ss:$8 sps:$4 sm:$0xff]  }
 0x114   : > { %2019 = vmatprep.mubr.bf16.mxu0 %v3863_v24  ;;  %2443 = vmatprep.mubr.bf16.mxu1 %v3865_v25  ;;  %v3916_v24 = vld [vmem:[%s4326_s12 + $0x3a0] ss:$8 sps:$4 sm:$0xff]  }
 0x11b   : > { %2020 = vmatmul.mubr.bf16.gmra.mrb[80].mxu0 %v3867_v26  ;;  %2444 = vmatmul.mubr.bf16.gmra.mrb[80].mxu1 %v3868_v27 }
 0x11c   : > { %2027 = vmatprep.mubr.bf16.mxu0 %v3869_v28  ;;  %2451 = vmatprep.mubr.bf16.mxu1 %v3871_v29 }
 0x123   : > { %2028 = vmatmul.mubr.bf16.gmra.mrb[84].mxu0 %v3873_v30  ;;  %2452 = vmatmul.mubr.bf16.gmra.mrb[84].mxu1 %v3874_v31  ;;  %v3917_v31 = vld [vmem:[%s4326_s12 + $0x2c4] ss:$8 sps:$4 sm:$0xff]  }
 0x124   : > { %2035 = vmatprep.mubr.bf16.mxu0 %v3875_v32  ;;  %2459 = vmatprep.mubr.bf16.mxu1 %v3877_v33  ;;  %v3919_v32 = vld [vmem:[%s4326_s12 + $0x3b4] ss:$8 sps:$4 sm:$0xff]  }
 0x12b   : > { %2036 = vmatmul.mubr.bf16.gmra.mrb[88].mxu0 %v3879_v34  ;;  %2460 = vmatmul.mubr.bf16.gmra.mrb[88].mxu1 %v3880_v35 }
 0x12c   : > { %2043 = vmatprep.mubr.bf16.mxu0 %v3881_v36  ;;  %2467 = vmatprep.mubr.bf16.mxu1 %v3883_v37 }
 0x133   : > { %2044 = vmatmul.mubr.bf16.gmra.mrb[92].mxu0 %v3885_v38  ;;  %2468 = vmatmul.mubr.bf16.gmra.mrb[92].mxu1 %v3886_v39 }
 0x134   : > { %2051 = vmatprep.mubr.bf16.mxu0 %v3887_v40  ;;  %2475 = vmatprep.mubr.bf16.mxu1 %v3889_v41 }
 0x13b   : > { %2052 = vmatmul.mubr.bf16.gmra.mrb[96].mxu0 %v3891_v42  ;;  %2476 = vmatmul.mubr.bf16.gmra.mrb[96].mxu1 %v3892_v43 }
 0x13c   : > { %2059 = vmatprep.mubr.bf16.mxu0 %v3893_v44  ;;  %2483 = vmatprep.mubr.bf16.mxu1 %v3895_v45 }
 0x143   : > { %2060 = vmatmul.mubr.bf16.gmra.mrb[100].mxu0 %v3897_v46  ;;  %2484 = vmatmul.mubr.bf16.gmra.mrb[100].mxu1 %v3898_v47 }
 0x144   : > { %2067 = vmatprep.mubr.bf16.mxu0 %v3899_v48  ;;  %2491 = vmatprep.mubr.bf16.mxu1 %v3901_v49 }
 0x14b   : > { %2068 = vmatmul.mubr.bf16.gmra.mrb[104].mxu0 %v3903_v50  ;;  %2492 = vmatmul.mubr.bf16.gmra.mrb[104].mxu1 %v3904_v51 }
 0x14c   : > { %2075 = vmatprep.mubr.bf16.mxu0 %v3905_v52  ;;  %2499 = vmatprep.mubr.bf16.mxu1 %v3907_v53  ;;  %v3921_v52 = vld [vmem:[%s4326_s12 + $0x2c0] ss:$8 sps:$4 sm:$0xff]  }
 0x14e   : > { %v3293_v54 = vpop.f32.mrb[0].mxu0  ;;  %v3399_v55 = vpop.f32.mrb[0].mxu1 }
 0x14f   : > { %v3294_v57 = vpop.f32.mrb[1].mxu0  ;;  %v3400_v58 = vpop.f32.mrb[1].mxu1 }
 0x150   : > { %v3295_v61 = vadd.f32 %v3294_v57, %v3293_v54  ;;  %v3401_v62 = vadd.f32 %v3400_v58, %v3399_v55  ;;  %v3296_v63 = vpop.f32.mrb[2].mxu0  ;;  %v3402_v0 = vpop.f32.mrb[2].mxu1 }
 0x151   : > { %v3297_v3 = vpop.f32.mrb[3].mxu0  ;;  %v3403_v4 = vpop.f32.mrb[3].mxu1 }
 0x152   : > { %v1092_v5 = vadd.f32 %v3295_v61, %v4508_v56  ;;  %v1528_v6 = vadd.f32 %v3401_v62, %v4508_v56  ;;  %v3298_v7 = vadd.f32 %v3297_v3, %v3296_v63  ;;  %v3404_v8 = vadd.f32 %v3403_v4, %v3402_v0 }
 0x153   : > { %2076 = vmatmul.mubr.bf16.gmra.mrb[108].mxu0 %v3909_v59  ;;  %2500 = vmatmul.mubr.bf16.gmra.mrb[108].mxu1 %v3910_v60  ;;  %v3922_v59 = vld [vmem:[%s4326_s12 + $0x3b0] ss:$8 sps:$4 sm:$0xff]  }
 0x154   : > { %v1210_v10 = vmax.f32 %v1092_v5, 0.0  ;;  %v1646_v11 = vmax.f32 %v1528_v6, 0.0  ;;  %v1095_v12 = vadd.f32 %v3298_v7, %v4508_v56  ;;  %v1531_v13 = vadd.f32 %v3404_v8, %v4508_v56  ;;  %2083 = vmatprep.mubr.bf16.mxu0 %v3911_v1  ;;  %2507 = vmatprep.mubr.bf16.mxu1 %v3913_v2 }
 0x156   : > { %v1246_v15 = vmul.f32 %v4519_v9, %v1210_v10  ;;  %v1676_v16 = vmul.f32 %v4519_v9, %v1646_v11  ;;  %v1211_v17 = vmax.f32 %v1095_v12, 0.0  ;;  %v1647_v18 = vmax.f32 %v1531_v13, 0.0  ;;  %v3299_v19 = vpop.f32.mrb[4].mxu0  ;;  %v3405_v20 = vpop.f32.mrb[4].mxu1 }
 0x157   : > { %v3300_v21 = vpop.f32.mrb[5].mxu0  ;;  %v3406_v22 = vpop.f32.mrb[5].mxu1 }
 0x158   : > { %v4533_v25 = vadd.f32 %v4526_v14, %v1246_v15  ;;  %v4536_v26 = vadd.f32 %v4526_v14, %v1676_v16  ;;  %v1247_v27 = vmul.f32 %v4519_v9, %v1211_v17  ;;  %v1677_v28 = vmul.f32 %v4519_v9, %v1647_v18  ;;  %v3302_v29 = vpop.f32.mrb[6].mxu0  ;;  %v3408_v30 = vpop.f32.mrb[6].mxu1 }
 0x159   : > { %v3301_v33 = vadd.f32 %v3300_v21, %v3299_v19  ;;  %v3407_v34 = vadd.f32 %v3406_v22, %v3405_v20  ;;  %v3303_v35 = vpop.f32.mrb[7].mxu0  ;;  %v3409_v36 = vpop.f32.mrb[7].mxu1 }
 0x15a   : > { %v4545_v38 = vadd.f32 %v4526_v14, %v1247_v27  ;;  %v4548_v39 = vadd.f32 %v4526_v14, %v1677_v28  ;;  %v3304_v40 = vadd.f32 %v3303_v35, %v3302_v29  ;;  %v3410_v43 = vadd.f32 %v3409_v36, %v3408_v30 }
 0x15b   : > { %v1100_v41 = vadd.f32 %v3301_v33, %v4508_v56  ;;  %v1536_v42 = vadd.f32 %v3407_v34, %v4508_v56  ;;  %2084 = vmatmul.mubr.bf16.gmra.mrb[112].mxu0 %v3915_v23  ;;  %2508 = vmatmul.mubr.bf16.gmra.mrb[112].mxu1 %v3916_v24 }
 0x15c   : > { %v1103_v45 = vadd.f32 %v3304_v40, %v4508_v56  ;;  %2091 = vmatprep.mubr.bf16.mxu0 %v3917_v31  ;;  %2515 = vmatprep.mubr.bf16.mxu1 %v3919_v32  ;;  %v1539_v48 = vadd.f32 %v3410_v43, %v4508_v56 }
 0x15d   : > { %v1212_v46 = vmax.f32 %v1100_v41, 0.0  ;;  %v1648_v47 = vmax.f32 %v1536_v42, 0.0 }
 0x15e   : > { %v1213_v49 = vmax.f32 %v1103_v45, 0.0  ;;  %v3305_v50 = vpop.f32.mrb[8].mxu0  ;;  %v3411_v51 = vpop.f32.mrb[8].mxu1  ;;  %v1649_v55 = vmax.f32 %v1539_v48, 0.0 }
 0x15f   : > { %v1248_v53 = vmul.f32 %v4519_v9, %v1212_v46  ;;  %v1678_v54 = vmul.f32 %v4519_v9, %v1648_v47  ;;  %v3306_v57 = vpop.f32.mrb[9].mxu0  ;;  %v3412_v58 = vpop.f32.mrb[9].mxu1 }
 0x160   : > { %v1249_v60 = vmul.f32 %v4519_v9, %v1213_v49  ;;  %v3307_v61 = vadd.f32 %v3306_v57, %v3305_v50  ;;  %v3413_v62 = vadd.f32 %v3412_v58, %v3411_v51  ;;  %v3308_v63 = vpop.f32.mrb[10].mxu0  ;;  %v3414_v0 = vpop.f32.mrb[10].mxu1  ;;  %v1679_v3 = vmul.f32 %v4519_v9, %v1649_v55 }
 0x161   : > { %v4562_v1 = vadd.f32 %v4526_v14, %v1248_v53  ;;  %v4565_v2 = vadd.f32 %v4526_v14, %v1678_v54  ;;  %v3309_v4 = vpop.f32.mrb[11].mxu0  ;;  %v3415_v5 = vpop.f32.mrb[11].mxu1 }
 0x162   : > { %v4569_v6 = vadd.f32 %v4526_v14, %v1249_v60  ;;  %v1108_v7 = vadd.f32 %v3307_v61, %v4508_v56  ;;  %v1544_v8 = vadd.f32 %v3413_v62, %v4508_v56  ;;  %v3310_v10 = vadd.f32 %v3309_v4, %v3308_v63 }
 0x163   : > { %v4576_v12 = vadd.f32 %v4526_v14, %v1679_v3  ;;  %v3416_v13 = vadd.f32 %v3415_v5, %v3414_v0  ;;  %2092 = vmatmul.mubr.bf16.gmra.mrb[116].mxu0 %v3921_v52  ;;  %2516 = vmatmul.mubr.bf16.gmra.mrb[116].mxu1 %v3922_v59 }
 0x164   : > { %v1214_v15 = vmax.f32 %v1108_v7, 0.0  ;;  %v1650_v16 = vmax.f32 %v1544_v8, 0.0  ;;  %v1111_v17 = vadd.f32 %v3310_v10, %v4508_v56 }
 0x165   : > { %v1547_v19 = vadd.f32 %v3416_v13, %v4508_v56 }
 0x166   : > { %v1250_v20 = vmul.f32 %v4519_v9, %v1214_v15  ;;  %v1680_v21 = vmul.f32 %v4519_v9, %v1650_v16  ;;  %v1215_v22 = vmax.f32 %v1111_v17, 0.0  ;;  %v3311_v23 = vpop.f32.mrb[12].mxu0  ;;  %v3417_v24 = vpop.f32.mrb[12].mxu1 }
 0x167   : > { %v1651_v27 = vmax.f32 %v1547_v19, 0.0  ;;  %v3312_v28 = vpop.f32.mrb[13].mxu0  ;;  %v3418_v29 = vpop.f32.mrb[13].mxu1 }
 0x168   : > { %v4585_v30 = vadd.f32 %v4526_v14, %v1250_v20  ;;  %v4588_v31 = vadd.f32 %v4526_v14, %v1680_v21  ;;  %v1251_v32 = vmul.f32 %v4519_v9, %v1215_v22  ;;  %v3313_v33 = vadd.f32 %v3312_v28, %v3311_v23  ;;  %v3314_v34 = vpop.f32.mrb[14].mxu0  ;;  %v3420_v35 = vpop.f32.mrb[14].mxu1 }
 0x169   : > { %v1681_v36 = vmul.f32 %v4519_v9, %v1651_v27  ;;  %v3419_v40 = vadd.f32 %v3418_v29, %v3417_v24  ;;  %v3315_v41 = vpop.f32.mrb[15].mxu0  ;;  %v3421_v42 = vpop.f32.mrb[15].mxu1 }
 0x16a   : > { %v4595_v45 = vadd.f32 %v4526_v14, %v1251_v32  ;;  %v1116_v46 = vadd.f32 %v3313_v33, %v4508_v56  ;;  %v3316_v47 = vadd.f32 %v3315_v41, %v3314_v34  ;;  %v3422_v50 = vadd.f32 %v3421_v42, %v3420_v35 }
 0x16b   : > { %v4599_v48 = vadd.f32 %v4526_v14, %v1681_v36  ;;  %v1552_v49 = vadd.f32 %v3419_v40, %v4508_v56 }
 0x16c   : > { %v1216_v51 = vmax.f32 %v1116_v46, 0.0  ;;  %v1119_v52 = vadd.f32 %v3316_v47, %v4508_v56  ;;  %v1555_v55 = vadd.f32 %v3422_v50, %v4508_v56 }
 0x16d   : > { %v1652_v54 = vmax.f32 %v1552_v49, 0.0 }
 0x16e   : > { %v1252_v57 = vmul.f32 %v4519_v9, %v1216_v51  ;;  %v1217_v58 = vmax.f32 %v1119_v52, 0.0  ;;  %v3317_v59 = vpop.f32.mrb[16].mxu0  ;;  %v3423_v60 = vpop.f32.mrb[16].mxu1  ;;  %v1653_v62 = vmax.f32 %v1555_v55, 0.0 }
 0x16f   : > { %v1682_v61 = vmul.f32 %v4519_v9, %v1652_v54  ;;  %v3318_v63 = vpop.f32.mrb[17].mxu0  ;;  %v3424_v0 = vpop.f32.mrb[17].mxu1 }
 0x170   : > { %v4609_v3 = vadd.f32 %v4526_v14, %v1252_v57  ;;  %v1253_v4 = vmul.f32 %v4519_v9, %v1217_v58  ;;  %v3319_v5 = vadd.f32 %v3318_v63, %v3317_v59  ;;  %v3425_v7 = vadd.f32 %v3424_v0, %v3423_v60  ;;  %v3320_v8 = vpop.f32.mrb[18].mxu0  ;;  %v3426_v10 = vpop.f32.mrb[18].mxu1 }
 0x171   : > { %v4613_v13 = vadd.f32 %v4526_v14, %v1682_v61  ;;  %v1683_v15 = vmul.f32 %v4519_v9, %v1653_v62  ;;  %v3321_v16 = vpop.f32.mrb[19].mxu0  ;;  %v3427_v17 = vpop.f32.mrb[19].mxu1 }
 0x172   : > { %v4617_v19 = vadd.f32 %v4526_v14, %v1253_v4  ;;  %v1124_v20 = vadd.f32 %v3319_v5, %v4508_v56  ;;  %v1560_v21 = vadd.f32 %v3425_v7, %v4508_v56  ;;  %v3322_v22 = vadd.f32 %v3321_v16, %v3320_v8 }
 0x173   : > { %v4624_v24 = vadd.f32 %v4526_v14, %v1683_v15  ;;  %v3428_v27 = vadd.f32 %v3427_v17, %v3426_v10 }
 0x174   : > { %v1218_v28 = vmax.f32 %v1124_v20, 0.0  ;;  %v1654_v29 = vmax.f32 %v1560_v21, 0.0  ;;  %v1127_v32 = vadd.f32 %v3322_v22, %v4508_v56 }
 0x175   : > { %v1563_v34 = vadd.f32 %v3428_v27, %v4508_v56 }
 0x176   : > { %v1254_v35 = vmul.f32 %v4519_v9, %v1218_v28  ;;  %v1684_v36 = vmul.f32 %v4519_v9, %v1654_v29  ;;  %v1219_v40 = vmax.f32 %v1127_v32, 0.0  ;;  %v3323_v41 = vpop.f32.mrb[20].mxu0  ;;  %v3429_v42 = vpop.f32.mrb[20].mxu1 }
 0x177   : > { %v1655_v46 = vmax.f32 %v1563_v34, 0.0  ;;  %v3324_v47 = vpop.f32.mrb[21].mxu0  ;;  %v3430_v49 = vpop.f32.mrb[21].mxu1 }
 0x178   : > { %v4633_v50 = vadd.f32 %v4526_v14, %v1254_v35  ;;  %v4636_v51 = vadd.f32 %v4526_v14, %v1684_v36  ;;  %v1255_v52 = vmul.f32 %v4519_v9, %v1219_v40  ;;  %v3325_v54 = vadd.f32 %v3324_v47, %v3323_v41  ;;  %v3326_v55 = vpop.f32.mrb[22].mxu0  ;;  %v3432_v57 = vpop.f32.mrb[22].mxu1 }
 0x179   : > { %v1685_v58 = vmul.f32 %v4519_v9, %v1655_v46  ;;  %v3431_v59 = vadd.f32 %v3430_v49, %v3429_v42  ;;  %v3327_v60 = vpop.f32.mrb[23].mxu0  ;;  %v3433_v61 = vpop.f32.mrb[23].mxu1 }
 0x17a   : > { %v4643_v63 = vadd.f32 %v4526_v14, %v1255_v52  ;;  %v1132_v0 = vadd.f32 %v3325_v54, %v4508_v56  ;;  %v3328_v4 = vadd.f32 %v3327_v60, %v3326_v55  ;;  %v3434_v8 = vadd.f32 %v3433_v61, %v3432_v57 }
 0x17b   : > { %v4647_v5 = vadd.f32 %v4526_v14, %v1685_v58  ;;  %v1568_v7 = vadd.f32 %v3431_v59, %v4508_v56 }
 0x17c   : > { %v1220_v10 = vmax.f32 %v1132_v0, 0.0  ;;  %v1135_v15 = vadd.f32 %v3328_v4, %v4508_v56  ;;  %v1571_v20 = vadd.f32 %v3434_v8, %v4508_v56 }
 0x17d   : > { %v1656_v17 = vmax.f32 %v1568_v7, 0.0 }
 0x17e   : > { %v1256_v21 = vmul.f32 %v4519_v9, %v1220_v10  ;;  %v1221_v22 = vmax.f32 %v1135_v15, 0.0  ;;  %v3329_v27 = vpop.f32.mrb[24].mxu0  ;;  %v3435_v28 = vpop.f32.mrb[24].mxu1  ;;  %v1657_v32 = vmax.f32 %v1571_v20, 0.0 }
 0x17f   : > { %v1686_v29 = vmul.f32 %v4519_v9, %v1656_v17  ;;  %v3330_v34 = vpop.f32.mrb[25].mxu0  ;;  %v3436_v35 = vpop.f32.mrb[25].mxu1 }
 0x180   : > { %v4657_v36 = vadd.f32 %v4526_v14, %v1256_v21  ;;  %v1257_v40 = vmul.f32 %v4519_v9, %v1221_v22  ;;  %v3331_v41 = vadd.f32 %v3330_v34, %v3329_v27  ;;  %v3437_v42 = vadd.f32 %v3436_v35, %v3435_v28  ;;  %v3332_v46 = vpop.f32.mrb[26].mxu0  ;;  %v3438_v47 = vpop.f32.mrb[26].mxu1 }
 0x181   : > { %v4661_v49 = vadd.f32 %v4526_v14, %v1686_v29  ;;  %v1687_v52 = vmul.f32 %v4519_v9, %v1657_v32  ;;  %v3333_v54 = vpop.f32.mrb[27].mxu0  ;;  %v3439_v55 = vpop.f32.mrb[27].mxu1 }
 0x182   : > { %v4665_v57 = vadd.f32 %v4526_v14, %v1257_v40  ;;  %v1140_v58 = vadd.f32 %v3331_v41, %v4508_v56  ;;  %v1576_v59 = vadd.f32 %v3437_v42, %v4508_v56  ;;  %v3334_v60 = vadd.f32 %v3333_v54, %v3332_v46 }
 0x183   : > { %v4672_v0 = vadd.f32 %v4526_v14, %v1687_v52  ;;  %v3440_v4 = vadd.f32 %v3439_v55, %v3438_v47 }
 0x184   : > { %v1222_v7 = vmax.f32 %v1140_v58, 0.0  ;;  %v1658_v8 = vmax.f32 %v1576_v59, 0.0  ;;  %v1143_v10 = vadd.f32 %v3334_v60, %v4508_v56 }
 0x185   : > { %v1579_v17 = vadd.f32 %v3440_v4, %v4508_v56 }
 0x186   : > { %v1258_v20 = vmul.f32 %v4519_v9, %v1222_v7  ;;  %v1688_v21 = vmul.f32 %v4519_v9, %v1658_v8  ;;  %v1223_v22 = vmax.f32 %v1143_v10, 0.0  ;;  %v3335_v27 = vpop.f32.mrb[28].mxu0  ;;  %v3441_v28 = vpop.f32.mrb[28].mxu1 }
 0x187   : > { %v1659_v29 = vmax.f32 %v1579_v17, 0.0  ;;  %v3336_v32 = vpop.f32.mrb[29].mxu0  ;;  %v3442_v34 = vpop.f32.mrb[29].mxu1 }
 0x188   : > { %v4681_v35 = vadd.f32 %v4526_v14, %v1258_v20  ;;  %v4684_v40 = vadd.f32 %v4526_v14, %v1688_v21  ;;  %v1259_v41 = vmul.f32 %v4519_v9, %v1223_v22  ;;  %v3337_v42 = vadd.f32 %v3336_v32, %v3335_v27  ;;  %v3338_v46 = vpop.f32.mrb[30].mxu0  ;;  %v3444_v47 = vpop.f32.mrb[30].mxu1 }
 0x189   : > { %v1689_v52 = vmul.f32 %v4519_v9, %v1659_v29  ;;  %v3443_v54 = vadd.f32 %v3442_v34, %v3441_v28  ;;  %v3339_v55 = vpop.f32.mrb[31].mxu0  ;;  %v3445_v58 = vpop.f32.mrb[31].mxu1 }
 0x18a   : > { %v4691_v60 = vadd.f32 %v4526_v14, %v1259_v41  ;;  %v1148_v4 = vadd.f32 %v3337_v42, %v4508_v56  ;;  %v3340_v7 = vadd.f32 %v3339_v55, %v3338_v46  ;;  %v3446_v17 = vadd.f32 %v3445_v58, %v3444_v47 }
 0x18b   : > { %v4695_v8 = vadd.f32 %v4526_v14, %v1689_v52  ;;  %v1584_v10 = vadd.f32 %v3443_v54, %v4508_v56 }
 0x18c   : > { %v1224_v20 = vmax.f32 %v1148_v4, 0.0  ;;  %v1151_v21 = vadd.f32 %v3340_v7, %v4508_v56  ;;  %v1587_v28 = vadd.f32 %v3446_v17, %v4508_v56 }
 0x18d   : > { %v1660_v27 = vmax.f32 %v1584_v10, 0.0 }
 0x18e   : > { %v1260_v29 = vmul.f32 %v4519_v9, %v1224_v20  ;;  %v1225_v32 = vmax.f32 %v1151_v21, 0.0  ;;  %v3341_v34 = vpop.f32.mrb[32].mxu0  ;;  %v3447_v41 = vpop.f32.mrb[32].mxu1  ;;  %v1661_v46 = vmax.f32 %v1587_v28, 0.0 }
 0x18f   : > { %v1690_v42 = vmul.f32 %v4519_v9, %v1660_v27  ;;  %v3342_v52 = vpop.f32.mrb[33].mxu0  ;;  %v3448_v54 = vpop.f32.mrb[33].mxu1 }
 0x190   : > { %v4705_v47 = vadd.f32 %v4526_v14, %v1260_v29  ;;  %v1261_v55 = vmul.f32 %v4519_v9, %v1225_v32  ;;  %v3343_v58 = vadd.f32 %v3342_v52, %v3341_v34  ;;  %v3449_v4 = vadd.f32 %v3448_v54, %v3447_v41  ;;  %v3344_v7 = vpop.f32.mrb[34].mxu0  ;;  %v3450_v10 = vpop.f32.mrb[34].mxu1 }
 0x191   : > { %v4709_v17 = vadd.f32 %v4526_v14, %v1690_v42  ;;  %v1691_v20 = vmul.f32 %v4519_v9, %v1661_v46  ;;  %v3345_v21 = vpop.f32.mrb[35].mxu0  ;;  %v3451_v22 = vpop.f32.mrb[35].mxu1 }
 0x192   : > { %v4713_v27 = vadd.f32 %v4526_v14, %v1261_v55  ;;  %v1156_v28 = vadd.f32 %v3343_v58, %v4508_v56  ;;  %v1592_v29 = vadd.f32 %v3449_v4, %v4508_v56  ;;  %v3346_v59 = vadd.f32 %v3345_v21, %v3344_v7 }
 0x193   : > { %v4720_v34 = vadd.f32 %v4526_v14, %v1691_v20  ;;  %v3452_v41 = vadd.f32 %v3451_v22, %v3450_v10 }
 0x194   : > { %v1226_v42 = vmax.f32 %v1156_v28, 0.0  ;;  %v1662_v52 = vmax.f32 %v1592_v29, 0.0  ;;  %v1159_v46 = vadd.f32 %v3346_v59, %v4508_v56 }
 0x195   : > { %v1595_v55 = vadd.f32 %v3452_v41, %v4508_v56 }
 0x196   : > { %v1262_v58 = vmul.f32 %v4519_v9, %v1226_v42  ;;  %v1692_v4 = vmul.f32 %v4519_v9, %v1662_v52  ;;  %v1227_v7 = vmax.f32 %v1159_v46, 0.0  ;;  %v3347_v21 = vpop.f32.mrb[36].mxu0  ;;  %v3453_v32 = vpop.f32.mrb[36].mxu1 }
 0x197   : > { %v1663_v15 = vmax.f32 %v1595_v55, 0.0  ;;  %v3348_v20 = vpop.f32.mrb[37].mxu0  ;;  %v3454_v61 = vpop.f32.mrb[37].mxu1 }
 0x198   : > { %v4729_v22 = vadd.f32 %v4526_v14, %v1262_v58  ;;  %v4732_v59 = vadd.f32 %v4526_v14, %v1692_v4  ;;  %v1263_v10 = vmul.f32 %v4519_v9, %v1227_v7  ;;  %v3349_v28 = vadd.f32 %v3348_v20, %v3347_v21  ;;  %v3350_v29 = vpop.f32.mrb[38].mxu0  ;;  %v3456_v41 = vpop.f32.mrb[38].mxu1 }
 0x199   : > { %v1693_v42 = vmul.f32 %v4519_v9, %v1663_v15  ;;  %v3455_v52 = vadd.f32 %v3454_v61, %v3453_v32  ;;  %v3351_v46 = vpop.f32.mrb[39].mxu0  ;;  %v3457_v54 = vpop.f32.mrb[39].mxu1 }
 0x19a   : > { %v4739_v16 = vadd.f32 %v4526_v14, %v1263_v10  ;;  %v1164_v58 = vadd.f32 %v3349_v28, %v4508_v56  ;;  %v3352_v4 = vadd.f32 %v3351_v46, %v3350_v29  ;;  %v3458_v21 = vadd.f32 %v3457_v54, %v3456_v41 }
 0x19b   : > { %v4743_v62 = vadd.f32 %v4526_v14, %v1693_v42  ;;  %v1600_v7 = vadd.f32 %v3455_v52, %v4508_v56 }
 0x19c   : > { %v1228_v20 = vmax.f32 %v1164_v58, 0.0  ;;  %v1167_v61 = vadd.f32 %v3352_v4, %v4508_v56  ;;  %v1603_v55 = vadd.f32 %v3458_v21, %v4508_v56 }
 0x19d   : > { %v1664_v32 = vmax.f32 %v1600_v7, 0.0 }
 0x19e   : > { %v1264_v10 = vmul.f32 %v4519_v9, %v1228_v20  ;;  %v1229_v33 = vmax.f32 %v1167_v61, 0.0  ;;  %v3353_v28 = vpop.f32.mrb[40].mxu0  ;;  %v3459_v29 = vpop.f32.mrb[40].mxu1  ;;  %v1665_v46 = vmax.f32 %v1603_v55, 0.0 }
 0x19f   : > { %v1694_v42 = vmul.f32 %v4519_v9, %v1664_v32  ;;  %v3354_v23 = vpop.f32.mrb[41].mxu0  ;;  %v3460_v52 = vpop.f32.mrb[41].mxu1 }
 0x1a0   : > { %v4753_v54 = vadd.f32 %v4526_v14, %v1264_v10  ;;  %v1265_v41 = vmul.f32 %v4519_v9, %v1229_v33  ;;  %v3355_v58 = vadd.f32 %v3354_v23, %v3353_v28  ;;  %v3461_v4 = vadd.f32 %v3460_v52, %v3459_v29  ;;  %v3356_v7 = vpop.f32.mrb[42].mxu0  ;;  %v3462_v15 = vpop.f32.mrb[42].mxu1 }
 0x1a1   : > { %v4757_v21 = vadd.f32 %v4526_v14, %v1694_v42  ;;  %v1695_v20 = vmul.f32 %v4519_v9, %v1665_v46  ;;  %v3357_v61 = vpop.f32.mrb[43].mxu0  ;;  %v3463_v53 = vpop.f32.mrb[43].mxu1 }
 0x1a2   : > { %v4761_v55 = vadd.f32 %v4526_v14, %v1265_v41  ;;  %v1172_v32 = vadd.f32 %v3355_v58, %v4508_v56  ;;  %v1608_v10 = vadd.f32 %v3461_v4, %v4508_v56  ;;  %v3358_v43 = vadd.f32 %v3357_v61, %v3356_v7 }
 0x1a3   : > { %v4768_v33 = vadd.f32 %v4526_v14, %v1695_v20  ;;  %v3464_v28 = vadd.f32 %v3463_v53, %v3462_v15 }
 0x1a4   : > { %5244 = vst [vmem:[#allocation3_spill] sm:$0xff] %v4761_v55  ;;  %v1230_v29 = vmax.f32 %v1172_v32, 0.0  ;;  %v1666_v42 = vmax.f32 %v1608_v10, 0.0  ;;  %v1175_v46 = vadd.f32 %v3358_v43, %v4508_v56 }
 0x1a5   : > { %5245 = vst [vmem:[#allocation4_spill] sm:$0xff] %v4768_v33  ;;  %v1611_v41 = vadd.f32 %v3464_v28, %v4508_v56 }
 0x1a6   : > { %v1266_v58 = vmul.f32 %v4519_v9, %v1230_v29  ;;  %v1696_v4 = vmul.f32 %v4519_v9, %v1666_v42  ;;  %v1231_v7 = vmax.f32 %v1175_v46, 0.0  ;;  %v3359_v61 = vpop.f32.mrb[44].mxu0  ;;  %v3465_v23 = vpop.f32.mrb[44].mxu1 }
 0x1a7   : > { %v1667_v18 = vmax.f32 %v1611_v41, 0.0  ;;  %v3360_v20 = vpop.f32.mrb[45].mxu0  ;;  %v3466_v11 = vpop.f32.mrb[45].mxu1 }
 0x1a8   : > { %v4777_v53 = vadd.f32 %v4526_v14, %v1266_v58  ;;  %v4780_v43 = vadd.f32 %v4526_v14, %v1696_v4  ;;  %v1267_v15 = vmul.f32 %v4519_v9, %v1231_v7  ;;  %v3361_v32 = vadd.f32 %v3360_v20, %v3359_v61  ;;  %v3362_v10 = vpop.f32.mrb[46].mxu0  ;;  %v3468_v28 = vpop.f32.mrb[46].mxu1 }
 0x1a9   : > { %v1697_v29 = vmul.f32 %v4519_v9, %v1667_v18  ;;  %v3467_v42 = vadd.f32 %v3466_v11, %v3465_v23  ;;  %v3363_v46 = vpop.f32.mrb[47].mxu0  ;;  %v3469_v52 = vpop.f32.mrb[47].mxu1 }
 0x1aa   : > { %5246 = vst [vmem:[#allocation5_spill] sm:$0xff] %v4777_v53  ;;  %5247 = vst [vmem:[#allocation6_spill] sm:$0xff] %v4780_v43  ;;  %v4787_v44 = vadd.f32 %v4526_v14, %v1267_v15  ;;  %v1180_v58 = vadd.f32 %v3361_v32, %v4508_v56  ;;  %v3364_v4 = vadd.f32 %v3363_v46, %v3362_v10 }
 0x1ab   : > { %v4791_v37 = vadd.f32 %v4526_v14, %v1697_v29  ;;  %v1616_v7 = vadd.f32 %v3467_v42, %v4508_v56  ;;  %v3470_v61 = vadd.f32 %v3469_v52, %v3468_v28 }
 0x1ac   : > { %5248 = vst [vmem:[#allocation7_spill] sm:$0xff] %v4787_v44  ;;  %v1232_v20 = vmax.f32 %v1180_v58, 0.0  ;;  %v1183_v11 = vadd.f32 %v3364_v4, %v4508_v56 }
 0x1ad   : > { %5249 = vst [vmem:[#allocation8_spill] sm:$0xff] %v4791_v37  ;;  %v1668_v23 = vmax.f32 %v1616_v7, 0.0  ;;  %v1619_v41 = vadd.f32 %v3470_v61, %v4508_v56 }
 0x1ae   : > { %v1268_v15 = vmul.f32 %v4519_v9, %v1232_v20  ;;  %v1233_v43 = vmax.f32 %v1183_v11, 0.0  ;;  %v3365_v32 = vpop.f32.mrb[48].mxu0  ;;  %v3471_v10 = vpop.f32.mrb[48].mxu1 }
 0x1af   : > { %v1698_v29 = vmul.f32 %v4519_v9, %v1668_v23  ;;  %v1669_v46 = vmax.f32 %v1619_v41, 0.0  ;;  %v3366_v53 = vpop.f32.mrb[49].mxu0  ;;  %v3472_v42 = vpop.f32.mrb[49].mxu1 }
 0x1b0   : > { %v4801_v52 = vadd.f32 %v4526_v14, %v1268_v15  ;;  %v1269_v28 = vmul.f32 %v4519_v9, %v1233_v43  ;;  %v3367_v58 = vadd.f32 %v3366_v53, %v3365_v32  ;;  %v3473_v4 = vadd.f32 %v3472_v42, %v3471_v10  ;;  %v3368_v7 = vpop.f32.mrb[50].mxu0  ;;  %v3474_v18 = vpop.f32.mrb[50].mxu1 }
 0x1b1   : > { %v4805_v61 = vadd.f32 %v4526_v14, %v1698_v29  ;;  %v1699_v20 = vmul.f32 %v4519_v9, %v1669_v46  ;;  %v3369_v11 = vpop.f32.mrb[51].mxu0  ;;  %v3475_v37 = vpop.f32.mrb[51].mxu1 }
 0x1b2   : > { %5250 = vst [vmem:[#allocation9_spill] sm:$0xff] %v4801_v52  ;;  %v4809_v41 = vadd.f32 %v4526_v14, %v1269_v28  ;;  %v1188_v23 = vadd.f32 %v3367_v58, %v4508_v56  ;;  %v1624_v15 = vadd.f32 %v3473_v4, %v4508_v56  ;;  %v3370_v44 = vadd.f32 %v3369_v11, %v3368_v7 }
 0x1b3   : > { %5251 = vst [vmem:[#allocation10_spill] sm:$0xff] %v4805_v61  ;;  %v4816_v43 = vadd.f32 %v4526_v14, %v1699_v20  ;;  %v3476_v32 = vadd.f32 %v3475_v37, %v3474_v18 }
 0x1b4   : > { %5252 = vst [vmem:[#allocation11_spill] sm:$0xff] %v4809_v41  ;;  %v1234_v10 = vmax.f32 %v1188_v23, 0.0  ;;  %v1670_v29 = vmax.f32 %v1624_v15, 0.0  ;;  %v1191_v46 = vadd.f32 %v3370_v44, %v4508_v56 }
 0x1b5   : > { %5253 = vst [vmem:[#allocation12_spill] sm:$0xff] %v4816_v43  ;;  %v1627_v28 = vadd.f32 %v3476_v32, %v4508_v56 }
 0x1b6   : > { %v1270_v58 = vmul.f32 %v4519_v9, %v1234_v10  ;;  %v1700_v4 = vmul.f32 %v4519_v9, %v1670_v29  ;;  %v1235_v7 = vmax.f32 %v1191_v46, 0.0  ;;  %v3371_v11 = vpop.f32.mrb[52].mxu0  ;;  %v3477_v53 = vpop.f32.mrb[52].mxu1 }
 0x1b7   : > { %v1671_v61 = vmax.f32 %v1627_v28, 0.0  ;;  %v3372_v20 = vpop.f32.mrb[53].mxu0  ;;  %v3478_v52 = vpop.f32.mrb[53].mxu1 }
 0x1b8   : > { %v4825_v37 = vadd.f32 %v4526_v14, %v1270_v58  ;;  %v4828_v44 = vadd.f32 %v4526_v14, %v1700_v4  ;;  %v1271_v18 = vmul.f32 %v4519_v9, %v1235_v7  ;;  %v3373_v23 = vadd.f32 %v3372_v20, %v3371_v11  ;;  %v3374_v15 = vpop.f32.mrb[54].mxu0  ;;  %v3480_v32 = vpop.f32.mrb[54].mxu1 }
 0x1b9   : > { %v1701_v10 = vmul.f32 %v4519_v9, %v1671_v61  ;;  %v3479_v29 = vadd.f32 %v3478_v52, %v3477_v53  ;;  %v3375_v46 = vpop.f32.mrb[55].mxu0  ;;  %v3481_v42 = vpop.f32.mrb[55].mxu1 }
 0x1ba   : > { %5254 = vst [vmem:[#allocation13_spill] sm:$0xff] %v4825_v37  ;;  %5255 = vst [vmem:[#allocation14_spill] sm:$0xff] %v4828_v44  ;;  %v4835_v43 = vadd.f32 %v4526_v14, %v1271_v18  ;;  %v1196_v58 = vadd.f32 %v3373_v23, %v4508_v56  ;;  %v3376_v4 = vadd.f32 %v3375_v46, %v3374_v15 }
 0x1bb   : > { %v4839_v41 = vadd.f32 %v4526_v14, %v1701_v10  ;;  %v1632_v7 = vadd.f32 %v3479_v29, %v4508_v56  ;;  %v3482_v11 = vadd.f32 %v3481_v42, %v3480_v32 }
 0x1bc   : > { %5256 = vst [vmem:[#allocation15_spill] sm:$0xff] %v4835_v43  ;;  %v1236_v20 = vmax.f32 %v1196_v58, 0.0  ;;  %v1199_v52 = vadd.f32 %v3376_v4, %v4508_v56 }
 0x1bd   : > { %5257 = vst [vmem:[#allocation16_spill] sm:$0xff] %v4839_v41  ;;  %v1672_v53 = vmax.f32 %v1632_v7, 0.0  ;;  %v1635_v28 = vadd.f32 %v3482_v11, %v4508_v56 }
 0x1be   : > { %v1272_v18 = vmul.f32 %v4519_v9, %v1236_v20  ;;  %v1237_v44 = vmax.f32 %v1199_v52, 0.0  ;;  %v3377_v23 = vpop.f32.mrb[56].mxu0  ;;  %v3483_v15 = vpop.f32.mrb[56].mxu1 }
 0x1bf   : > { %v1702_v10 = vmul.f32 %v4519_v9, %v1672_v53  ;;  %v1673_v46 = vmax.f32 %v1635_v28, 0.0  ;;  %v3378_v37 = vpop.f32.mrb[57].mxu0  ;;  %v3484_v29 = vpop.f32.mrb[57].mxu1 }
 0x1c0   : > { %v4849_v42 = vadd.f32 %v4526_v14, %v1272_v18  ;;  %v1273_v32 = vmul.f32 %v4519_v9, %v1237_v44  ;;  %v3379_v58 = vadd.f32 %v3378_v37, %v3377_v23  ;;  %v3485_v4 = vadd.f32 %v3484_v29, %v3483_v15  ;;  %v3380_v7 = vpop.f32.mrb[58].mxu0  ;;  %v3486_v61 = vpop.f32.mrb[58].mxu1 }
 0x1c1   : > { %v4853_v11 = vadd.f32 %v4526_v14, %v1702_v10  ;;  %v1703_v20 = vmul.f32 %v4519_v9, %v1673_v46  ;;  %v3381_v52 = vpop.f32.mrb[59].mxu0  ;;  %v3487_v41 = vpop.f32.mrb[59].mxu1 }
 0x1c2   : > { %5258 = vst [vmem:[#allocation17_spill] sm:$0xff] %v4849_v42  ;;  %v4857_v28 = vadd.f32 %v4526_v14, %v1273_v32  ;;  %v1204_v53 = vadd.f32 %v3379_v58, %v4508_v56  ;;  %v1640_v18 = vadd.f32 %v3485_v4, %v4508_v56  ;;  %v3382_v43 = vadd.f32 %v3381_v52, %v3380_v7 }
 0x1c3   : > { %5259 = vst [vmem:[#allocation18_spill] sm:$0xff] %v4853_v11  ;;  %v4864_v44 = vadd.f32 %v4526_v14, %v1703_v20  ;;  %v3488_v23 = vadd.f32 %v3487_v41, %v3486_v61 }
 0x1c4   : > { %5260 = vst [vmem:[#allocation19_spill] sm:$0xff] %v4857_v28  ;;  %v1238_v15 = vmax.f32 %v1204_v53, 0.0  ;;  %v1674_v10 = vmax.f32 %v1640_v18, 0.0  ;;  %v1207_v46 = vadd.f32 %v3382_v43, %v4508_v56 }
 0x1c5   : > { %5261 = vst [vmem:[#allocation20_spill] sm:$0xff] %v4864_v44  ;;  %v1643_v32 = vadd.f32 %v3488_v23, %v4508_v56 }
 0x1c6   : > { %v1274_v58 = vmul.f32 %v4519_v9, %v1238_v15  ;;  %v1704_v4 = vmul.f32 %v4519_v9, %v1674_v10  ;;  %v1239_v7 = vmax.f32 %v1207_v46, 0.0  ;;  %v3505_v52 = vpop.f32.mrb[60].mxu0  ;;  %v3611_v37 = vpop.f32.mrb[60].mxu1 }
 0x1c7   : > { %v1675_v20 = vmax.f32 %v1643_v32, 0.0  ;;  %v3506_v11 = vpop.f32.mrb[61].mxu0  ;;  %v3612_v41 = vpop.f32.mrb[61].mxu1 }
 0x1c8   : > { %v4873_v61 = vadd.f32 %v4526_v14, %v1274_v58  ;;  %v4876_v43 = vadd.f32 %v4526_v14, %v1704_v4  ;;  %v1275_v53 = vmul.f32 %v4519_v9, %v1239_v7  ;;  %v3507_v18 = vadd.f32 %v3506_v11, %v3505_v52  ;;  %v3508_v23 = vpop.f32.mrb[62].mxu0  ;;  %v3614_v15 = vpop.f32.mrb[62].mxu1 }
 0x1c9   : > { %v1705_v10 = vmul.f32 %v4519_v9, %v1675_v20  ;;  %v3613_v29 = vadd.f32 %v3612_v41, %v3611_v37  ;;  %v3509_v46 = vpop.f32.mrb[63].mxu0  ;;  %v3615_v32 = vpop.f32.mrb[63].mxu1 }
 0x1ca   : > { %5262 = vst [vmem:[#allocation21_spill] sm:$0xff] %v4873_v61  ;;  %5263 = vst [vmem:[#allocation22_spill] sm:$0xff] %v4876_v43  ;;  %v4887_v4 = vadd.f32 %v4526_v14, %v1275_v53  ;;  %v1982_v7 = vadd.f32 %v3507_v18, %v4508_v56  ;;  %v3510_v11 = vadd.f32 %v3509_v46, %v3508_v23 }
 0x1cb   : > { %v4891_v52 = vadd.f32 %v4526_v14, %v1705_v10  ;;  %v2406_v37 = vadd.f32 %v3613_v29, %v4508_v56  ;;  %v3616_v20 = vadd.f32 %v3615_v32, %v3614_v15 }
 0x1cc   : > { %5264 = vst [vmem:[#allocation23_spill] sm:$0xff] %v4887_v4  ;;  %v2100_v41 = vmax.f32 %v1982_v7, 0.0  ;;  %v1985_v44 = vadd.f32 %v3510_v11, %v4508_v56 }
 0x1cd   : > { %5265 = vst [vmem:[#allocation24_spill] sm:$0xff] %v4891_v52  ;;  %v2524_v42 = vmax.f32 %v2406_v37, 0.0  ;;  %v2409_v53 = vadd.f32 %v3616_v20, %v4508_v56 }
 0x1ce   : > { %v2130_v18 = vmul.f32 %v4519_v9, %v2100_v41  ;;  %v2101_v23 = vmax.f32 %v1985_v44, 0.0  ;;  %v3511_v10 = vpop.f32.mrb[64].mxu0  ;;  %v3617_v46 = vpop.f32.mrb[64].mxu1 }
 0x1cf   : > { %v2554_v29 = vmul.f32 %v4519_v9, %v2524_v42  ;;  %v2525_v15 = vmax.f32 %v2409_v53, 0.0  ;;  %v3512_v32 = vpop.f32.mrb[65].mxu0  ;;  %v3618_v7 = vpop.f32.mrb[65].mxu1 }
 0x1d0   : > { %v2160_v11 = vadd.f32 %v4526_v14, %v2130_v18  ;;  %v2131_v28 = vmul.f32 %v4519_v9, %v2101_v23  ;;  %v3513_v37 = vadd.f32 %v3512_v32, %v3511_v10  ;;  %v3619_v58 = vadd.f32 %v3618_v7, %v3617_v46  ;;  %v3514_v52 = vpop.f32.mrb[66].mxu0  ;;  %v3620_v20 = vpop.f32.mrb[66].mxu1  ;;  %v4915_v23 = vld [vmem:[%s5218_s2] ss:$0 sm:$0xff] }
 0x1d1   : > { %v2584_v4 = vadd.f32 %v4526_v14, %v2554_v29  ;;  %v2555_v44 = vmul.f32 %v4519_v9, %v2525_v15  ;;  %v3515_v42 = vpop.f32.mrb[67].mxu0  ;;  %v3621_v41 = vpop.f32.mrb[67].mxu1 }
 0x1d2   : > { %v2161_v53 = vadd.f32 %v4526_v14, %v2131_v28  ;;  %v1990_v18 = vadd.f32 %v3513_v37, %v4508_v56  ;;  %v2414_v10 = vadd.f32 %v4915_v23, %v3619_v58  ;;  %v3516_v46 = vadd.f32 %v3515_v42, %v3514_v52 }
 0x1d3   : > { %v2614_v29 = vmax.f32 %v2160_v11, %v2584_v4  ;;  %v2585_v32 = vadd.f32 %v4526_v14, %v2555_v44  ;;  %v3622_v7 = vadd.f32 %v3621_v41, %v3620_v20  ;;  %v5266_v28 = vmax.f32 %v4533_v25, %v4536_v26 }
 0x1d4   : > { %v2102_v43 = vmax.f32 %v1990_v18, 0.0  ;;  %v2526_v15 = vmax.f32 %v2414_v10, 0.0  ;;  %v1993_v61 = vadd.f32 %v4915_v23, %v3516_v46  ;;  %v5267_v20 = vmax.f32 %v4545_v38, %v4548_v39 }
 0x1d5   : > { %v2644_v56 = vmax.f32 %v5266_v28, %v2614_v29  ;;  %v2615_v37 = vmax.f32 %v2161_v53, %v2585_v32  ;;  %v2417_v33 = vadd.f32 %v4915_v23, %v3622_v7 }
 0x1d6   : > { %v2132_v55 = vmul.f32 %v4519_v9, %v2102_v43  ;;  %v2556_v58 = vmul.f32 %v4519_v9, %v2526_v15  ;;  %v2103_v4 = vmax.f32 %v1993_v61, 0.0  ;;  %v3517_v52 = vpop.f32.mrb[68].mxu0  ;;  %v3623_v11 = vpop.f32.mrb[68].mxu1  ;;  %v4940_v9 = vld [vmem:[%s5219_s3] ss:$0 sm:$0xff] }
 0x1d7   : > { %v2645_v44 = vmax.f32 %v5267_v20, %v2615_v37  ;;  %v2527_v42 = vmax.f32 %v2417_v33, 0.0  ;;  %v3518_v41 = vpop.f32.mrb[69].mxu0  ;;  %v3624_v18 = vpop.f32.mrb[69].mxu1 }
 0x1d8   : > { %v2162_v25 = vadd.f32 %v4526_v14, %v2132_v55  ;;  %v2586_v26 = vadd.f32 %v4526_v14, %v2556_v58  ;;  %v2133_v38 = vmul.f32 %v4940_v9, %v2103_v4  ;;  %v3519_v39 = vadd.f32 %v3518_v41, %v3517_v52  ;;  %v3520_v33 = vpop.f32.mrb[70].mxu0  ;;  %v3626_v61 = vpop.f32.mrb[70].mxu1  ;;  %v4947_v14 = vld [vmem:[%s5220_s4] ss:$0 sm:$0xff] }
 0x1d9   : > { %v3190_v43 = vpack.c.bf16 %v2645_v44, %v2644_v56  ;;  %v2557_v53 = vmul.f32 %v4940_v9, %v2527_v42  ;;  %v3625_v10 = vadd.f32 %v3624_v18, %v3623_v11  ;;  %v3521_v46 = vpop.f32.mrb[71].mxu0  ;;  %v3627_v29 = vpop.f32.mrb[71].mxu1  ;;  %v5268_v58 = vmax.f32 %v4562_v1, %v4565_v2 }
 0x1da   : > { %v2616_v55 = vmax.f32 %v2162_v25, %v2586_v26  ;;  %v2163_v32 = vadd.f32 %v4947_v14, %v2133_v38  ;;  %v1998_v7 = vadd.f32 %v4915_v23, %v3519_v39  ;;  %v3522_v15 = vadd.f32 %v3521_v46, %v3520_v33 }
 0x1db   : > { %3191 = vst [vmem:[%s4933_s13] sm:$0xff] %v3190_v43   ;;  %v2587_v28 = vadd.f32 %v4947_v14, %v2557_v53  ;;  %v2422_v56 = vadd.f32 %v4915_v23, %v3625_v10  ;;  %v3628_v37 = vadd.f32 %v3627_v29, %v3626_v61  ;;  %v5269_v38 = vmax.f32 %v4569_v6, %v4576_v12 }
 0x1dc   : > { %v2646_v4 = vmax.f32 %v5268_v58, %v2616_v55  ;;  %v2104_v52 = vmax.f32 %v1998_v7, 0.0  ;;  %v2001_v11 = vadd.f32 %v4915_v23, %v3522_v15 }
 0x1dd   : > { %v2617_v20 = vmax.f32 %v2163_v32, %v2587_v28  ;;  %v2528_v44 = vmax.f32 %v2422_v56, 0.0  ;;  %v2425_v42 = vadd.f32 %v4915_v23, %v3628_v37 }
 0x1de   : > { %v2134_v41 = vmul.f32 %v4940_v9, %v2104_v52  ;;  %v2105_v18 = vmax.f32 %v2001_v11, 0.0  ;;  %v3523_v25 = vpop.f32.mrb[72].mxu0  ;;  %v3629_v26 = vpop.f32.mrb[72].mxu1 }
 0x1df   : > { %v2647_v39 = vmax.f32 %v5269_v38, %v2617_v20  ;;  %v2558_v33 = vmul.f32 %v4940_v9, %v2528_v44  ;;  %v2529_v1 = vmax.f32 %v2425_v42, 0.0  ;;  %v3524_v2 = vpop.f32.mrb[73].mxu0  ;;  %v3630_v61 = vpop.f32.mrb[73].mxu1 }
 0x1e0   : > { %v2164_v43 = vadd.f32 %v4947_v14, %v2134_v41  ;;  %v2135_v53 = vmul.f32 %v4940_v9, %v2105_v18  ;;  %v3525_v10 = vadd.f32 %v3524_v2, %v3523_v25  ;;  %v3631_v46 = vadd.f32 %v3630_v61, %v3629_v26  ;;  %v3526_v29 = vpop.f32.mrb[74].mxu0  ;;  %v3632_v55 = vpop.f32.mrb[74].mxu1 }
 0x1e1   : > { %v3195_v32 = vpack.c.bf16 %v2647_v39, %v2646_v4  ;;  %v2588_v7 = vadd.f32 %v4947_v14, %v2558_v33  ;;  %v2559_v6 = vmul.f32 %v4940_v9, %v2529_v1  ;;  %v3527_v12 = vpop.f32.mrb[75].mxu0  ;;  %v3633_v15 = vpop.f32.mrb[75].mxu1  ;;  %v5270_v41 = vmax.f32 %v4585_v30, %v4588_v31 }
 0x1e2   : > { %v2165_v28 = vadd.f32 %v4947_v14, %v2135_v53  ;;  %v2006_v56 = vadd.f32 %v4915_v23, %v3525_v10  ;;  %v2430_v37 = vadd.f32 %v4915_v23, %v3631_v46  ;;  %v3528_v58 = vadd.f32 %v3527_v12, %v3526_v29 }
 0x1e3   : > { %3263 = vst [vmem:[%s4933_s13 + $0x8] sm:$0xff] %v3195_v32   ;;  %v2618_v52 = vmax.f32 %v2164_v43, %v2588_v7  ;;  %v2589_v11 = vadd.f32 %v4947_v14, %v2559_v6  ;;  %v3634_v20 = vadd.f32 %v3633_v15, %v3632_v55  ;;  %v5271_v61 = vmax.f32 %v4595_v45, %v4599_v48 }
 0x1e4   : > { %v2106_v44 = vmax.f32 %v2006_v56, 0.0  ;;  %v2530_v4 = vmax.f32 %v2430_v37, 0.0  ;;  %v2009_v42 = vadd.f32 %v4915_v23, %v3528_v58 }
 0x1e5   : > { %v2648_v18 = vmax.f32 %v5270_v41, %v2618_v52  ;;  %v2619_v25 = vmax.f32 %v2165_v28, %v2589_v11  ;;  %v2433_v26 = vadd.f32 %v4915_v23, %v3634_v20 }
 0x1e6   : > { %v2136_v38 = vmul.f32 %v4940_v9, %v2106_v44  ;;  %v2560_v39 = vmul.f32 %v4940_v9, %v2530_v4  ;;  %v2107_v33 = vmax.f32 %v2009_v42, 0.0  ;;  %v3529_v1 = vpop.f32.mrb[76].mxu0  ;;  %v3635_v2 = vpop.f32.mrb[76].mxu1  ;;  %v5272_v44 = vmax.f32 %v4609_v3, %v4613_v13 }
 0x1e7   : > { %v2649_v43 = vmax.f32 %v5271_v61, %v2619_v25  ;;  %v2531_v53 = vmax.f32 %v2433_v26, 0.0  ;;  %v3530_v10 = vpop.f32.mrb[77].mxu0  ;;  %v3636_v46 = vpop.f32.mrb[77].mxu1 }
 0x1e8   : > { %v2166_v30 = vadd.f32 %v4947_v14, %v2136_v38  ;;  %v2590_v31 = vadd.f32 %v4947_v14, %v2560_v39  ;;  %v2137_v29 = vmul.f32 %v4940_v9, %v2107_v33  ;;  %v3531_v55 = vadd.f32 %v3530_v10, %v3529_v1  ;;  %v3532_v32 = vpop.f32.mrb[78].mxu0  ;;  %v3638_v7 = vpop.f32.mrb[78].mxu1 }
 0x1e9   : > { %v3200_v6 = vpack.c.bf16 %v2649_v43, %v2648_v18  ;;  %v2561_v12 = vmul.f32 %v4940_v9, %v2531_v53  ;;  %v3637_v15 = vadd.f32 %v3636_v46, %v3635_v2  ;;  %v3533_v28 = vpop.f32.mrb[79].mxu0  ;;  %v3639_v45 = vpop.f32.mrb[79].mxu1  ;;  %v5273_v2 = vmax.f32 %v4617_v19, %v4624_v24 }
 0x1ea   : > { %v2620_v48 = vmax.f32 %v2166_v30, %v2590_v31  ;;  %v2167_v56 = vadd.f32 %v4947_v14, %v2137_v29  ;;  %v2014_v37 = vadd.f32 %v4915_v23, %v3531_v55  ;;  %v3534_v58 = vadd.f32 %v3533_v28, %v3532_v32 }
 0x1eb   : > { %3264 = vst [vmem:[%s4933_s13 + $0x10] sm:$0xff] %v3200_v6   ;;  %v2591_v52 = vadd.f32 %v4947_v14, %v2561_v12  ;;  %v2438_v11 = vadd.f32 %v4915_v23, %v3637_v15  ;;  %v3640_v20 = vadd.f32 %v3639_v45, %v3638_v7 }
 0x1ec   : > { %v2650_v4 = vmax.f32 %v5272_v44, %v2620_v48  ;;  %v2108_v42 = vmax.f32 %v2014_v37, 0.0  ;;  %v2017_v41 = vadd.f32 %v4915_v23, %v3534_v58 }
 0x1ed   : > { %v2621_v18 = vmax.f32 %v2167_v56, %v2591_v52  ;;  %v2532_v25 = vmax.f32 %v2438_v11, 0.0  ;;  %v2441_v26 = vadd.f32 %v4915_v23, %v3640_v20  ;;  %v5274_v20 = vmax.f32 %v4633_v50, %v4636_v51 }
 0x1ee   : > { %v2138_v38 = vmul.f32 %v4940_v9, %v2108_v42  ;;  %v2109_v39 = vmax.f32 %v2017_v41, 0.0  ;;  %v3535_v33 = vpop.f32.mrb[80].mxu0  ;;  %v3641_v1 = vpop.f32.mrb[80].mxu1 }
 0x1ef   : > { %v2651_v61 = vmax.f32 %v5273_v2, %v2621_v18  ;;  %v2562_v43 = vmul.f32 %v4940_v9, %v2532_v25  ;;  %v2533_v3 = vmax.f32 %v2441_v26, 0.0  ;;  %v3536_v13 = vpop.f32.mrb[81].mxu0  ;;  %v3642_v53 = vpop.f32.mrb[81].mxu1 }
 0x1f0   : > { %v2168_v10 = vadd.f32 %v4947_v14, %v2138_v38  ;;  %v2139_v46 = vmul.f32 %v4940_v9, %v2109_v39  ;;  %v3537_v30 = vadd.f32 %v3536_v13, %v3535_v33  ;;  %v3643_v31 = vadd.f32 %v3642_v53, %v3641_v1  ;;  %v3538_v29 = vpop.f32.mrb[82].mxu0  ;;  %v3644_v55 = vpop.f32.mrb[82].mxu1 }
 0x1f1   : > { %v3205_v32 = vpack.c.bf16 %v2651_v61, %v2650_v4  ;;  %v2592_v7 = vadd.f32 %v4947_v14, %v2562_v43  ;;  %v2563_v19 = vmul.f32 %v4940_v9, %v2533_v3  ;;  %v3539_v24 = vpop.f32.mrb[83].mxu0  ;;  %v3645_v6 = vpop.f32.mrb[83].mxu1  ;;  %v5275_v39 = vmax.f32 %v4643_v63, %v4647_v5 }
 0x1f2   : > { %v2169_v12 = vadd.f32 %v4947_v14, %v2139_v46  ;;  %v2022_v15 = vadd.f32 %v4915_v23, %v3537_v30  ;;  %v2446_v28 = vadd.f32 %v4915_v23, %v3643_v31  ;;  %v3540_v45 = vadd.f32 %v3539_v24, %v3538_v29 }
 0x1f3   : > { %3265 = vst [vmem:[%s4933_s13 + $0x18] sm:$0xff] %v3205_v32   ;;  %v2622_v48 = vmax.f32 %v2168_v10, %v2592_v7  ;;  %v2593_v56 = vadd.f32 %v4947_v14, %v2563_v19  ;;  %v3646_v37 = vadd.f32 %v3645_v6, %v3644_v55  ;;  %v5276_v6 = vmax.f32 %v4657_v36, %v4661_v49 }
 0x1f4   : > { %v2110_v58 = vmax.f32 %v2022_v15, 0.0  ;;  %v2534_v52 = vmax.f32 %v2446_v28, 0.0  ;;  %v2025_v11 = vadd.f32 %v4915_v23, %v3540_v45 }
 0x1f5   : > { %v2652_v44 = vmax.f32 %v5274_v20, %v2622_v48  ;;  %v2623_v4 = vmax.f32 %v2169_v12, %v2593_v56  ;;  %v2449_v42 = vadd.f32 %v4915_v23, %v3646_v37  ;;  %v5277_v20 = vmax.f32 %v4665_v57, %v4672_v0 }
 0x1f6   : > { %v2140_v41 = vmul.f32 %v4940_v9, %v2110_v58  ;;  %v2564_v18 = vmul.f32 %v4940_v9, %v2534_v52  ;;  %v2111_v25 = vmax.f32 %v2025_v11, 0.0  ;;  %v3541_v26 = vpop.f32.mrb[84].mxu0  ;;  %v3647_v38 = vpop.f32.mrb[84].mxu1 }
 0x1f7   : > { %v2653_v33 = vmax.f32 %v5275_v39, %v2623_v4  ;;  %v2535_v1 = vmax.f32 %v2449_v42, 0.0  ;;  %v3542_v2 = vpop.f32.mrb[85].mxu0  ;;  %v3648_v61 = vpop.f32.mrb[85].mxu1 }
 0x1f8   : > { %v2170_v50 = vadd.f32 %v4947_v14, %v2140_v41  ;;  %v2594_v51 = vadd.f32 %v4947_v14, %v2564_v18  ;;  %v2141_v43 = vmul.f32 %v4940_v9, %v2111_v25  ;;  %v3543_v3 = vadd.f32 %v3542_v2, %v3541_v26  ;;  %v3544_v13 = vpop.f32.mrb[86].mxu0  ;;  %v3650_v53 = vpop.f32.mrb[86].mxu1 }
 0x1f9   : > { %v3210_v10 = vpack.c.bf16 %v2653_v33, %v2652_v44  ;;  %v2565_v46 = vmul.f32 %v4940_v9, %v2535_v1  ;;  %v3649_v30 = vadd.f32 %v3648_v61, %v3647_v38  ;;  %v3545_v31 = vpop.f32.mrb[87].mxu0  ;;  %v3651_v63 = vpop.f32.mrb[87].mxu1 }
 0x1fa   : > { %v2624_v5 = vmax.f32 %v2170_v50, %v2594_v51  ;;  %v2171_v29 = vadd.f32 %v4947_v14, %v2141_v43  ;;  %v2030_v55 = vadd.f32 %v4915_v23, %v3543_v3  ;;  %v3546_v32 = vadd.f32 %v3545_v31, %v3544_v13 }
 0x1fb   : > { %3266 = vst [vmem:[%s4933_s13 + $0x20] sm:$0xff] %v3210_v10   ;;  %v2595_v7 = vadd.f32 %v4947_v14, %v2565_v46  ;;  %v2454_v19 = vadd.f32 %v4915_v23, %v3649_v30  ;;  %v3652_v24 = vadd.f32 %v3651_v63, %v3650_v53  ;;  %v5278_v31 = vmax.f32 %v4681_v35, %v4684_v40 }
 0x1fc   : > { %v2654_v12 = vmax.f32 %v5276_v6, %v2624_v5  ;;  %v2112_v15 = vmax.f32 %v2030_v55, 0.0  ;;  %v2033_v28 = vadd.f32 %v4915_v23, %v3546_v32  ;;  %v5279_v6 = vmax.f32 %v4691_v60, %v4695_v8 }
 0x1fd   : > { %v2625_v45 = vmax.f32 %v2171_v29, %v2595_v7  ;;  %v2536_v48 = vmax.f32 %v2454_v19, 0.0  ;;  %v2457_v56 = vadd.f32 %v4915_v23, %v3652_v24 }
 0x1fe   : > { %v2142_v37 = vmul.f32 %v4940_v9, %v2112_v15  ;;  %v2113_v58 = vmax.f32 %v2033_v28, 0.0  ;;  %v3547_v52 = vpop.f32.mrb[88].mxu0  ;;  %v3653_v11 = vpop.f32.mrb[88].mxu1 }
 0x1ff   : > { %v2655_v44 = vmax.f32 %v5277_v20, %v2625_v45  ;;  %v2566_v4 = vmul.f32 %v4940_v9, %v2536_v48  ;;  %v2537_v36 = vmax.f32 %v2457_v56, 0.0  ;;  %v3548_v49 = vpop.f32.mrb[89].mxu0  ;;  %v3654_v42 = vpop.f32.mrb[89].mxu1 }
 0x200   : > { %v2172_v41 = vadd.f32 %v4947_v14, %v2142_v37  ;;  %v2143_v18 = vmul.f32 %v4940_v9, %v2113_v58  ;;  %v3549_v25 = vadd.f32 %v3548_v49, %v3547_v52  ;;  %v3655_v26 = vadd.f32 %v3654_v42, %v3653_v11  ;;  %v3550_v38 = vpop.f32.mrb[90].mxu0  ;;  %v3656_v39 = vpop.f32.mrb[90].mxu1 }
 0x201   : > { %v3215_v33 = vpack.c.bf16 %v2655_v44, %v2654_v12  ;;  %v2596_v1 = vadd.f32 %v4947_v14, %v2566_v4  ;;  %v2567_v57 = vmul.f32 %v4940_v9, %v2537_v36  ;;  %v3551_v0 = vpop.f32.mrb[91].mxu0  ;;  %v3657_v2 = vpop.f32.mrb[91].mxu1 }
 0x202   : > { %v2173_v61 = vadd.f32 %v4947_v14, %v2143_v18  ;;  %v2038_v50 = vadd.f32 %v4915_v23, %v3549_v25  ;;  %v2462_v51 = vadd.f32 %v4915_v23, %v3655_v26  ;;  %v3552_v43 = vadd.f32 %v3551_v0, %v3550_v38 }
 0x203   : > { %3267 = vst [vmem:[%s4933_s13 + $0x28] sm:$0xff] %v3215_v33   ;;  %v2626_v3 = vmax.f32 %v2172_v41, %v2596_v1  ;;  %v2597_v13 = vadd.f32 %v4947_v14, %v2567_v57  ;;  %v3658_v53 = vadd.f32 %v3657_v2, %v3656_v39  ;;  %v5280_v25 = vmax.f32 %v4705_v47, %v4709_v17 }
 0x204   : > { %v2114_v10 = vmax.f32 %v2038_v50, 0.0  ;;  %v2538_v46 = vmax.f32 %v2462_v51, 0.0  ;;  %v2041_v30 = vadd.f32 %v4915_v23, %v3552_v43  ;;  %v5281_v51 = vmax.f32 %v4713_v27, %v4720_v34 }
 0x205   : > { %v2656_v63 = vmax.f32 %v5278_v31, %v2626_v3  ;;  %v2627_v5 = vmax.f32 %v2173_v61, %v2597_v13  ;;  %v2465_v29 = vadd.f32 %v4915_v23, %v3658_v53 }
 0x206   : > { %v2144_v55 = vmul.f32 %v4940_v9, %v2114_v10  ;;  %v2568_v32 = vmul.f32 %v4940_v9, %v2538_v46  ;;  %v2115_v7 = vmax.f32 %v2041_v30, 0.0  ;;  %v3553_v19 = vpop.f32.mrb[92].mxu0  ;;  %v3659_v24 = vpop.f32.mrb[92].mxu1 }
 0x207   : > { %v2657_v12 = vmax.f32 %v5279_v6, %v2627_v5  ;;  %v2539_v15 = vmax.f32 %v2465_v29, 0.0  ;;  %v3554_v28 = vpop.f32.mrb[93].mxu0  ;;  %v3660_v45 = vpop.f32.mrb[93].mxu1 }
 0x208   : > { %v2174_v35 = vadd.f32 %v4947_v14, %v2144_v55  ;;  %v2598_v40 = vadd.f32 %v4947_v14, %v2568_v32  ;;  %v2145_v48 = vmul.f32 %v4940_v9, %v2115_v7  ;;  %v3555_v56 = vadd.f32 %v3554_v28, %v3553_v19  ;;  %v3556_v37 = vpop.f32.mrb[94].mxu0  ;;  %v3662_v58 = vpop.f32.mrb[94].mxu1 }
 0x209   : > { %v3220_v52 = vpack.c.bf16 %v2657_v12, %v2656_v63  ;;  %v2569_v11 = vmul.f32 %v4940_v9, %v2539_v15  ;;  %v3661_v20 = vadd.f32 %v3660_v45, %v3659_v24  ;;  %v3557_v44 = vpop.f32.mrb[95].mxu0  ;;  %v3663_v60 = vpop.f32.mrb[95].mxu1 }
 0x20a   : > { %v2628_v8 = vmax.f32 %v2174_v35, %v2598_v40  ;;  %v2175_v4 = vadd.f32 %v4947_v14, %v2145_v48  ;;  %v2046_v36 = vadd.f32 %v4915_v23, %v3555_v56  ;;  %v3558_v49 = vadd.f32 %v3557_v44, %v3556_v37 }
 0x20b   : > { %3268 = vst [vmem:[%s4933_s13 + $0x30] sm:$0xff] %v3220_v52   ;;  %v2599_v42 = vadd.f32 %v4947_v14, %v2569_v11  ;;  %v2470_v41 = vadd.f32 %v4915_v23, %v3661_v20  ;;  %v3664_v18 = vadd.f32 %v3663_v60, %v3662_v58  ;;  %v5282_v40 = vmax.f32 %v4729_v22, %v4732_v59 }
 0x20c   : > { %v2658_v26 = vmax.f32 %v5280_v25, %v2628_v8  ;;  %v2116_v38 = vmax.f32 %v2046_v36, 0.0  ;;  %v2049_v39 = vadd.f32 %v4915_v23, %v3558_v49  ;;  %v5283_v60 = vmax.f32 %v4739_v16, %v4743_v62 }
 0x20d   : > { %v2629_v33 = vmax.f32 %v2175_v4, %v2599_v42  ;;  %v2540_v1 = vmax.f32 %v2470_v41, 0.0  ;;  %v2473_v57 = vadd.f32 %v4915_v23, %v3664_v18 }
 0x20e   : > { %v2146_v0 = vmul.f32 %v4940_v9, %v2116_v38  ;;  %v2117_v2 = vmax.f32 %v2049_v39, 0.0  ;;  %v3559_v61 = vpop.f32.mrb[96].mxu0  ;;  %v3665_v50 = vpop.f32.mrb[96].mxu1 }
 0x20f   : > { %v2659_v43 = vmax.f32 %v5281_v51, %v2629_v33  ;;  %v2570_v3 = vmul.f32 %v4940_v9, %v2540_v1  ;;  %v2541_v47 = vmax.f32 %v2473_v57, 0.0  ;;  %v3560_v17 = vpop.f32.mrb[97].mxu0  ;;  %v3666_v13 = vpop.f32.mrb[97].mxu1  ;;  %v5284_v51 = vmax.f32 %v4753_v54, %v4757_v21 }
 0x210   : > { %v2176_v53 = vadd.f32 %v4947_v14, %v2146_v0  ;;  %v2147_v10 = vmul.f32 %v4940_v9, %v2117_v2  ;;  %v3561_v46 = vadd.f32 %v3560_v17, %v3559_v61  ;;  %v3667_v30 = vadd.f32 %v3666_v13, %v3665_v50  ;;  %v3562_v31 = vpop.f32.mrb[98].mxu0  ;;  %v3668_v63 = vpop.f32.mrb[98].mxu1 }
 0x211   : > { %v3225_v5 = vpack.c.bf16 %v2659_v43, %v2658_v26  ;;  %v2600_v29 = vadd.f32 %v4947_v14, %v2570_v3  ;;  %v2571_v27 = vmul.f32 %v4940_v9, %v2541_v47  ;;  %v3563_v34 = vpop.f32.mrb[99].mxu0  ;;  %v3669_v55 = vpop.f32.mrb[99].mxu1 }
 0x212   : > { %v2177_v32 = vadd.f32 %v4947_v14, %v2147_v10  ;;  %v2054_v7 = vadd.f32 %v4915_v23, %v3561_v46  ;;  %v2478_v19 = vadd.f32 %v4915_v23, %v3667_v30  ;;  %v3564_v24 = vadd.f32 %v3563_v34, %v3562_v31 }
 0x213   : > { %3269 = vst [vmem:[%s4933_s13 + $0x38] sm:$0xff] %v3225_v5   ;;  %v2630_v6 = vmax.f32 %v2176_v53, %v2600_v29  ;;  %v2601_v12 = vadd.f32 %v4947_v14, %v2571_v27  ;;  %v3670_v15 = vadd.f32 %v3669_v55, %v3668_v63  ;;  %v5285_v63 = vld [vmem:[#allocation3_spill] sm:$0xff]  ;;  %v5286_v5 = vld [vmem:[#allocation4_spill] sm:$0xff] }
 0x214   : > { %v2118_v28 = vmax.f32 %v2054_v7, 0.0  ;;  %v2542_v45 = vmax.f32 %v2478_v19, 0.0  ;;  %v2057_v35 = vadd.f32 %v4915_v23, %v3564_v24  ;;  %v5287_v29 = vmax.f32 %v5285_v63, %v5286_v5 }
 0x215   : > { %v2660_v48 = vmax.f32 %v5282_v40, %v2630_v6  ;;  %v2631_v56 = vmax.f32 %v2177_v32, %v2601_v12  ;;  %v2481_v37 = vadd.f32 %v4915_v23, %v3670_v15 }
 0x216   : > { %v2148_v58 = vmul.f32 %v4940_v9, %v2118_v28  ;;  %v2572_v52 = vmul.f32 %v4940_v9, %v2542_v45  ;;  %v2119_v11 = vmax.f32 %v2057_v35, 0.0  ;;  %v3565_v20 = vpop.f32.mrb[100].mxu0  ;;  %v3671_v44 = vpop.f32.mrb[100].mxu1 }
 0x217   : > { %v2661_v8 = vmax.f32 %v5283_v60, %v2631_v56  ;;  %v2543_v4 = vmax.f32 %v2481_v37, 0.0  ;;  %v3566_v36 = vpop.f32.mrb[101].mxu0  ;;  %v3672_v49 = vpop.f32.mrb[101].mxu1 }
 0x218   : > { %v2178_v22 = vadd.f32 %v4947_v14, %v2148_v58  ;;  %v2602_v59 = vadd.f32 %v4947_v14, %v2572_v52  ;;  %v2149_v42 = vmul.f32 %v4940_v9, %v2119_v11  ;;  %v3567_v41 = vadd.f32 %v3566_v36, %v3565_v20  ;;  %v3568_v18 = vpop.f32.mrb[102].mxu0  ;;  %v3674_v25 = vpop.f32.mrb[102].mxu1  ;;  %v5289_v36 = vld [vmem:[#allocation6_spill] sm:$0xff] }
 0x219   : > { %v3230_v26 = vpack.c.bf16 %v2661_v8, %v2660_v48  ;;  %v2573_v38 = vmul.f32 %v4940_v9, %v2543_v4  ;;  %v3673_v39 = vadd.f32 %v3672_v49, %v3671_v44  ;;  %v3569_v33 = vpop.f32.mrb[103].mxu0  ;;  %v3675_v62 = vpop.f32.mrb[103].mxu1  ;;  %v5288_v4 = vld [vmem:[#allocation5_spill] sm:$0xff] }
 0x21a   : > { %v2632_v16 = vmax.f32 %v2178_v22, %v2602_v59  ;;  %v2179_v1 = vadd.f32 %v4947_v14, %v2149_v42  ;;  %v2062_v57 = vadd.f32 %v4915_v23, %v3567_v41  ;;  %v3570_v0 = vadd.f32 %v3569_v33, %v3568_v18  ;;  %v5292_v33 = vld [vmem:[#allocation8_spill] sm:$0xff] }
 0x21b   : > { %3270 = vst [vmem:[%s4933_s13 + $0x40] sm:$0xff] %v3230_v26   ;;  %v2603_v2 = vadd.f32 %v4947_v14, %v2573_v38  ;;  %v2486_v61 = vadd.f32 %v4915_v23, %v3673_v39  ;;  %v3676_v50 = vadd.f32 %v3675_v62, %v3674_v25  ;;  %v5290_v49 = vmax.f32 %v5288_v4, %v5289_v36  ;;  %v5291_v39 = vld [vmem:[#allocation7_spill] sm:$0xff] }
 0x21c   : > { %v2662_v43 = vmax.f32 %v5284_v51, %v2632_v16  ;;  %v2120_v3 = vmax.f32 %v2062_v57, 0.0  ;;  %v2065_v47 = vadd.f32 %v4915_v23, %v3570_v0  ;;  %v5293_v62 = vmax.f32 %v5291_v39, %v5292_v33 }
 0x21d   : > { %v2633_v17 = vmax.f32 %v2179_v1, %v2603_v2  ;;  %v2544_v13 = vmax.f32 %v2486_v61, 0.0  ;;  %v2489_v53 = vadd.f32 %v4915_v23, %v3676_v50 }
 0x21e   : > { %v2150_v10 = vmul.f32 %v4940_v9, %v2120_v3  ;;  %v2121_v46 = vmax.f32 %v2065_v47, 0.0  ;;  %v3571_v30 = vpop.f32.mrb[104].mxu0  ;;  %v3677_v31 = vpop.f32.mrb[104].mxu1 }
 0x21f   : > { %v2663_v27 = vmax.f32 %v5287_v29, %v2633_v17  ;;  %v2574_v34 = vmul.f32 %v4940_v9, %v2544_v13  ;;  %v2545_v54 = vmax.f32 %v2489_v53, 0.0  ;;  %v3572_v21 = vpop.f32.mrb[105].mxu0  ;;  %v3678_v55 = vpop.f32.mrb[105].mxu1 }
 0x220   : > { %v2180_v32 = vadd.f32 %v4947_v14, %v2150_v10  ;;  %v2151_v7 = vmul.f32 %v4940_v9, %v2121_v46  ;;  %v3573_v19 = vadd.f32 %v3572_v21, %v3571_v30  ;;  %v3679_v24 = vadd.f32 %v3678_v55, %v3677_v31  ;;  %v3574_v6 = vpop.f32.mrb[106].mxu0  ;;  %v3680_v12 = vpop.f32.mrb[106].mxu1 }
 0x221   : > { %v3235_v15 = vpack.c.bf16 %v2663_v27, %v2662_v43  ;;  %v2604_v28 = vadd.f32 %v4947_v14, %v2574_v34  ;;  %v2575_v45 = vmul.f32 %v4940_v9, %v2545_v54  ;;  %v3575_v35 = vpop.f32.mrb[107].mxu0  ;;  %v3681_v40 = vpop.f32.mrb[107].mxu1  ;;  %v5294_v34 = vld [vmem:[#allocation9_spill] sm:$0xff]  ;;  %v5295_v54 = vld [vmem:[#allocation10_spill] sm:$0xff] }
 0x222   : > { %v2181_v48 = vadd.f32 %v4947_v14, %v2151_v7  ;;  %v2070_v56 = vadd.f32 %v4915_v23, %v3573_v19  ;;  %v2494_v37 = vadd.f32 %v4915_v23, %v3679_v24  ;;  %v3576_v58 = vadd.f32 %v3575_v35, %v3574_v6  ;;  %v5297_v35 = vld [vmem:[#allocation11_spill] sm:$0xff] }
 0x223   : > { %3271 = vst [vmem:[%s4933_s13 + $0x48] sm:$0xff] %v3235_v15   ;;  %v2634_v52 = vmax.f32 %v2180_v32, %v2604_v28  ;;  %v2605_v11 = vadd.f32 %v4947_v14, %v2575_v45  ;;  %v3682_v20 = vadd.f32 %v3681_v40, %v3680_v12  ;;  %v5296_v21 = vmax.f32 %v5294_v34, %v5295_v54  ;;  %v5298_v40 = vld [vmem:[#allocation12_spill] sm:$0xff] }
 0x224   : > { %v2122_v44 = vmax.f32 %v2070_v56, 0.0  ;;  %v2546_v60 = vmax.f32 %v2494_v37, 0.0  ;;  %v2073_v8 = vadd.f32 %v4915_v23, %v3576_v58 }
 0x225   : > { %v2664_v22 = vmax.f32 %v5290_v49, %v2634_v52  ;;  %v2635_v59 = vmax.f32 %v2181_v48, %v2605_v11  ;;  %v2497_v42 = vadd.f32 %v4915_v23, %v3682_v20  ;;  %v5299_v48 = vmax.f32 %v5297_v35, %v5298_v40 }
 0x226   : > { %v2152_v41 = vmul.f32 %v4940_v9, %v2122_v44  ;;  %v2576_v18 = vmul.f32 %v4940_v9, %v2546_v60  ;;  %v2123_v25 = vmax.f32 %v2073_v8, 0.0  ;;  %v3577_v26 = vpop.f32.mrb[108].mxu0  ;;  %v3683_v38 = vpop.f32.mrb[108].mxu1 }
 0x227   : > { %v2665_v16 = vmax.f32 %v5293_v62, %v2635_v59  ;;  %v2547_v1 = vmax.f32 %v2497_v42, 0.0  ;;  %v3578_v57 = vpop.f32.mrb[109].mxu0  ;;  %v3684_v0 = vpop.f32.mrb[109].mxu1 }
 0x228   : > { %v2182_v2 = vadd.f32 %v4947_v14, %v2152_v41  ;;  %v2606_v61 = vadd.f32 %v4947_v14, %v2576_v18  ;;  %v2153_v50 = vmul.f32 %v4940_v9, %v2123_v25  ;;  %v3579_v51 = vadd.f32 %v3578_v57, %v3577_v26  ;;  %v3580_v43 = vpop.f32.mrb[110].mxu0  ;;  %v3686_v3 = vpop.f32.mrb[110].mxu1 }
 0x229   : > { %v3240_v47 = vpack.c.bf16 %v2665_v16, %v2664_v22  ;;  %v2577_v17 = vmul.f32 %v4940_v9, %v2547_v1  ;;  %v3685_v13 = vadd.f32 %v3684_v0, %v3683_v38  ;;  %v3581_v53 = vpop.f32.mrb[111].mxu0  ;;  %v3687_v10 = vpop.f32.mrb[111].mxu1  ;;  %v5300_v0 = vld [vmem:[#allocation13_spill] sm:$0xff] }
 0x22a   : > { %v2636_v46 = vmax.f32 %v2182_v2, %v2606_v61  ;;  %v2183_v30 = vadd.f32 %v4947_v14, %v2153_v50  ;;  %v2078_v31 = vadd.f32 %v4915_v23, %v3579_v51  ;;  %v3582_v63 = vadd.f32 %v3581_v53, %v3580_v43  ;;  %v5301_v2 = vld [vmem:[#allocation14_spill] sm:$0xff] }
 0x22b   : > { %3272 = vst [vmem:[%s4933_s13 + $0x50] sm:$0xff] %v3240_v47   ;;  %v2607_v5 = vadd.f32 %v4947_v14, %v2577_v17  ;;  %v2502_v29 = vadd.f32 %v4915_v23, %v3685_v13  ;;  %v3688_v27 = vadd.f32 %v3687_v10, %v3686_v3  ;;  %v5302_v61 = vmax.f32 %v5300_v0, %v5301_v2  ;;  %v5303_v10 = vld [vmem:[#allocation15_spill] sm:$0xff]  ;;  %v5313_v0 = vld [vmem:[#allocation22_spill] sm:$0xff] }
 0x22c   : > { %v2666_v55 = vmax.f32 %v5296_v21, %v2636_v46  ;;  %v2124_v32 = vmax.f32 %v2078_v31, 0.0  ;;  %v2081_v7 = vadd.f32 %v4915_v23, %v3582_v63  ;;  %v5304_v46 = vld [vmem:[#allocation16_spill] sm:$0xff] }
 0x22d   : > { %v2637_v19 = vmax.f32 %v2183_v30, %v2607_v5  ;;  %v2548_v24 = vmax.f32 %v2502_v29, 0.0  ;;  %v2505_v6 = vadd.f32 %v4915_v23, %v3688_v27  ;;  %v5305_v30 = vmax.f32 %v5303_v10, %v5304_v46 }
 0x22e   : > { %v2154_v12 = vmul.f32 %v4940_v9, %v2124_v32  ;;  %v2125_v15 = vmax.f32 %v2081_v7, 0.0  ;;  %v3583_v28 = vpop.f32.mrb[112].mxu0  ;;  %v3689_v45 = vpop.f32.mrb[112].mxu1 }
 0x22f   : > { %v2667_v56 = vmax.f32 %v5299_v48, %v2637_v19  ;;  %v2578_v37 = vmul.f32 %v4940_v9, %v2548_v24  ;;  %v2549_v58 = vmax.f32 %v2505_v6, 0.0  ;;  %v3584_v52 = vpop.f32.mrb[113].mxu0  ;;  %v3690_v11 = vpop.f32.mrb[113].mxu1 }
 0x230   : > { %v2184_v20 = vadd.f32 %v4947_v14, %v2154_v12  ;;  %v2155_v44 = vmul.f32 %v4940_v9, %v2125_v15  ;;  %v3585_v60 = vadd.f32 %v3584_v52, %v3583_v28  ;;  %v3691_v8 = vadd.f32 %v3690_v11, %v3689_v45  ;;  %v3586_v4 = vpop.f32.mrb[114].mxu0  ;;  %v3692_v36 = vpop.f32.mrb[114].mxu1 }
 0x231   : > { %v3245_v49 = vpack.c.bf16 %v2667_v56, %v2666_v55  ;;  %v2608_v22 = vadd.f32 %v4947_v14, %v2578_v37  ;;  %v2579_v59 = vmul.f32 %v4940_v9, %v2549_v58  ;;  %v3587_v42 = vpop.f32.mrb[115].mxu0  ;;  %v3693_v41 = vpop.f32.mrb[115].mxu1  ;;  %v5306_v37 = vld [vmem:[#allocation17_spill] sm:$0xff]  ;;  %v5307_v58 = vld [vmem:[#allocation18_spill] sm:$0xff] }
 0x232   : > { %v2185_v18 = vadd.f32 %v4947_v14, %v2155_v44  ;;  %v2086_v25 = vadd.f32 %v4915_v23, %v3585_v60  ;;  %v2510_v26 = vadd.f32 %v4915_v23, %v3691_v8  ;;  %v3588_v38 = vadd.f32 %v3587_v42, %v3586_v4 }
 0x233   : > { %3273 = vst [vmem:[%s4933_s13 + $0x58] sm:$0xff] %v3245_v49   ;;  %v2638_v39 = vmax.f32 %v2184_v20, %v2608_v22  ;;  %v2609_v33 = vadd.f32 %v4947_v14, %v2579_v59  ;;  %v3694_v62 = vadd.f32 %v3693_v41, %v3692_v36  ;;  %v5308_v52 = vmax.f32 %v5306_v37, %v5307_v58  ;;  %v5309_v22 = vld [vmem:[#allocation19_spill] sm:$0xff]  ;;  %v5310_v59 = vld [vmem:[#allocation20_spill] sm:$0xff] }
 0x234   : > { %v2126_v16 = vmax.f32 %v2086_v25, 0.0  ;;  %v2550_v1 = vmax.f32 %v2510_v26, 0.0  ;;  %v2089_v57 = vadd.f32 %v4915_v23, %v3588_v38  ;;  %v5311_v42 = vmax.f32 %v5309_v22, %v5310_v59 }
 0x235   : > { %v2668_v50 = vmax.f32 %v5302_v61, %v2638_v39  ;;  %v2639_v51 = vmax.f32 %v2185_v18, %v2609_v33  ;;  %v2513_v43 = vadd.f32 %v4915_v23, %v3694_v62 }
 0x236   : > { %v2156_v3 = vmul.f32 %v4940_v9, %v2126_v16  ;;  %v2580_v47 = vmul.f32 %v4940_v9, %v2550_v1  ;;  %v2127_v17 = vmax.f32 %v2089_v57, 0.0  ;;  %v3589_v13 = vpop.f32.mrb[116].mxu0  ;;  %v3695_v53 = vpop.f32.mrb[116].mxu1  ;;  %v5312_v57 = vld [vmem:[#allocation21_spill] sm:$0xff] }
 0x237   : > { %v2669_v31 = vmax.f32 %v5305_v30, %v2639_v51  ;;  %v2551_v63 = vmax.f32 %v2513_v43, 0.0  ;;  %v3590_v5 = vpop.f32.mrb[117].mxu0  ;;  %v3696_v29 = vpop.f32.mrb[117].mxu1  ;;  %v5314_v2 = vmax.f32 %v5312_v57, %v5313_v0  ;;  %v5315_v51 = vld [vmem:[#allocation23_spill] sm:$0xff]  ;;  %v5316_v43 = vld [vmem:[#allocation24_spill] sm:$0xff] }
 0x238   : > { %v2186_v27 = vadd.f32 %v4947_v14, %v2156_v3  ;;  %v2610_v34 = vadd.f32 %v4947_v14, %v2580_v47  ;;  %v2157_v54 = vmul.f32 %v4940_v9, %v2127_v17  ;;  %v3591_v21 = vadd.f32 %v3590_v5, %v3589_v13  ;;  %v3592_v55 = vpop.f32.mrb[118].mxu0  ;;  %v3698_v32 = vpop.f32.mrb[118].mxu1 }
 0x239   : > { %v3250_v7 = vpack.c.bf16 %v2669_v31, %v2668_v50  ;;  %v2581_v19 = vmul.f32 %v4940_v9, %v2551_v63  ;;  %v3697_v24 = vadd.f32 %v3696_v29, %v3695_v53  ;;  %v3593_v6 = vpop.f32.mrb[119].mxu0  ;;  %v3699_v12 = vpop.f32.mrb[119].mxu1  ;;  %v5317_v3 = vmax.f32 %v5315_v51, %v5316_v43 }
 0x23a   : > { %v2640_v15 = vmax.f32 %v2186_v27, %v2610_v34  ;;  %v2187_v28 = vadd.f32 %v4947_v14, %v2157_v54  ;;  %v2094_v45 = vadd.f32 %v4915_v23, %v3591_v21  ;;  %v3594_v35 = vadd.f32 %v3593_v6, %v3592_v55 }
 0x23b   : > { %3274 = vst [vmem:[%s4933_s13 + $0x60] sm:$0xff] %v3250_v7   ;;  %v2611_v40 = vadd.f32 %v4947_v14, %v2581_v19  ;;  %v2518_v48 = vadd.f32 %v4915_v23, %v3697_v24  ;;  %v3700_v56 = vadd.f32 %v3699_v12, %v3698_v32 }
 0x23c   : > { %v2670_v11 = vmax.f32 %v5308_v52, %v2640_v15  ;;  %v2128_v20 = vmax.f32 %v2094_v45, 0.0  ;;  %v2097_v44 = vadd.f32 %v4915_v23, %v3594_v35 }
 0x23d   : > { %v2641_v60 = vmax.f32 %v2187_v28, %v2611_v40  ;;  %v2552_v8 = vmax.f32 %v2518_v48, 0.0  ;;  %v2521_v4 = vadd.f32 %v4915_v23, %v3700_v56 }
 0x23e   : > { %v2158_v36 = vmul.f32 %v4940_v9, %v2128_v20  ;;  %v2129_v49 = vmax.f32 %v2097_v44, 0.0 }
 0x23f   : > { %v2671_v41 = vmax.f32 %v5311_v42, %v2641_v60  ;;  %v2582_v18 = vmul.f32 %v4940_v9, %v2552_v8  ;;  %v2553_v25 = vmax.f32 %v2521_v4, 0.0 }
 0x240   : > { %v2188_v26 = vadd.f32 %v4947_v14, %v2158_v36  ;;  %v2159_v38 = vmul.f32 %v4940_v9, %v2129_v49 }
 0x241   : > { %v3255_v39 = vpack.c.bf16 %v2671_v41, %v2670_v11  ;;  %v2612_v33 = vadd.f32 %v4947_v14, %v2582_v18  ;;  %v2583_v23 = vmul.f32 %v4940_v9, %v2553_v25 }
 0x242   : > { %v2189_v62 = vadd.f32 %v4947_v14, %v2159_v38 }
 0x243   : > { %3275 = vst [vmem:[%s4933_s13 + $0x68] sm:$0xff] %v3255_v39   ;;  %v2642_v16 = vmax.f32 %v2188_v26, %v2612_v33  ;;  %v2613_v1 = vadd.f32 %v4947_v14, %v2583_v23 }
 0x245   : > { %v2672_v61 = vmax.f32 %v5314_v2, %v2642_v16  ;;  %v2643_v50 = vmax.f32 %v2189_v62, %v2613_v1 }
 0x247   : > { %v2673_v47 = vmax.f32 %v5317_v3, %v2643_v50 }
 0x249   : > { %v3260_v17 = vpack.c.bf16 %v2673_v47, %v2672_v61 }
 0x24b   : > { %3276 = vst [vmem:[%s4933_s13 + $0x70] sm:$0xff] %v3260_v17  }
 0x24c PF: > { %p12_p9 = scmp.ge.s32.totalorder %s3997_s22, 6   ;;  %s5318_s18 = smov %s3944_s19 }
 0x24d   : > { %s5319_s19 = smov %s4006_s25  ;;  %s5320_s20 = smov %s3997_s22 }
 0x24e   :  { %14 = sbr.rel (!%p12_p9) target bundleno = 2 (0x2), region = 116 }

// kernel: actor_forward.4
= control target key start
LH: loop header
LB: loop body
LE: loop exit
PB: predicated region body
PF: predicated region fallthrough
CT: control target
= control target key end

     0   :  { %s2329_s1 = inlined_call_operand.vmem [shape: bf16[512,128], index: 1, kind: input, shape index: {}]   ;;  %s2330_s0 = inlined_call_operand.vmem [shape: bf16[4,48,512], index: 0, kind: input, shape index: {}]   ;;  %s2331_s2 = inlined_call_operand.vmem [shape: f32[1,128], index: 2, kind: input, shape index: {}]   ;;  %s2332_s3 = inlined_call_operand.vmem [shape: f32[1,128], index: 3, kind: input, shape index: {}]   ;;  %s2333_s4 = inlined_call_operand.vmem [shape: f32[1,128], index: 4, kind: input, shape index: {}]   ;;  %s2334_s5 = inlined_call_operand.vmem [shape: bf16[48,128], index: 5, kind: output, shape index: {}]  }
   0x1   :  { %v1726_v0 = vld [vmem:[%s2329_s1 + $0x40] sm:$0xff]   ;;  %v1749_v4 = vld [vmem:[%s2329_s1 + $0x48] sm:$0xff]   ;;  %v1773_v8 = vld [vmem:[%s2329_s1 + $0x50] sm:$0xff]  }
   0x2   :  { %v1731_v1 = vld [vmem:[%s2329_s1 + $0xc0] sm:$0xff]   ;;  %1317 = vmatprep.subr.bf16.mxu0 %v1726_v0  ;;  %v1755_v5 = vld [vmem:[%s2329_s1 + $0xc8] sm:$0xff]   ;;  %v1779_v9 = vld [vmem:[%s2329_s1 + $0xd0] sm:$0xff]  }
   0x3   :  { %v1737_v2 = vld [vmem:[%s2329_s1] sm:$0xff]   ;;  %1351 = vmatprep.subr.bf16.mxu1 %v1731_v1  ;;  %v1761_v6 = vld [vmem:[%s2329_s1 + $0x8] sm:$0xff]   ;;  %v1785_v10 = vld [vmem:[%s2329_s1 + $0x10] sm:$0xff]  }
   0x4   :  { %v1743_v3 = vld [vmem:[%s2329_s1 + $0x80] sm:$0xff]   ;;  %1318 = vmatpush3.bf16.msra.mxu0 %v1737_v2  ;;  %v1767_v7 = vld [vmem:[%s2329_s1 + $0x88] sm:$0xff]   ;;  %v1791_v11 = vld [vmem:[%s2329_s1 + $0x90] sm:$0xff]  }
   0x5   :  { %1352 = vmatpush3.bf16.msra.mxu1 %v1743_v3  ;;  %1319 = vmatprep.subr.bf16.mxu0 %v1749_v4  ;;  %v1797_v12 = vld [vmem:[%s2329_s1 + $0x58] sm:$0xff]   ;;  %v1821_v16 = vld [vmem:[%s2329_s1 + $0x60] sm:$0xff]   ;;  %v1845_v20 = vld [vmem:[%s2329_s1 + $0x68] sm:$0xff]  }
   0x6   :  { %1353 = vmatprep.subr.bf16.mxu1 %v1755_v5  ;;  %v1803_v13 = vld [vmem:[%s2329_s1 + $0xd8] sm:$0xff]   ;;  %v1827_v17 = vld [vmem:[%s2329_s1 + $0xe0] sm:$0xff]   ;;  %v1851_v21 = vld [vmem:[%s2329_s1 + $0xe8] sm:$0xff]  }
   0x7   :  { %v1809_v14 = vld [vmem:[%s2329_s1 + $0x18] sm:$0xff]   ;;  %v1833_v18 = vld [vmem:[%s2329_s1 + $0x20] sm:$0xff]   ;;  %v1857_v22 = vld [vmem:[%s2329_s1 + $0x28] sm:$0xff]  }
   0x8   :  { %1320 = vmatpush3.bf16.msra.mxu0 %v1761_v6  ;;  %v1815_v15 = vld [vmem:[%s2329_s1 + $0x98] sm:$0xff]   ;;  %v1839_v19 = vld [vmem:[%s2329_s1 + $0xa0] sm:$0xff]   ;;  %v1863_v23 = vld [vmem:[%s2329_s1 + $0xa8] sm:$0xff]  }
   0x9   :  { %1354 = vmatpush3.bf16.msra.mxu1 %v1767_v7  ;;  %1321 = vmatprep.subr.bf16.mxu0 %v1773_v8  ;;  %v1869_v24 = vld [vmem:[%s2329_s1 + $0x70] sm:$0xff]   ;;  %v1893_v28 = vld [vmem:[%s2329_s1 + $0x78] sm:$0xff]  }
   0xa   :  { %1355 = vmatprep.subr.bf16.mxu1 %v1779_v9  ;;  %v1875_v25 = vld [vmem:[%s2329_s1 + $0xf0] sm:$0xff]   ;;  %v1899_v29 = vld [vmem:[%s2329_s1 + $0xf8] sm:$0xff]  }
   0xb   :  { %v1881_v26 = vld [vmem:[%s2329_s1 + $0x30] sm:$0xff]   ;;  %v1905_v30 = vld [vmem:[%s2329_s1 + $0x38] sm:$0xff]  }
   0xc   :  { %1322 = vmatpush3.bf16.msra.mxu0 %v1785_v10  ;;  %v1887_v27 = vld [vmem:[%s2329_s1 + $0xb0] sm:$0xff]   ;;  %v1911_v31 = vld [vmem:[%s2329_s1 + $0xb8] sm:$0xff]  }
   0xd   :  { %1356 = vmatpush3.bf16.msra.mxu1 %v1791_v11  ;;  %1323 = vmatprep.subr.bf16.mxu0 %v1797_v12  ;;  %v1621_v32 = vld [vmem:[%s2330_s0] ss:$16 sps:$4 sm:$0xff]   ;;  %v1623_v33 = vld [vmem:[%s2330_s0 + $0x4] ss:$16 sps:$4 sm:$0xff]   ;;  %v1624_v34 = vld [vmem:[%s2330_s0 + $0x8] ss:$16 sps:$4 sm:$0xff]  }
   0xe   :  { %1357 = vmatprep.subr.bf16.mxu1 %v1803_v13  ;;  %v1626_v35 = vld [vmem:[%s2330_s0 + $0xc] ss:$16 sps:$4 sm:$0xff]   ;;  %390 = vmatprep.mubr.bf16.mxu0 %v1623_v33  ;;  %v1627_v36 = vld [vmem:[%s2330_s0 + $0x24] ss:$16 sps:$4 sm:$0xff]   ;;  %v1629_v38 = vld [vmem:[%s2330_s0 + $0x20] ss:$16 sps:$4 sm:$0xff]  }
   0xf   :  { %447 = vmatprep.mubr.bf16.mxu1 %v1626_v35  ;;  %v1630_v37 = vld [vmem:[%s2330_s0 + $0x2c] ss:$16 sps:$4 sm:$0xff]   ;;  %v1632_v39 = vld [vmem:[%s2330_s0 + $0x28] ss:$16 sps:$4 sm:$0xff]   ;;  %v1633_v40 = vld [vmem:[%s2330_s0 + $0x44] ss:$16 sps:$4 sm:$0xff]  }
  0x10   :  { %1324 = vmatpush3.bf16.msra.mxu0 %v1809_v14  ;;  %v1636_v41 = vld [vmem:[%s2330_s0 + $0x4c] ss:$16 sps:$4 sm:$0xff]   ;;  %v1635_v42 = vld [vmem:[%s2330_s0 + $0x40] ss:$16 sps:$4 sm:$0xff]   ;;  %v1638_v43 = vld [vmem:[%s2330_s0 + $0x48] ss:$16 sps:$4 sm:$0xff]  }
  0x11   :  { %1358 = vmatpush3.bf16.msra.mxu1 %v1815_v15  ;;  %1325 = vmatprep.subr.bf16.mxu0 %v1821_v16  ;;  %v1641_v44 = vld [vmem:[%s2330_s0 + $0x64] ss:$16 sps:$4 sm:$0xff]   ;;  %v1644_v45 = vld [vmem:[%s2330_s0 + $0x6c] ss:$16 sps:$4 sm:$0xff]   ;;  %v1639_v46 = vld [vmem:[%s2330_s0 + $0x60] ss:$16 sps:$4 sm:$0xff]  }
  0x12   :  { %1359 = vmatprep.subr.bf16.mxu1 %v1827_v17  ;;  %v1642_v47 = vld [vmem:[%s2330_s0 + $0x68] ss:$16 sps:$4 sm:$0xff]   ;;  %v1645_v48 = vld [vmem:[%s2330_s0 + $0x84] ss:$16 sps:$4 sm:$0xff]   ;;  %v1648_v49 = vld [vmem:[%s2330_s0 + $0x8c] ss:$16 sps:$4 sm:$0xff]  }
  0x13   :  { %v1647_v50 = vld [vmem:[%s2330_s0 + $0x80] ss:$16 sps:$4 sm:$0xff]   ;;  %v1650_v51 = vld [vmem:[%s2330_s0 + $0x88] ss:$16 sps:$4 sm:$0xff]   ;;  %v1651_v52 = vld [vmem:[%s2330_s0 + $0xa4] ss:$16 sps:$4 sm:$0xff]  }
  0x14   :  { %1326 = vmatpush3.bf16.msra.mxu0 %v1833_v18  ;;  %v1654_v53 = vld [vmem:[%s2330_s0 + $0xac] ss:$16 sps:$4 sm:$0xff]   ;;  %v1653_v54 = vld [vmem:[%s2330_s0 + $0xa0] ss:$16 sps:$4 sm:$0xff]   ;;  %v1656_v55 = vld [vmem:[%s2330_s0 + $0xa8] ss:$16 sps:$4 sm:$0xff]  }
  0x15   :  { %1360 = vmatpush3.bf16.msra.mxu1 %v1839_v19  ;;  %1327 = vmatprep.subr.bf16.mxu0 %v1845_v20  ;;  %v1659_v56 = vld [vmem:[%s2330_s0 + $0xc4] ss:$16 sps:$4 sm:$0xff]   ;;  %v1662_v57 = vld [vmem:[%s2330_s0 + $0xcc] ss:$16 sps:$4 sm:$0xff]   ;;  %v1657_v58 = vld [vmem:[%s2330_s0 + $0xc0] ss:$16 sps:$4 sm:$0xff]  }
  0x16   :  { %1361 = vmatprep.subr.bf16.mxu1 %v1851_v21  ;;  %v1660_v59 = vld [vmem:[%s2330_s0 + $0xc8] ss:$16 sps:$4 sm:$0xff]   ;;  %v1663_v60 = vld [vmem:[%s2330_s0 + $0xe4] ss:$16 sps:$4 sm:$0xff]   ;;  %v1666_v61 = vld [vmem:[%s2330_s0 + $0xec] ss:$16 sps:$4 sm:$0xff]  }
  0x17   :  { %v1665_v62 = vld [vmem:[%s2330_s0 + $0xe0] ss:$16 sps:$4 sm:$0xff]   ;;  %v1668_v63 = vld [vmem:[%s2330_s0 + $0xe8] ss:$16 sps:$4 sm:$0xff]  }
  0x18   :  { %1328 = vmatpush3.bf16.msra.mxu0 %v1857_v22 }
  0x19   :  { %1362 = vmatpush3.bf16.msra.mxu1 %v1863_v23  ;;  %1329 = vmatprep.subr.bf16.mxu0 %v1869_v24 }
  0x1a   :  { %1363 = vmatprep.subr.bf16.mxu1 %v1875_v25 }
  0x1c   :  { %1330 = vmatpush3.bf16.msra.mxu0 %v1881_v26 }
  0x1d   :  { %1364 = vmatpush3.bf16.msra.mxu1 %v1887_v27  ;;  %1331 = vmatprep.subr.bf16.mxu0 %v1893_v28 }
  0x1e   :  { %1365 = vmatprep.subr.bf16.mxu1 %v1899_v29 }
  0x20   :  { %1332 = vmatpush3.bf16.msra.mxu0 %v1905_v30 }
  0x21   :  { %1366 = vmatpush3.bf16.msra.mxu1 %v1911_v31  ;;  %1385 = vmatprep.subr.bf16.mxu0 %v1726_v0 }
  0x22   :  { %1419 = vmatprep.subr.bf16.mxu1 %v1731_v1 }
  0x23   :  { %391 = vmatmul.mubr.bf16.vlgmr.msra.gmra.mrb[0].mxu0 %v1621_v32 }
  0x24   :  { %448 = vmatmul.mubr.bf16.vlgmr.msra.gmra.mrb[0].mxu1 %v1624_v34  ;;  %1386 = vmatpush3.bf16.msra.mxu0 %v1737_v2 }
  0x25   :  { %1420 = vmatpush3.bf16.msra.mxu1 %v1743_v3  ;;  %1387 = vmatprep.subr.bf16.mxu0 %v1749_v4 }
  0x26   :  { %1421 = vmatprep.subr.bf16.mxu1 %v1755_v5  ;;  %398 = vmatprep.mubr.bf16.mxu0 %v1627_v36 }
  0x27   :  { %455 = vmatprep.mubr.bf16.mxu1 %v1630_v37 }
  0x28   :  { %1388 = vmatpush3.bf16.msra.mxu0 %v1761_v6 }
  0x29   :  { %1422 = vmatpush3.bf16.msra.mxu1 %v1767_v7  ;;  %1389 = vmatprep.subr.bf16.mxu0 %v1773_v8 }
  0x2a   :  { %1423 = vmatprep.subr.bf16.mxu1 %v1779_v9 }
  0x2b   :  { %399 = vmatmul.mubr.bf16.gmra.mrb[4].mxu0 %v1629_v38 }
  0x2c   :  { %1390 = vmatpush3.bf16.msra.mxu0 %v1785_v10  ;;  %456 = vmatmul.mubr.bf16.gmra.mrb[4].mxu1 %v1632_v39 }
  0x2d   :  { %1424 = vmatpush3.bf16.msra.mxu1 %v1791_v11  ;;  %1391 = vmatprep.subr.bf16.mxu0 %v1797_v12 }
  0x2e   :  { %1425 = vmatprep.subr.bf16.mxu1 %v1803_v13  ;;  %406 = vmatprep.mubr.bf16.mxu0 %v1633_v40 }
  0x2f   :  { %463 = vmatprep.mubr.bf16.mxu1 %v1636_v41 }
  0x30   :  { %1392 = vmatpush3.bf16.msra.mxu0 %v1809_v14 }
  0x31   :  { %1426 = vmatpush3.bf16.msra.mxu1 %v1815_v15  ;;  %1393 = vmatprep.subr.bf16.mxu0 %v1821_v16 }
  0x32   :  { %1427 = vmatprep.subr.bf16.mxu1 %v1827_v17 }
  0x33   :  { %407 = vmatmul.mubr.bf16.gmra.mrb[8].mxu0 %v1635_v42 }
  0x34   :  { %1394 = vmatpush3.bf16.msra.mxu0 %v1833_v18  ;;  %464 = vmatmul.mubr.bf16.gmra.mrb[8].mxu1 %v1638_v43 }
  0x35   :  { %1428 = vmatpush3.bf16.msra.mxu1 %v1839_v19  ;;  %1395 = vmatprep.subr.bf16.mxu0 %v1845_v20 }
  0x36   :  { %1429 = vmatprep.subr.bf16.mxu1 %v1851_v21  ;;  %607 = vmatprep.mubr.bf16.mxu0 %v1641_v44 }
  0x37   :  { %664 = vmatprep.mubr.bf16.mxu1 %v1644_v45 }
  0x38   :  { %1396 = vmatpush3.bf16.msra.mxu0 %v1857_v22 }
  0x39   :  { %1430 = vmatpush3.bf16.msra.mxu1 %v1863_v23  ;;  %1397 = vmatprep.subr.bf16.mxu0 %v1869_v24 }
  0x3a   :  { %1431 = vmatprep.subr.bf16.mxu1 %v1875_v25 }
  0x3c   :  { %1398 = vmatpush3.bf16.msra.mxu0 %v1881_v26 }
  0x3d   :  { %1432 = vmatpush3.bf16.msra.mxu1 %v1887_v27  ;;  %1399 = vmatprep.subr.bf16.mxu0 %v1893_v28 }
  0x3e   :  { %1433 = vmatprep.subr.bf16.mxu1 %v1899_v29 }
  0x40   :  { %1400 = vmatpush3.bf16.msra.mxu0 %v1905_v30 }
  0x41   :  { %1434 = vmatpush3.bf16.msra.mxu1 %v1911_v31  ;;  %1453 = vmatprep.subr.bf16.mxu0 %v1726_v0 }
  0x42   :  { %1487 = vmatprep.subr.bf16.mxu1 %v1731_v1 }
  0x43   :  { %608 = vmatmul.mubr.bf16.vlgmr.msra.gmra.mrb[12].mxu0 %v1639_v46 }
  0x44   :  { %665 = vmatmul.mubr.bf16.vlgmr.msra.gmra.mrb[12].mxu1 %v1642_v47  ;;  %1454 = vmatpush3.bf16.msra.mxu0 %v1737_v2 }
  0x45   :  { %1488 = vmatpush3.bf16.msra.mxu1 %v1743_v3  ;;  %1455 = vmatprep.subr.bf16.mxu0 %v1749_v4 }
  0x46   :  { %1489 = vmatprep.subr.bf16.mxu1 %v1755_v5  ;;  %615 = vmatprep.mubr.bf16.mxu0 %v1645_v48 }
  0x47   :  { %672 = vmatprep.mubr.bf16.mxu1 %v1648_v49 }
  0x48   :  { %1456 = vmatpush3.bf16.msra.mxu0 %v1761_v6 }
  0x49   :  { %1490 = vmatpush3.bf16.msra.mxu1 %v1767_v7  ;;  %1457 = vmatprep.subr.bf16.mxu0 %v1773_v8 }
  0x4a   :  { %1491 = vmatprep.subr.bf16.mxu1 %v1779_v9 }
  0x4b   :  { %616 = vmatmul.mubr.bf16.gmra.mrb[16].mxu0 %v1647_v50 }
  0x4c   :  { %1458 = vmatpush3.bf16.msra.mxu0 %v1785_v10  ;;  %673 = vmatmul.mubr.bf16.gmra.mrb[16].mxu1 %v1650_v51 }
  0x4d   :  { %1492 = vmatpush3.bf16.msra.mxu1 %v1791_v11  ;;  %1459 = vmatprep.subr.bf16.mxu0 %v1797_v12 }
  0x4e   :  { %1493 = vmatprep.subr.bf16.mxu1 %v1803_v13  ;;  %623 = vmatprep.mubr.bf16.mxu0 %v1651_v52 }
  0x4f   :  { %680 = vmatprep.mubr.bf16.mxu1 %v1654_v53 }
  0x50   :  { %1460 = vmatpush3.bf16.msra.mxu0 %v1809_v14 }
  0x51   :  { %1494 = vmatpush3.bf16.msra.mxu1 %v1815_v15  ;;  %1461 = vmatprep.subr.bf16.mxu0 %v1821_v16 }
  0x52   :  { %1495 = vmatprep.subr.bf16.mxu1 %v1827_v17 }
  0x53   :  { %624 = vmatmul.mubr.bf16.gmra.mrb[20].mxu0 %v1653_v54 }
  0x54   :  { %1462 = vmatpush3.bf16.msra.mxu0 %v1833_v18  ;;  %681 = vmatmul.mubr.bf16.gmra.mrb[20].mxu1 %v1656_v55 }
  0x55   :  { %1496 = vmatpush3.bf16.msra.mxu1 %v1839_v19  ;;  %1463 = vmatprep.subr.bf16.mxu0 %v1845_v20 }
  0x56   :  { %1497 = vmatprep.subr.bf16.mxu1 %v1851_v21  ;;  %818 = vmatprep.mubr.bf16.mxu0 %v1659_v56 }
  0x57   :  { %875 = vmatprep.mubr.bf16.mxu1 %v1662_v57 }
  0x58   :  { %1464 = vmatpush3.bf16.msra.mxu0 %v1857_v22 }
  0x59   :  { %1498 = vmatpush3.bf16.msra.mxu1 %v1863_v23  ;;  %1465 = vmatprep.subr.bf16.mxu0 %v1869_v24 }
  0x5a   :  { %1499 = vmatprep.subr.bf16.mxu1 %v1875_v25 }
  0x5c   :  { %1466 = vmatpush3.bf16.msra.mxu0 %v1881_v26 }
  0x5d   :  { %1500 = vmatpush3.bf16.msra.mxu1 %v1887_v27  ;;  %1467 = vmatprep.subr.bf16.mxu0 %v1893_v28 }
  0x5e   :  { %1501 = vmatprep.subr.bf16.mxu1 %v1899_v29 }
  0x60   :  { %1468 = vmatpush3.bf16.msra.mxu0 %v1905_v30 }
  0x61   :  { %1502 = vmatpush3.bf16.msra.mxu1 %v1911_v31  ;;  %1521 = vmatprep.subr.bf16.mxu0 %v1726_v0  ;;  %v1669_v0 = vld [vmem:[%s2330_s0 + $0x104] ss:$16 sps:$4 sm:$0xff]  }
  0x62   :  { %1555 = vmatprep.subr.bf16.mxu1 %v1731_v1  ;;  %v1672_v1 = vld [vmem:[%s2330_s0 + $0x10c] ss:$16 sps:$4 sm:$0xff]  }
  0x63   :  { %819 = vmatmul.mubr.bf16.vlgmr.msra.gmra.mrb[24].mxu0 %v1657_v58 }
  0x64   :  { %876 = vmatmul.mubr.bf16.vlgmr.msra.gmra.mrb[24].mxu1 %v1660_v59  ;;  %1522 = vmatpush3.bf16.msra.mxu0 %v1737_v2  ;;  %v1671_v2 = vld [vmem:[%s2330_s0 + $0x100] ss:$16 sps:$4 sm:$0xff]  }
  0x65   :  { %1556 = vmatpush3.bf16.msra.mxu1 %v1743_v3  ;;  %1523 = vmatprep.subr.bf16.mxu0 %v1749_v4  ;;  %v1674_v3 = vld [vmem:[%s2330_s0 + $0x108] ss:$16 sps:$4 sm:$0xff]   ;;  %v1677_v4 = vld [vmem:[%s2330_s0 + $0x124] ss:$16 sps:$4 sm:$0xff]  }
  0x66   :  { %1557 = vmatprep.subr.bf16.mxu1 %v1755_v5  ;;  %826 = vmatprep.mubr.bf16.mxu0 %v1663_v60  ;;  %v1680_v5 = vld [vmem:[%s2330_s0 + $0x12c] ss:$16 sps:$4 sm:$0xff]  }
  0x67   :  { %883 = vmatprep.mubr.bf16.mxu1 %v1666_v61 }
  0x68   :  { %1524 = vmatpush3.bf16.msra.mxu0 %v1761_v6  ;;  %v1675_v6 = vld [vmem:[%s2330_s0 + $0x120] ss:$16 sps:$4 sm:$0xff]  }
  0x69   :  { %1558 = vmatpush3.bf16.msra.mxu1 %v1767_v7  ;;  %1525 = vmatprep.subr.bf16.mxu0 %v1773_v8  ;;  %v1678_v7 = vld [vmem:[%s2330_s0 + $0x128] ss:$16 sps:$4 sm:$0xff]   ;;  %v1681_v8 = vld [vmem:[%s2330_s0 + $0x144] ss:$16 sps:$4 sm:$0xff]  }
  0x6a   :  { %1559 = vmatprep.subr.bf16.mxu1 %v1779_v9  ;;  %v1683_v9 = vld [vmem:[%s2330_s0 + $0x14c] ss:$16 sps:$4 sm:$0xff]  }
  0x6b   :  { %827 = vmatmul.mubr.bf16.gmra.mrb[28].mxu0 %v1665_v62 }
  0x6c   :  { %1526 = vmatpush3.bf16.msra.mxu0 %v1785_v10  ;;  %884 = vmatmul.mubr.bf16.gmra.mrb[28].mxu1 %v1668_v63  ;;  %v1685_v10 = vld [vmem:[%s2330_s0 + $0x140] ss:$16 sps:$4 sm:$0xff]  }
  0x6d   :  { %1560 = vmatpush3.bf16.msra.mxu1 %v1791_v11  ;;  %1527 = vmatprep.subr.bf16.mxu0 %v1797_v12  ;;  %v1686_v11 = vld [vmem:[%s2330_s0 + $0x148] ss:$16 sps:$4 sm:$0xff]   ;;  %v1687_v12 = vld [vmem:[%s2330_s0 + $0x164] ss:$16 sps:$4 sm:$0xff]  }
  0x6e   :  { %1561 = vmatprep.subr.bf16.mxu1 %v1803_v13  ;;  %834 = vmatprep.mubr.bf16.mxu0 %v1669_v0  ;;  %v1689_v13 = vld [vmem:[%s2330_s0 + $0x16c] ss:$16 sps:$4 sm:$0xff]  }
  0x6f   :  { %891 = vmatprep.mubr.bf16.mxu1 %v1672_v1 }
  0x70   :  { %1528 = vmatpush3.bf16.msra.mxu0 %v1809_v14  ;;  %v1691_v14 = vld [vmem:[%s2330_s0 + $0x160] ss:$16 sps:$4 sm:$0xff]  }
  0x71   :  { %1562 = vmatpush3.bf16.msra.mxu1 %v1815_v15  ;;  %1529 = vmatprep.subr.bf16.mxu0 %v1821_v16  ;;  %v1692_v15 = vld [vmem:[%s2330_s0 + $0x168] ss:$16 sps:$4 sm:$0xff]  }
  0x72   :  { %1563 = vmatprep.subr.bf16.mxu1 %v1827_v17 }
  0x73   :  { %835 = vmatmul.mubr.bf16.gmra.mrb[32].mxu0 %v1671_v2 }
  0x74   :  { %1530 = vmatpush3.bf16.msra.mxu0 %v1833_v18  ;;  %892 = vmatmul.mubr.bf16.gmra.mrb[32].mxu1 %v1674_v3  ;;  %v2158_v18 = vld [vmem:[%s2331_s2] ss:$0 sm:$0xff] }
  0x75   :  { %1564 = vmatpush3.bf16.msra.mxu1 %v1839_v19  ;;  %1531 = vmatprep.subr.bf16.mxu0 %v1845_v20 }
  0x76   :  { %1565 = vmatprep.subr.bf16.mxu1 %v1851_v21  ;;  %1023 = vmatprep.mubr.bf16.mxu0 %v1677_v4 }
  0x77   :  { %1080 = vmatprep.mubr.bf16.mxu1 %v1680_v5 }
  0x78   :  { %1532 = vmatpush3.bf16.msra.mxu0 %v1857_v22 }
  0x79   :  { %1566 = vmatpush3.bf16.msra.mxu1 %v1863_v23  ;;  %1533 = vmatprep.subr.bf16.mxu0 %v1869_v24 }
  0x7a   :  { %1567 = vmatprep.subr.bf16.mxu1 %v1875_v25 }
  0x7c   :  { %1534 = vmatpush3.bf16.msra.mxu0 %v1881_v26 }
  0x7d   :  { %1568 = vmatpush3.bf16.msra.mxu1 %v1887_v27  ;;  %1535 = vmatprep.subr.bf16.mxu0 %v1893_v28 }
  0x7e   :  { %1569 = vmatprep.subr.bf16.mxu1 %v1899_v29 }
  0x80   :  { %1536 = vmatpush3.bf16.msra.mxu0 %v1905_v30 }
  0x81   :  { %1570 = vmatpush3.bf16.msra.mxu1 %v1911_v31 }
  0x83   :  { %1024 = vmatmul.mubr.bf16.vlgmr.msra.gmra.mrb[36].mxu0 %v1675_v6 }
  0x84   :  { %1081 = vmatmul.mubr.bf16.vlgmr.msra.gmra.mrb[36].mxu1 %v1678_v7  ;;  %1031 = vmatprep.mubr.bf16.mxu0 %v1681_v8 }
  0x85   :  { %1088 = vmatprep.mubr.bf16.mxu1 %v1683_v9 }
  0x8b   :  { %1032 = vmatmul.mubr.bf16.gmra.mrb[40].mxu0 %v1685_v10 }
  0x8c   :  { %1089 = vmatmul.mubr.bf16.gmra.mrb[40].mxu1 %v1686_v11  ;;  %1039 = vmatprep.mubr.bf16.mxu0 %v1687_v12  ;;  %v2177_v11 = vld [vmem:[%s2332_s3] ss:$0 sm:$0xff] }
  0x8d   :  { %1096 = vmatprep.mubr.bf16.mxu1 %v1689_v13 }
  0x93   :  { %1040 = vmatmul.mubr.bf16.gmra.mrb[44].mxu0 %v1691_v14 }
  0x94   :  { %1097 = vmatmul.mubr.bf16.gmra.mrb[44].mxu1 %v1692_v15 }
  0xf6   :  { %v1333_v16 = vpop.f32.mrb[0].mxu0 }
  0xf7   :  { %v1367_v17 = vpop.f32.mrb[0].mxu1  ;;  %v1334_v19 = vpop.f32.mrb[1].mxu0 }
  0xf8   :  { %v1335_v20 = vadd.f32 %v1334_v19, %v1333_v16  ;;  %v1368_v21 = vpop.f32.mrb[1].mxu1  ;;  %v1336_v22 = vpop.f32.mrb[2].mxu0 }
  0xf9   :  { %v1369_v23 = vadd.f32 %v1368_v21, %v1367_v17  ;;  %v1370_v24 = vpop.f32.mrb[2].mxu1  ;;  %v1337_v25 = vpop.f32.mrb[3].mxu0  ;;  %v2185_v21 = vld [vmem:[%s2333_s4] ss:$0 sm:$0xff] }
  0xfa   :  { %v393_v26 = vadd.f32 %v1335_v20, %v2158_v18  ;;  %v1338_v27 = vadd.f32 %v1337_v25, %v1336_v22  ;;  %v1371_v28 = vpop.f32.mrb[3].mxu1 }
  0xfb   :  { %v1372_v29 = vadd.f32 %v1371_v28, %v1370_v24 }
  0xfc   :  { %v450_v30 = vadd.f32 %v1369_v23, %v393_v26  ;;  %v396_v31 = vadd.f32 %v1338_v27, %v2158_v18 }
  0xfe   :  { %v453_v32 = vadd.f32 %v1372_v29, %v396_v31  ;;  %v1339_v33 = vpop.f32.mrb[4].mxu0  ;;  %v472_v7 = vmax.f32 %v450_v30, 0.0 }
  0xff   :  { %v1340_v34 = vpop.f32.mrb[5].mxu0  ;;  %v1373_v35 = vpop.f32.mrb[4].mxu1 }
 0x100   :  { %v1341_v36 = vadd.f32 %v1340_v34, %v1339_v33  ;;  %v1342_v37 = vpop.f32.mrb[6].mxu0  ;;  %v1374_v38 = vpop.f32.mrb[5].mxu1  ;;  %v473_v15 = vmax.f32 %v453_v32, 0.0  ;;  %v484_v20 = vmul.f32 %v2177_v11, %v472_v7 }
 0x101   :  { %v1343_v39 = vpop.f32.mrb[7].mxu0  ;;  %v1375_v40 = vadd.f32 %v1374_v38, %v1373_v35  ;;  %v1376_v41 = vpop.f32.mrb[6].mxu1 }
 0x102   :  { %v401_v42 = vadd.f32 %v1341_v36, %v2158_v18  ;;  %v1344_v43 = vadd.f32 %v1343_v39, %v1342_v37  ;;  %v1377_v44 = vpop.f32.mrb[7].mxu1  ;;  %v485_v25 = vmul.f32 %v2177_v11, %v473_v15  ;;  %v2190_v33 = vadd.f32 %v2185_v21, %v484_v20 }
 0x103   :  { %v1378_v45 = vadd.f32 %v1377_v44, %v1376_v41 }
 0x104   :  { %v404_v46 = vadd.f32 %v1344_v43, %v2158_v18  ;;  %v2164_v47 = vadd.f32 %v1375_v40, %v401_v42  ;;  %v2199_v43 = vadd.f32 %v2185_v21, %v485_v25 }
 0x106   :  { %v2166_v48 = vadd.f32 %v1378_v45, %v404_v46  ;;  %v1345_v49 = vpop.f32.mrb[8].mxu0  ;;  %v474_v34 = vmax.f32 %v2164_v47, 0.0 }
 0x107   :  { %v1346_v50 = vpop.f32.mrb[9].mxu0  ;;  %v1379_v51 = vpop.f32.mrb[8].mxu1 }
 0x108   :  { %v1347_v52 = vadd.f32 %v1346_v50, %v1345_v49  ;;  %v1348_v53 = vpop.f32.mrb[10].mxu0  ;;  %v1380_v54 = vpop.f32.mrb[9].mxu1  ;;  %v475_v44 = vmax.f32 %v2166_v48, 0.0 }
 0x109   :  { %v1349_v55 = vpop.f32.mrb[11].mxu0  ;;  %v1381_v56 = vadd.f32 %v1380_v54, %v1379_v51  ;;  %v1382_v57 = vpop.f32.mrb[10].mxu1  ;;  %v486_v51 = vmul.f32 %v2177_v11, %v474_v34 }
 0x10a   :  { %v409_v58 = vadd.f32 %v1347_v52, %v2158_v18  ;;  %v1350_v59 = vadd.f32 %v1349_v55, %v1348_v53  ;;  %v1383_v60 = vpop.f32.mrb[11].mxu1  ;;  %v487_v48 = vmul.f32 %v2177_v11, %v475_v44 }
 0x10b   :  { %v1384_v61 = vadd.f32 %v1383_v60, %v1382_v57 }
 0x10c   :  { %v412_v62 = vadd.f32 %v1350_v59, %v2158_v18  ;;  %v2170_v63 = vadd.f32 %v1381_v56, %v409_v58 }
 0x10e   :  { %v2172_v0 = vadd.f32 %v1384_v61, %v412_v62 }
 0x116   :  { %v1401_v1 = vpop.f32.mrb[12].mxu0 }
 0x117   :  { %v1435_v2 = vpop.f32.mrb[12].mxu1  ;;  %v1402_v3 = vpop.f32.mrb[13].mxu0 }
 0x118   :  { %v1403_v4 = vadd.f32 %v1402_v3, %v1401_v1  ;;  %v1436_v5 = vpop.f32.mrb[13].mxu1  ;;  %v1404_v6 = vpop.f32.mrb[14].mxu0  ;;  %v2214_v1 = vadd.f32 %v2185_v21, %v486_v51 }
 0x119   :  { %v1437_v8 = vadd.f32 %v1436_v5, %v1435_v2  ;;  %v1438_v9 = vpop.f32.mrb[14].mxu1  ;;  %v1405_v10 = vpop.f32.mrb[15].mxu0  ;;  %v476_v2 = vmax.f32 %v2170_v63, 0.0 }
 0x11a   :  { %v610_v12 = vadd.f32 %v1403_v4, %v2158_v18  ;;  %v1406_v13 = vadd.f32 %v1405_v10, %v1404_v6  ;;  %v1439_v14 = vpop.f32.mrb[15].mxu1 }
 0x11b   :  { %v1440_v16 = vadd.f32 %v1439_v14, %v1438_v9 }
 0x11c   :  { %v667_v17 = vadd.f32 %v1437_v8, %v610_v12  ;;  %v613_v19 = vadd.f32 %v1406_v13, %v2158_v18  ;;  %v2223_v12 = vadd.f32 %v2185_v21, %v487_v48  ;;  %v477_v13 = vmax.f32 %v2172_v0, 0.0 }
 0x11e   :  { %v689_v22 = vmax.f32 %v667_v17, 0.0  ;;  %v670_v23 = vadd.f32 %v1440_v16, %v613_v19  ;;  %v1407_v24 = vpop.f32.mrb[16].mxu0  ;;  %v488_v19 = vmul.f32 %v2177_v11, %v476_v2 }
 0x11f   :  { %v1408_v26 = vpop.f32.mrb[17].mxu0  ;;  %v1441_v27 = vpop.f32.mrb[16].mxu1 }
 0x120   :  { %v695_v28 = vmul.f32 %v2177_v11, %v689_v22  ;;  %v690_v29 = vmax.f32 %v670_v23, 0.0  ;;  %v1409_v30 = vadd.f32 %v1408_v26, %v1407_v24  ;;  %v1410_v31 = vpop.f32.mrb[18].mxu0  ;;  %v1442_v32 = vpop.f32.mrb[17].mxu1  ;;  %v489_v24 = vmul.f32 %v2177_v11, %v477_v13 }
 0x121   :  { %v1411_v35 = vpop.f32.mrb[19].mxu0  ;;  %v1443_v36 = vadd.f32 %v1442_v32, %v1441_v27  ;;  %v1444_v37 = vpop.f32.mrb[18].mxu1  ;;  %v2238_v26 = vadd.f32 %v2185_v21, %v488_v19 }
 0x122   :  { %v2194_v38 = vadd.f32 %v2185_v21, %v695_v28  ;;  %v696_v39 = vmul.f32 %v2177_v11, %v690_v29  ;;  %v618_v40 = vadd.f32 %v1409_v30, %v2158_v18  ;;  %v1412_v41 = vadd.f32 %v1411_v35, %v1410_v31  ;;  %v1445_v42 = vpop.f32.mrb[19].mxu1 }
 0x123   :  { %v1446_v45 = vadd.f32 %v1445_v42, %v1444_v37  ;;  %v2245_v29 = vadd.f32 %v2185_v21, %v489_v24 }
 0x124   :  { %v707_v46 = vmax.f32 %v2190_v33, %v2194_v38  ;;  %v2205_v47 = vadd.f32 %v2185_v21, %v696_v39  ;;  %v621_v49 = vadd.f32 %v1412_v41, %v2158_v18  ;;  %v675_v50 = vadd.f32 %v1443_v36, %v618_v40 }
 0x126   :  { %v708_v52 = vmax.f32 %v2199_v43, %v2205_v47  ;;  %v691_v53 = vmax.f32 %v675_v50, 0.0  ;;  %v678_v54 = vadd.f32 %v1446_v45, %v621_v49  ;;  %v1413_v55 = vpop.f32.mrb[20].mxu0 }
 0x127   :  { %v1414_v56 = vpop.f32.mrb[21].mxu0  ;;  %v1447_v57 = vpop.f32.mrb[20].mxu1 }
 0x128   :  { %v697_v58 = vmul.f32 %v2177_v11, %v691_v53  ;;  %v692_v59 = vmax.f32 %v678_v54, 0.0  ;;  %v1415_v60 = vadd.f32 %v1414_v56, %v1413_v55  ;;  %v1416_v61 = vpop.f32.mrb[22].mxu0  ;;  %v1448_v62 = vpop.f32.mrb[21].mxu1 }
 0x129   :  { %v1417_v3 = vpop.f32.mrb[23].mxu0  ;;  %v1449_v4 = vadd.f32 %v1448_v62, %v1447_v57  ;;  %v1450_v5 = vpop.f32.mrb[22].mxu1 }
 0x12a   :  { %v2218_v6 = vadd.f32 %v2185_v21, %v697_v58  ;;  %v698_v7 = vmul.f32 %v2177_v11, %v692_v59  ;;  %v626_v8 = vadd.f32 %v1415_v60, %v2158_v18  ;;  %v1418_v9 = vadd.f32 %v1417_v3, %v1416_v61  ;;  %v1451_v10 = vpop.f32.mrb[23].mxu1 }
 0x12b   :  { %v1452_v14 = vadd.f32 %v1451_v10, %v1450_v5 }
 0x12c   :  { %v709_v63 = vmax.f32 %v2214_v1, %v2218_v6  ;;  %v2229_v15 = vadd.f32 %v2185_v21, %v698_v7  ;;  %v629_v16 = vadd.f32 %v1418_v9, %v2158_v18  ;;  %v683_v17 = vadd.f32 %v1449_v4, %v626_v8 }
 0x12e   :  { %v710_v20 = vmax.f32 %v2223_v12, %v2229_v15  ;;  %v693_v22 = vmax.f32 %v683_v17, 0.0  ;;  %v686_v23 = vadd.f32 %v1452_v14, %v629_v16 }
 0x130   :  { %v699_v0 = vmul.f32 %v2177_v11, %v693_v22  ;;  %v694_v25 = vmax.f32 %v686_v23, 0.0 }
 0x132   :  { %v2241_v27 = vadd.f32 %v2185_v21, %v699_v0  ;;  %v700_v28 = vmul.f32 %v2177_v11, %v694_v25 }
 0x134   :  { %v711_v30 = vmax.f32 %v2238_v26, %v2241_v27  ;;  %v2250_v31 = vadd.f32 %v2185_v21, %v700_v28 }
 0x136   :  { %v712_v32 = vmax.f32 %v2245_v29, %v2250_v31  ;;  %v1469_v34 = vpop.f32.mrb[24].mxu0 }
 0x137   :  { %v1503_v35 = vpop.f32.mrb[24].mxu1  ;;  %v1470_v36 = vpop.f32.mrb[25].mxu0 }
 0x138   :  { %v1471_v37 = vadd.f32 %v1470_v36, %v1469_v34  ;;  %v1504_v39 = vpop.f32.mrb[25].mxu1  ;;  %v1472_v40 = vpop.f32.mrb[26].mxu0 }
 0x139   :  { %v1505_v41 = vadd.f32 %v1504_v39, %v1503_v35  ;;  %v1506_v42 = vpop.f32.mrb[26].mxu1  ;;  %v1473_v44 = vpop.f32.mrb[27].mxu0 }
 0x13a   :  { %v821_v45 = vadd.f32 %v1471_v37, %v2158_v18  ;;  %v1474_v49 = vadd.f32 %v1473_v44, %v1472_v40  ;;  %v1507_v50 = vpop.f32.mrb[27].mxu1 }
 0x13b   :  { %v1508_v51 = vadd.f32 %v1507_v50, %v1506_v42 }
 0x13c   :  { %v878_v53 = vadd.f32 %v1505_v41, %v821_v45  ;;  %v824_v54 = vadd.f32 %v1474_v49, %v2158_v18 }
 0x13e   :  { %v881_v55 = vadd.f32 %v1508_v51, %v824_v54  ;;  %v1475_v48 = vpop.f32.mrb[28].mxu0  ;;  %v900_v50 = vmax.f32 %v878_v53, 0.0 }
 0x13f   :  { %v1476_v56 = vpop.f32.mrb[29].mxu0  ;;  %v1509_v57 = vpop.f32.mrb[28].mxu1 }
 0x140   :  { %v1477_v58 = vadd.f32 %v1476_v56, %v1475_v48  ;;  %v1478_v59 = vpop.f32.mrb[30].mxu0  ;;  %v1510_v60 = vpop.f32.mrb[29].mxu1 }
 0x141   :  { %v1479_v61 = vpop.f32.mrb[31].mxu0  ;;  %v1511_v62 = vadd.f32 %v1510_v60, %v1509_v57  ;;  %v1512_v2 = vpop.f32.mrb[30].mxu1 }
 0x142   :  { %v829_v3 = vadd.f32 %v1477_v58, %v2158_v18  ;;  %v1480_v4 = vadd.f32 %v1479_v61, %v1478_v59  ;;  %v1513_v5 = vpop.f32.mrb[31].mxu1  ;;  %v901_v59 = vmax.f32 %v881_v55, 0.0 }
 0x143   :  { %v1514_v7 = vadd.f32 %v1513_v5, %v1512_v2  ;;  %v906_v2 = vmul.f32 %v2177_v11, %v900_v50 }
 0x144   :  { %v832_v8 = vadd.f32 %v1480_v4, %v2158_v18  ;;  %v2258_v9 = vadd.f32 %v1511_v62, %v829_v3 }
 0x145   :  { %v912_v55 = vadd.f32 %v2185_v21, %v906_v2 }
 0x146   :  { %v2260_v10 = vadd.f32 %v1514_v7, %v832_v8  ;;  %v1481_v13 = vpop.f32.mrb[32].mxu0  ;;  %v907_v7 = vmul.f32 %v2177_v11, %v901_v59 }
 0x147   :  { %v1482_v14 = vpop.f32.mrb[33].mxu0  ;;  %v1515_v16 = vpop.f32.mrb[32].mxu1 }
 0x148   :  { %v1483_v17 = vadd.f32 %v1482_v14, %v1481_v13  ;;  %v1484_v19 = vpop.f32.mrb[34].mxu0  ;;  %v1516_v22 = vpop.f32.mrb[33].mxu1 }
 0x149   :  { %v1485_v23 = vpop.f32.mrb[35].mxu0  ;;  %v1517_v24 = vadd.f32 %v1516_v22, %v1515_v16  ;;  %v1518_v0 = vpop.f32.mrb[34].mxu1  ;;  %v902_v22 = vmax.f32 %v2258_v9, 0.0 }
 0x14a   :  { %v837_v25 = vadd.f32 %v1483_v17, %v2158_v18  ;;  %v1486_v28 = vadd.f32 %v1485_v23, %v1484_v19  ;;  %v1519_v34 = vpop.f32.mrb[35].mxu1 }
 0x14b   :  { %v1520_v35 = vadd.f32 %v1519_v34, %v1518_v0  ;;  %v908_v50 = vmul.f32 %v2177_v11, %v902_v22 }
 0x14c   :  { %v840_v36 = vadd.f32 %v1486_v28, %v2158_v18  ;;  %v2264_v37 = vadd.f32 %v1517_v24, %v837_v25 }
 0x14d   :  { %v914_v33 = vadd.f32 %v2185_v21, %v908_v50 }
 0x14e   :  { %v2266_v39 = vadd.f32 %v1520_v35, %v840_v36  ;;  %v904_v38 = vmax.f32 %v2264_v37, 0.0 }
 0x156   :  { %v1537_v40 = vpop.f32.mrb[36].mxu0 }
 0x157   :  { %v1571_v41 = vpop.f32.mrb[36].mxu1  ;;  %v1538_v42 = vpop.f32.mrb[37].mxu0 }
 0x158   :  { %v1539_v44 = vadd.f32 %v1538_v42, %v1537_v40  ;;  %v1572_v45 = vpop.f32.mrb[37].mxu1  ;;  %v1540_v49 = vpop.f32.mrb[38].mxu0  ;;  %v913_v40 = vadd.f32 %v2185_v21, %v907_v7 }
 0x159   :  { %v1573_v51 = vadd.f32 %v1572_v45, %v1571_v41  ;;  %v1574_v54 = vpop.f32.mrb[38].mxu1  ;;  %v1541_v48 = vpop.f32.mrb[39].mxu0  ;;  %v903_v41 = vmax.f32 %v2260_v10, 0.0 }
 0x15a   :  { %v1026_v56 = vadd.f32 %v1539_v44, %v2158_v18  ;;  %v1542_v57 = vadd.f32 %v1541_v48, %v1540_v49  ;;  %v1575_v58 = vpop.f32.mrb[39].mxu1 }
 0x15b   :  { %v1576_v60 = vadd.f32 %v1575_v58, %v1574_v54  ;;  %v909_v58 = vmul.f32 %v2177_v11, %v903_v41 }
 0x15c   :  { %v1083_v61 = vadd.f32 %v1573_v51, %v1026_v56  ;;  %v1029_v62 = vadd.f32 %v1542_v57, %v2158_v18 }
 0x15e   :  { %v1105_v3 = vmax.f32 %v1083_v61, 0.0  ;;  %v1086_v4 = vadd.f32 %v1576_v60, %v1029_v62  ;;  %v1543_v5 = vpop.f32.mrb[40].mxu0 }
 0x15f   :  { %v1577_v53 = vpop.f32.mrb[40].mxu1  ;;  %v1544_v8 = vpop.f32.mrb[41].mxu0 }
 0x160   :  { %v1111_v13 = vmul.f32 %v2177_v11, %v1105_v3  ;;  %v1106_v14 = vmax.f32 %v1086_v4, 0.0  ;;  %v1545_v16 = vadd.f32 %v1544_v8, %v1543_v5  ;;  %v1578_v17 = vpop.f32.mrb[41].mxu1  ;;  %v1546_v19 = vpop.f32.mrb[42].mxu0 }
 0x161   :  { %v1579_v23 = vadd.f32 %v1578_v17, %v1577_v53  ;;  %v1580_v24 = vpop.f32.mrb[42].mxu1  ;;  %v1547_v0 = vpop.f32.mrb[43].mxu0 }
 0x162   :  { %v1117_v25 = vadd.f32 %v2185_v21, %v1111_v13  ;;  %v1112_v28 = vmul.f32 %v2177_v11, %v1106_v14  ;;  %v1034_v34 = vadd.f32 %v1545_v16, %v2158_v18  ;;  %v1548_v35 = vadd.f32 %v1547_v0, %v1546_v19  ;;  %v1581_v36 = vpop.f32.mrb[43].mxu1 }
 0x163   :  { %v1582_v42 = vadd.f32 %v1581_v36, %v1580_v24  ;;  %v915_v16 = vadd.f32 %v2185_v21, %v909_v58 }
 0x164   :  { %v1123_v44 = vmax.f32 %v912_v55, %v1117_v25  ;;  %v1118_v45 = vadd.f32 %v2185_v21, %v1112_v28  ;;  %v1091_v9 = vadd.f32 %v1579_v23, %v1034_v34  ;;  %v1037_v49 = vadd.f32 %v1548_v35, %v2158_v18 }
 0x165   :  { %v905_v55 = vmax.f32 %v2266_v39, 0.0  ;;  %v910_v23 = vmul.f32 %v2177_v11, %v904_v38 }
 0x166   :  { %v1129_v51 = vmax.f32 %v707_v46, %v1123_v44  ;;  %v1124_v54 = vmax.f32 %v913_v40, %v1118_v45  ;;  %v1107_v48 = vmax.f32 %v1091_v9, 0.0  ;;  %v1094_v56 = vadd.f32 %v1582_v42, %v1037_v49  ;;  %v1549_v57 = vpop.f32.mrb[44].mxu0 }
 0x167   :  { %v1583_v10 = vpop.f32.mrb[44].mxu1  ;;  %v1550_v59 = vpop.f32.mrb[45].mxu0  ;;  %v911_v36 = vmul.f32 %v2177_v11, %v905_v55 }
 0x168   :  { %v1130_v60 = vmax.f32 %v708_v52, %v1124_v54  ;;  %v1113_v61 = vmul.f32 %v2177_v11, %v1107_v48  ;;  %v1108_v62 = vmax.f32 %v1094_v56, 0.0  ;;  %v1551_v2 = vadd.f32 %v1550_v59, %v1549_v57  ;;  %v1584_v3 = vpop.f32.mrb[45].mxu1  ;;  %v1552_v4 = vpop.f32.mrb[46].mxu0 }
 0x169   :  { %v1585_v46 = vadd.f32 %v1584_v3, %v1583_v10  ;;  %v1586_v5 = vpop.f32.mrb[46].mxu1  ;;  %v1553_v7 = vpop.f32.mrb[47].mxu0  ;;  %v917_v12 = vadd.f32 %v2185_v21, %v911_v36 }
 0x16a   :  { %v1303_v53 = vpack.c.bf16 %v1130_v60, %v1129_v51  ;;  %v1119_v8 = vadd.f32 %v2185_v21, %v1113_v61  ;;  %v1114_v13 = vmul.f32 %v2177_v11, %v1108_v62  ;;  %v1042_v43 = vadd.f32 %v1551_v2, %v2158_v18  ;;  %v1587_v47 = vpop.f32.mrb[47].mxu1 }
 0x16b   :  { %v1554_v52 = vadd.f32 %v1553_v7, %v1552_v4  ;;  %v1588_v14 = vadd.f32 %v1587_v47, %v1586_v5 }
 0x16c   :  { %1304 = vst [vmem:[%s2334_s5] sm:$0xff] %v1303_v53   ;;  %v1125_v37 = vmax.f32 %v914_v33, %v1119_v8  ;;  %v1120_v17 = vadd.f32 %v2185_v21, %v1114_v13  ;;  %v1099_v19 = vadd.f32 %v1585_v46, %v1042_v43 }
 0x16d   :  { %v1045_v22 = vadd.f32 %v1554_v52, %v2158_v18  ;;  %v916_v18 = vadd.f32 %v2185_v21, %v910_v23 }
 0x16e   :  { %v1131_v24 = vmax.f32 %v709_v63, %v1125_v37  ;;  %v1126_v0 = vmax.f32 %v915_v16, %v1120_v17  ;;  %v1109_v25 = vmax.f32 %v1099_v19, 0.0 }
 0x16f   :  { %v1102_v28 = vadd.f32 %v1588_v14, %v1045_v22 }
 0x170   :  { %v1132_v34 = vmax.f32 %v710_v20, %v1126_v0  ;;  %v1115_v35 = vmul.f32 %v2177_v11, %v1109_v25 }
 0x171   :  { %v1110_v39 = vmax.f32 %v1102_v28, 0.0 }
 0x172   :  { %v1308_v40 = vpack.c.bf16 %v1132_v34, %v1131_v24  ;;  %v1121_v41 = vadd.f32 %v2185_v21, %v1115_v35 }
 0x173   :  { %v1116_v1 = vmul.f32 %v2177_v11, %v1110_v39 }
 0x174   :  { %1315 = vst [vmem:[%s2334_s5 + $0x8] sm:$0xff] %v1308_v40   ;;  %v1127_v6 = vmax.f32 %v916_v18, %v1121_v41 }
 0x175   :  { %v1122_v63 = vadd.f32 %v2185_v21, %v1116_v1 }
 0x176   :  { %v1133_v15 = vmax.f32 %v711_v30, %v1127_v6 }
 0x177   :  { %v1128_v20 = vmax.f32 %v917_v12, %v1122_v63 }
 0x179   :  { %v1134_v42 = vmax.f32 %v712_v32, %v1128_v20 }
 0x17b   :  { %v1313_v44 = vpack.c.bf16 %v1134_v42, %v1133_v15 }
 0x17d   :  { %1316 = vst [vmem:[%s2334_s5 + $0x10] sm:$0xff] %v1313_v44  }

// kernel: actor_forward.5
= control target key start
LH: loop header
LB: loop body
LE: loop exit
PB: predicated region body
PF: predicated region fallthrough
CT: control target
= control target key end

     0   :  { %v145_v29 = vlaneseq  ;;  %v3098_v32 = vmov 1966171168   ;;  %v3099_v36 = vmov 0.0   ;;  %vm3100_vm0 = vmmov 0   ;;  %s4105_s0 = inlined_call_operand.vmem [shape: bf16[4,2,640], index: 0, kind: input, shape index: {}]   ;;  %s4106_s1 = inlined_call_operand.vmem [shape: bf16[640,128], index: 1, kind: input, shape index: {}]   ;;  %s4107_s2 = inlined_call_operand.vmem [shape: f32[1,128], index: 2, kind: input, shape index: {}]   ;;  %s4108_s3 = inlined_call_operand.vmem [shape: f32[1,128], index: 3, kind: input, shape index: {}]   ;;  %s4109_s4 = inlined_call_operand.vmem [shape: f32[1,128], index: 4, kind: input, shape index: {}]   ;;  %s4110_s5 = inlined_call_operand.vmem [shape: bf16[128,512], index: 5, kind: input, shape index: {}]   ;;  %s4111_s6 = inlined_call_operand.vmem [shape: f32[1,512], index: 6, kind: input, shape index: {}]   ;;  %s4112_s7 = inlined_call_operand.vmem [shape: bf16[512,256], index: 7, kind: input, shape index: {}]   ;;  %s4113_s8 = inlined_call_operand.vmem [shape: f32[1,256], index: 8, kind: input, shape index: {}]   ;;  %s4114_s9 = inlined_call_operand.vmem [shape: bf16[256,128], index: 9, kind: input, shape index: {}]   ;;  %s4115_s10 = inlined_call_operand.vmem [shape: f32[1,128], index: 10, kind: input, shape index: {}]   ;;  %s4116_s11 = inlined_call_operand.vmem [shape: bf16[128,128], index: 11, kind: input, shape index: {}]   ;;  %s4117_s12 = inlined_call_operand.vmem [shape: f32[1,128], index: 12, kind: input, shape index: {}]   ;;  %s4118_s13 = inlined_call_operand.vmem [shape: bf16[128,128], index: 13, kind: input, shape index: {}]   ;;  %s4119_s14 = inlined_call_operand.vmem [shape: f32[1,128], index: 14, kind: input, shape index: {}]   ;;  %s4120_s15 = inlined_call_operand.hbm [shape: f32[2,128], index: 15, kind: output, shape index: {}]  }
   0x1   :  { %v3186_v0 = vld [vmem:[%s4106_s1 + $0x40] sm:$0xff]   ;;  %v3209_v4 = vld [vmem:[%s4106_s1 + $0x48] sm:$0xff]   ;;  %v3233_v8 = vld [vmem:[%s4106_s1 + $0x50] sm:$0xff]   ;;  %v143_v33 = vunpack.c.l.s4 %v3098_v32 }
   0x2   :  { %v3191_v1 = vld [vmem:[%s4106_s1] sm:$0xff]   ;;  %2467 = vmatprep.subr.bf16.mxu0 %v3186_v0  ;;  %v3215_v5 = vld [vmem:[%s4106_s1 + $0x8] sm:$0xff]   ;;  %v3239_v9 = vld [vmem:[%s4106_s1 + $0x10] sm:$0xff]   ;;  %v3369_v34 = vshrl.u32 %v145_v29, 7 }
   0x3   :  { %v3197_v2 = vld [vmem:[%s4106_s1 + $0xc0] sm:$0xff]   ;;  %2468 = vmatpush3.bf16.msra.mxu0 %v3191_v1  ;;  %v3221_v6 = vld [vmem:[%s4106_s1 + $0xc8] sm:$0xff]   ;;  %v3245_v10 = vld [vmem:[%s4106_s1 + $0xd0] sm:$0xff]   ;;  %v144_v37 = vunpack.c.0.s8 %v143_v33 }
   0x4   :  { %v3203_v3 = vld [vmem:[%s4106_s1 + $0x80] sm:$0xff]   ;;  %2489 = vmatprep.subr.bf16.mxu1 %v3197_v2  ;;  %2469 = vmatprep.subr.bf16.mxu0 %v3209_v4  ;;  %v3227_v7 = vld [vmem:[%s4106_s1 + $0x88] sm:$0xff]   ;;  %v3251_v11 = vld [vmem:[%s4106_s1 + $0x90] sm:$0xff]  }
   0x5   :  { %2490 = vmatpush3.bf16.msra.mxu1 %v3203_v3  ;;  %v3257_v12 = vld [vmem:[%s4106_s1 + $0x58] sm:$0xff]   ;;  %v3281_v16 = vld [vmem:[%s4106_s1 + $0x60] sm:$0xff]   ;;  %v3305_v20 = vld [vmem:[%s4106_s1 + $0x68] sm:$0xff]   ;;  %v3383_v39 = vsub.s32 %v144_v37, %v3369_v34 }
   0x6   :  { %2491 = vmatprep.subr.bf16.mxu1 %v3221_v6  ;;  %v3263_v13 = vld [vmem:[%s4106_s1 + $0x18] sm:$0xff]   ;;  %v3287_v17 = vld [vmem:[%s4106_s1 + $0x20] sm:$0xff]   ;;  %v3311_v21 = vld [vmem:[%s4106_s1 + $0x28] sm:$0xff]  }
   0x7   :  { %2470 = vmatpush3.bf16.msra.mxu0 %v3215_v5  ;;  %v3269_v14 = vld [vmem:[%s4106_s1 + $0xd8] sm:$0xff]   ;;  %v3293_v18 = vld [vmem:[%s4106_s1 + $0xe0] sm:$0xff]   ;;  %v3317_v22 = vld [vmem:[%s4106_s1 + $0xe8] sm:$0xff]  }
   0x8   :  { %2471 = vmatprep.subr.bf16.mxu0 %v3233_v8  ;;  %v3275_v15 = vld [vmem:[%s4106_s1 + $0x98] sm:$0xff]   ;;  %v3299_v19 = vld [vmem:[%s4106_s1 + $0xa0] sm:$0xff]   ;;  %v3323_v23 = vld [vmem:[%s4106_s1 + $0xa8] sm:$0xff]  }
   0x9   :  { %2492 = vmatpush3.bf16.msra.mxu1 %v3227_v7  ;;  %v3329_v24 = vld [vmem:[%s4106_s1 + $0x70] sm:$0xff]   ;;  %v3353_v28 = vld [vmem:[%s4106_s1 + $0x78] sm:$0xff]   ;;  %v132_v38 = vld [vmem:[%s4105_s0] sm:$0x1f] }
   0xa   :  { %2493 = vmatprep.subr.bf16.mxu1 %v3245_v10  ;;  %v3335_v25 = vld [vmem:[%s4106_s1 + $0x30] sm:$0xff]   ;;  %v3359_v30 = vld [vmem:[%s4106_s1 + $0x38] sm:$0xff]   ;;  %v148_v40 = vrot.slane %v132_v38, %v3383_v39  ;;  %v3390_v43 = vld [vmem:[%s4105_s0 + $0x5] sm:$0x1f]  ;;  %v141_v57 = vcombine.high %v132_v38, %v132_v38 }
   0xb   :  { %2472 = vmatpush3.bf16.msra.mxu0 %v3239_v9  ;;  %v3341_v26 = vld [vmem:[%s4106_s1 + $0xf0] sm:$0xff]   ;;  %v3365_v31 = vld [vmem:[%s4106_s1 + $0xf8] sm:$0xff]   ;;  %v3395_v44 = vld [vmem:[%s4106_s1 + $0x100] sm:$0xff]   ;;  %v572_v45 = vrot.slane %v3390_v43, %v3383_v39 }
   0xc   :  { %2473 = vmatprep.subr.bf16.mxu0 %v3257_v12  ;;  %v3347_v27 = vld [vmem:[%s4106_s1 + $0xb0] sm:$0xff]   ;;  %v3374_v35 = vld [vmem:[%s4106_s1 + $0xb8] sm:$0xff]   ;;  %v156_v41 = vcombine.high %v148_v40, %v148_v40  ;;  %v163_v42 = vrot.slane %v148_v40, %v3383_v39  ;;  %v3403_v50 = vld [vmem:[%s4106_s1 + $0x108] sm:$0xff]   ;;  %v155_v59 = vrot.slane %v141_v57, %v3383_v39 }
   0xd   :  { %2494 = vmatpush3.bf16.msra.mxu1 %v3251_v11  ;;  %v580_v48 = vcombine.high %v572_v45, %v572_v45  ;;  %v3412_v52 = vld [vmem:[%s4106_s1 + $0x110] sm:$0xff]   ;;  %v3423_v53 = vld [vmem:[%s4106_s1 + $0x118] sm:$0xff]   ;;  %v3432_v54 = vld [vmem:[%s4106_s1 + $0x120] sm:$0xff]   ;;  %v587_v62 = vrot.slane %v572_v45, %v3383_v39 }
   0xe   :  { %2495 = vmatprep.subr.bf16.mxu1 %v3269_v14  ;;  %v177_v46 = vrot.slane %v156_v41, %v3383_v39  ;;  %v178_v47 = vcombine.high %v163_v42, %v163_v42  ;;  %v3441_v55 = vld [vmem:[%s4106_s1 + $0x128] sm:$0xff]   ;;  %v3450_v56 = vld [vmem:[%s4106_s1 + $0x130] sm:$0xff]   ;;  %v3459_v58 = vld [vmem:[%s4106_s1 + $0x138] sm:$0xff]   ;;  %v170_v60 = vrot.slane %v155_v59, %v3383_v39 }
   0xf   :  { %2474 = vmatpush3.bf16.msra.mxu0 %v3263_v13  ;;  %v601_v51 = vrot.slane %v580_v48, %v3383_v39  ;;  %v3492_v63 = vld [vmem:[%s4105_s0 + $0xa] sm:$0x1f] }
  0x10   :  { %2475 = vmatprep.subr.bf16.mxu0 %v3281_v16  ;;  %457 = vmatprep.mubr.bf16.mxu0 %v177_v46  ;;  %v179_v49 = vcombine.high %v177_v46, %v177_v46 }
  0x11   :  { %2496 = vmatpush3.bf16.msra.mxu1 %v3275_v15  ;;  %v603_v61 = vcombine.high %v601_v51, %v601_v51 }
  0x12   :  { %2497 = vmatprep.subr.bf16.mxu1 %v3293_v18  ;;  %497 = vmatprep.mubr.bf16.mxu1 %v179_v49 }
  0x13   :  { %2476 = vmatpush3.bf16.msra.mxu0 %v3287_v17 }
  0x14   :  { %2477 = vmatprep.subr.bf16.mxu0 %v3305_v20 }
  0x15   :  { %2498 = vmatpush3.bf16.msra.mxu1 %v3299_v19 }
  0x16   :  { %2499 = vmatprep.subr.bf16.mxu1 %v3317_v22 }
  0x17   :  { %2478 = vmatpush3.bf16.msra.mxu0 %v3311_v21 }
  0x18   :  { %2479 = vmatprep.subr.bf16.mxu0 %v3329_v24 }
  0x19   :  { %2500 = vmatpush3.bf16.msra.mxu1 %v3323_v23 }
  0x1a   :  { %2501 = vmatprep.subr.bf16.mxu1 %v3341_v26 }
  0x1b   :  { %2480 = vmatpush3.bf16.msra.mxu0 %v3335_v25 }
  0x1c   :  { %2481 = vmatprep.subr.bf16.mxu0 %v3353_v28 }
  0x1d   :  { %2502 = vmatpush3.bf16.msra.mxu1 %v3347_v27 }
  0x1e   :  { %2503 = vmatprep.subr.bf16.mxu1 %v3365_v31 }
  0x1f   :  { %2482 = vmatpush3.bf16.msra.mxu0 %v3359_v30 }
  0x20   :  { %2719 = vmatprep.subr.bf16.mxu0 %v3099_v36 }
  0x21   :  { %2504 = vmatpush3.bf16.msra.mxu1 %v3374_v35 }
  0x22   :  { %2520 = vmatprep.subr.bf16.mxu1 %v3186_v0  ;;  %458 = vmatmul.mubr.bf16.vlgmr.msra.gmra.mrb[0].mxu0 %v163_v42 }
  0x23   :  { %2720 = vmatpush3.bf16.msra.mxu0 %v3395_v44  ;;  %2735 = vmatprep.mubr.msk.bf16.mxu0 %vm3100_vm0, %v3099_v36 }
  0x24   :  { %498 = vmatmul.mubr.bf16.vlgmr.msra.gmra.mrb[0].mxu1 %v178_v47  ;;  %2721 = vmatprep.subr.bf16.mxu0 %v3099_v36 }
  0x25   :  { %2521 = vmatpush3.bf16.msra.mxu1 %v3191_v1  ;;  %641 = vmatprep.mubr.bf16.mxu1 %v601_v51 }
  0x26   :  { %2522 = vmatprep.subr.bf16.mxu1 %v3209_v4 }
  0x27   :  { %2722 = vmatpush3.bf16.msra.mxu0 %v3403_v50 }
  0x28   :  { %2723 = vmatprep.subr.bf16.mxu0 %v3099_v36 }
  0x29   :  { %2523 = vmatpush3.bf16.msra.mxu1 %v3215_v5 }
  0x2a   :  { %2524 = vmatprep.subr.bf16.mxu1 %v3233_v8 }
  0x2b   :  { %2724 = vmatpush3.bf16.msra.mxu0 %v3412_v52 }
  0x2c   :  { %2725 = vmatprep.subr.bf16.mxu0 %v3099_v36 }
  0x2d   :  { %2525 = vmatpush3.bf16.msra.mxu1 %v3239_v9 }
  0x2e   :  { %2526 = vmatprep.subr.bf16.mxu1 %v3257_v12 }
  0x2f   :  { %2726 = vmatpush3.bf16.msra.mxu0 %v3423_v53 }
  0x30   :  { %2727 = vmatprep.subr.bf16.mxu0 %v3099_v36 }
  0x31   :  { %2527 = vmatpush3.bf16.msra.mxu1 %v3263_v13 }
  0x32   :  { %2528 = vmatprep.subr.bf16.mxu1 %v3281_v16 }
  0x33   :  { %2728 = vmatpush3.bf16.msra.mxu0 %v3432_v54 }
  0x34   :  { %2729 = vmatprep.subr.bf16.mxu0 %v3099_v36 }
  0x35   :  { %2529 = vmatpush3.bf16.msra.mxu1 %v3287_v17 }
  0x36   :  { %2530 = vmatprep.subr.bf16.mxu1 %v3305_v20 }
  0x37   :  { %2730 = vmatpush3.bf16.msra.mxu0 %v3441_v55 }
  0x38   :  { %2731 = vmatprep.subr.bf16.mxu0 %v3099_v36 }
  0x39   :  { %2531 = vmatpush3.bf16.msra.mxu1 %v3311_v21 }
  0x3a   :  { %2532 = vmatprep.subr.bf16.mxu1 %v3329_v24 }
  0x3b   :  { %2732 = vmatpush3.bf16.msra.mxu0 %v3450_v56 }
  0x3c   :  { %2733 = vmatprep.subr.bf16.mxu0 %v3099_v36 }
  0x3d   :  { %2533 = vmatpush3.bf16.msra.mxu1 %v3335_v25 }
  0x3e   :  { %2534 = vmatprep.subr.bf16.mxu1 %v3353_v28 }
  0x3f   :  { %2734 = vmatpush3.bf16.msra.mxu0 %v3459_v58 }
  0x40   :  { %2542 = vmatprep.subr.bf16.mxu0 %v3197_v2 }
  0x41   :  { %2535 = vmatpush3.bf16.msra.mxu1 %v3359_v30 }
  0x42   :  { %2736 = vmatmul.mubr.bf16.vlgmr.msra.gmra.mrb[4].mxu0 %v170_v60  ;;  %2739 = vmatprep.subr.bf16.mxu1 %v3099_v36 }
  0x43   :  { %2543 = vmatpush3.bf16.msra.mxu0 %v3203_v3  ;;  %681 = vmatprep.mubr.bf16.mxu0 %v603_v61 }
  0x44   :  { %642 = vmatmul.mubr.bf16.vlgmr.msra.gmra.mrb[4].mxu1 %v587_v62  ;;  %2544 = vmatprep.subr.bf16.mxu0 %v3221_v6 }
  0x45   :  { %2740 = vmatpush3.bf16.msra.mxu1 %v3395_v44  ;;  %2755 = vmatprep.mubr.msk.bf16.mxu1 %vm3100_vm0, %v3099_v36 }
  0x46   :  { %2741 = vmatprep.subr.bf16.mxu1 %v3099_v36 }
  0x47   :  { %2545 = vmatpush3.bf16.msra.mxu0 %v3227_v7 }
  0x48   :  { %2546 = vmatprep.subr.bf16.mxu0 %v3245_v10 }
  0x49   :  { %2742 = vmatpush3.bf16.msra.mxu1 %v3403_v50 }
  0x4a   :  { %2743 = vmatprep.subr.bf16.mxu1 %v3099_v36 }
  0x4b   :  { %2547 = vmatpush3.bf16.msra.mxu0 %v3251_v11 }
  0x4c   :  { %2548 = vmatprep.subr.bf16.mxu0 %v3269_v14 }
  0x4d   :  { %2744 = vmatpush3.bf16.msra.mxu1 %v3412_v52 }
  0x4e   :  { %2745 = vmatprep.subr.bf16.mxu1 %v3099_v36 }
  0x4f   :  { %2549 = vmatpush3.bf16.msra.mxu0 %v3275_v15 }
  0x50   :  { %2550 = vmatprep.subr.bf16.mxu0 %v3293_v18 }
  0x51   :  { %2746 = vmatpush3.bf16.msra.mxu1 %v3423_v53 }
  0x52   :  { %2747 = vmatprep.subr.bf16.mxu1 %v3099_v36 }
  0x53   :  { %2551 = vmatpush3.bf16.msra.mxu0 %v3299_v19 }
  0x54   :  { %2552 = vmatprep.subr.bf16.mxu0 %v3317_v22 }
  0x55   :  { %20 = vsyncpa [#allocation3], 0  ;;  %2748 = vmatpush3.bf16.msra.mxu1 %v3432_v54  ;;  %v743_v29 = vrot.slane %v3492_v63, %v3383_v39  ;;  %v565_v32 = vcombine.high %v3390_v43, %v3390_v43  ;;  %v602_v40 = vcombine.high %v587_v62, %v587_v62  ;;  %v3542_v43 = vld [vmem:[%s4105_s0 + $0xf] sm:$0x1f]  ;;  %v2920_v59 = vld [vmem:[%s4110_s5 + $0x84] ss:$16 sps:$4 sm:$0xff]  }
  0x56   :  { %2749 = vmatprep.subr.bf16.mxu1 %v3099_v36  ;;  %v913_v45 = vrot.slane %v3542_v43, %v3383_v39  ;;  %v2917_v51 = vld [vmem:[%s4110_s5 + $0x6c] ss:$16 sps:$4 sm:$0xff]   ;;  %vm2263_vm1 = vcmask 1041408  }
  0x57   :  { %2553 = vmatpush3.bf16.msra.mxu0 %v3323_v23  ;;  %v751_v33 = vcombine.high %v743_v29, %v743_v29  ;;  %v579_v37 = vrot.slane %v565_v32, %v3383_v39  ;;  %v758_v46 = vrot.slane %v743_v29, %v3383_v39  ;;  %v2923_v60 = vld [vmem:[%s4110_s5 + $0x8c] ss:$16 sps:$4 sm:$0xff]  }
  0x58   :  { %2554 = vmatprep.subr.bf16.mxu0 %v3341_v26  ;;  %v921_v47 = vcombine.high %v913_v45, %v913_v45 }
  0x59   :  { %2750 = vmatpush3.bf16.msra.mxu1 %v3441_v55  ;;  %v772_v38 = vrot.slane %v751_v33, %v3383_v39  ;;  %v594_v41 = vrot.slane %v579_v37, %v3383_v39  ;;  %v773_v48 = vcombine.high %v758_v46, %v758_v46  ;;  %v2921_v33 = vld [vmem:[%s4110_s5 + $0x88] ss:$16 sps:$4 sm:$0xff]  }
  0x5a   :  { %2751 = vmatprep.subr.bf16.mxu1 %v3099_v36  ;;  %v942_v49 = vrot.slane %v921_v47, %v3383_v39  ;;  %v2933_v47 = vld [vmem:[%s4110_s5 + $0xc8] ss:$16 sps:$4 sm:$0xff]  }
  0x5b   :  { %2555 = vmatpush3.bf16.msra.mxu0 %v3347_v27  ;;  %v774_v42 = vcombine.high %v772_v38, %v772_v38 }
  0x5c   :  { %2556 = vmatprep.subr.bf16.mxu0 %v3365_v31 }
  0x5d   :  { %2752 = vmatpush3.bf16.msra.mxu1 %v3450_v56 }
  0x5e   :  { %2753 = vmatprep.subr.bf16.mxu1 %v3099_v36 }
  0x5f   :  { %2557 = vmatpush3.bf16.msra.mxu0 %v3374_v35 }
  0x60   :  { %2573 = vmatprep.subr.bf16.mxu0 %v3186_v0 }
  0x61   :  { %2754 = vmatpush3.bf16.msra.mxu1 %v3459_v58 }
  0x62   :  { %682 = vmatmul.mubr.bf16.vlgmr.msra.gmra.mrb[8].mxu0 %v602_v40  ;;  %2595 = vmatprep.subr.bf16.mxu1 %v3197_v2  ;;  %v2929_v40 = vld [vmem:[%s4110_s5 + $0xac] ss:$16 sps:$4 sm:$0xff]  }
  0x63   :  { %2574 = vmatpush3.bf16.msra.mxu0 %v3191_v1  ;;  %812 = vmatprep.mubr.bf16.mxu0 %v772_v38  ;;  %v2926_v38 = vld [vmem:[%s4110_s5 + $0xa4] ss:$16 sps:$4 sm:$0xff]  }
  0x64   :  { %2756 = vmatmul.mubr.bf16.vlgmr.msra.gmra.mrb[8].mxu1 %v594_v41  ;;  %2575 = vmatprep.subr.bf16.mxu0 %v3209_v4  ;;  %v2924_v41 = vld [vmem:[%s4110_s5 + $0xa0] ss:$16 sps:$4 sm:$0xff]  }
  0x65   :  { %2596 = vmatpush3.bf16.msra.mxu1 %v3203_v3  ;;  %852 = vmatprep.mubr.bf16.mxu1 %v774_v42  ;;  %v2927_v42 = vld [vmem:[%s4110_s5 + $0xa8] ss:$16 sps:$4 sm:$0xff]  }
  0x66   :  { %2597 = vmatprep.subr.bf16.mxu1 %v3221_v6 }
  0x67   :  { %2576 = vmatpush3.bf16.msra.mxu0 %v3215_v5 }
  0x68   :  { %2577 = vmatprep.subr.bf16.mxu0 %v3233_v8 }
  0x69   :  { %2598 = vmatpush3.bf16.msra.mxu1 %v3227_v7 }
  0x6a   :  { %2599 = vmatprep.subr.bf16.mxu1 %v3245_v10 }
  0x6b   :  { %2578 = vmatpush3.bf16.msra.mxu0 %v3239_v9 }
  0x6c   :  { %2579 = vmatprep.subr.bf16.mxu0 %v3257_v12 }
  0x6d   :  { %2600 = vmatpush3.bf16.msra.mxu1 %v3251_v11 }
  0x6e   :  { %2601 = vmatprep.subr.bf16.mxu1 %v3269_v14 }
  0x6f   :  { %2580 = vmatpush3.bf16.msra.mxu0 %v3263_v13 }
  0x70   :  { %2581 = vmatprep.subr.bf16.mxu0 %v3281_v16 }
  0x71   :  { %2602 = vmatpush3.bf16.msra.mxu1 %v3275_v15 }
  0x72   :  { %2603 = vmatprep.subr.bf16.mxu1 %v3293_v18 }
  0x73   :  { %2582 = vmatpush3.bf16.msra.mxu0 %v3287_v17 }
  0x74   :  { %2583 = vmatprep.subr.bf16.mxu0 %v3305_v20 }
  0x75   :  { %2604 = vmatpush3.bf16.msra.mxu1 %v3299_v19 }
  0x76   :  { %2605 = vmatprep.subr.bf16.mxu1 %v3317_v22 }
  0x77   :  { %2584 = vmatpush3.bf16.msra.mxu0 %v3311_v21 }
  0x78   :  { %2585 = vmatprep.subr.bf16.mxu0 %v3329_v24 }
  0x79   :  { %2606 = vmatpush3.bf16.msra.mxu1 %v3323_v23 }
  0x7a   :  { %2607 = vmatprep.subr.bf16.mxu1 %v3341_v26 }
  0x7b   :  { %2586 = vmatpush3.bf16.msra.mxu0 %v3335_v25 }
  0x7c   :  { %2587 = vmatprep.subr.bf16.mxu0 %v3353_v28 }
  0x7d   :  { %2608 = vmatpush3.bf16.msra.mxu1 %v3347_v27 }
  0x7e   :  { %2609 = vmatprep.subr.bf16.mxu1 %v3365_v31 }
  0x7f   :  { %2588 = vmatpush3.bf16.msra.mxu0 %v3359_v30 }
  0x80   :  { %2759 = vmatprep.subr.bf16.mxu0 %v3099_v36 }
  0x81   :  { %2610 = vmatpush3.bf16.msra.mxu1 %v3374_v35 }
  0x82   :  { %813 = vmatmul.mubr.bf16.vlgmr.msra.gmra.mrb[12].mxu0 %v758_v46  ;;  %2626 = vmatprep.subr.bf16.mxu1 %v3186_v0  ;;  %v736_v0 = vcombine.high %v3492_v63, %v3492_v63  ;;  %v2918_v63 = vld [vmem:[%s4110_s5 + $0x80] ss:$16 sps:$4 sm:$0xff]  }
  0x83   :  { %2760 = vmatpush3.bf16.msra.mxu0 %v3395_v44  ;;  %2775 = vmatprep.mubr.msk.bf16.mxu0 %vm3100_vm0, %v3099_v36  ;;  %v2930_v46 = vld [vmem:[%s4110_s5 + $0xc0] ss:$16 sps:$4 sm:$0xff]  }
  0x84   :  { %853 = vmatmul.mubr.bf16.vlgmr.msra.gmra.mrb[12].mxu1 %v773_v48  ;;  %2761 = vmatprep.subr.bf16.mxu0 %v3099_v36  ;;  %v2936_v48 = vld [vmem:[%s4110_s5 + $0xe0] ss:$16 sps:$4 sm:$0xff]  }
  0x85   :  { %2627 = vmatpush3.bf16.msra.mxu1 %v3191_v1  ;;  %982 = vmatprep.mubr.bf16.mxu1 %v942_v49  ;;  %v750_v1 = vrot.slane %v736_v0, %v3383_v39  ;;  %v2939_v0 = vld [vmem:[%s4110_s5 + $0xe8] ss:$16 sps:$4 sm:$0xff]  }
  0x86   :  { %2628 = vmatprep.subr.bf16.mxu1 %v3209_v4 }
  0x87   :  { %2762 = vmatpush3.bf16.msra.mxu0 %v3403_v50  ;;  %v765_v4 = vrot.slane %v750_v1, %v3383_v39  ;;  %v2941_v1 = vld [vmem:[%s4110_s5 + $0xec] ss:$16 sps:$4 sm:$0xff]  }
  0x88   :  { %2763 = vmatprep.subr.bf16.mxu0 %v3099_v36 }
  0x89   :  { %2629 = vmatpush3.bf16.msra.mxu1 %v3215_v5  ;;  %v944_v5 = vcombine.high %v942_v49, %v942_v49  ;;  %v2938_v49 = vld [vmem:[%s4110_s5 + $0xe4] ss:$16 sps:$4 sm:$0xff]  }
  0x8a   :  { %2630 = vmatprep.subr.bf16.mxu1 %v3233_v8  ;;  %v928_v8 = vrot.slane %v913_v45, %v3383_v39  ;;  %v2935_v45 = vld [vmem:[%s4110_s5 + $0xcc] ss:$16 sps:$4 sm:$0xff]  }
  0x8b   :  { %2764 = vmatpush3.bf16.msra.mxu0 %v3412_v52 }
  0x8c   :  { %2765 = vmatprep.subr.bf16.mxu0 %v3099_v36 }
  0x8d   :  { %2631 = vmatpush3.bf16.msra.mxu1 %v3239_v9 }
  0x8e   :  { %2632 = vmatprep.subr.bf16.mxu1 %v3257_v12 }
  0x8f   :  { %2766 = vmatpush3.bf16.msra.mxu0 %v3423_v53 }
  0x90   :  { %2767 = vmatprep.subr.bf16.mxu0 %v3099_v36 }
  0x91   :  { %2633 = vmatpush3.bf16.msra.mxu1 %v3263_v13 }
  0x92   :  { %2634 = vmatprep.subr.bf16.mxu1 %v3281_v16 }
  0x93   :  { %2768 = vmatpush3.bf16.msra.mxu0 %v3432_v54 }
  0x94   :  { %2769 = vmatprep.subr.bf16.mxu0 %v3099_v36 }
  0x95   :  { %2635 = vmatpush3.bf16.msra.mxu1 %v3287_v17 }
  0x96   :  { %2636 = vmatprep.subr.bf16.mxu1 %v3305_v20 }
  0x97   :  { %2770 = vmatpush3.bf16.msra.mxu0 %v3441_v55 }
  0x98   :  { %2771 = vmatprep.subr.bf16.mxu0 %v3099_v36 }
  0x99   :  { %2637 = vmatpush3.bf16.msra.mxu1 %v3311_v21 }
  0x9a   :  { %2638 = vmatprep.subr.bf16.mxu1 %v3329_v24  ;;  %v2897_v24 = vld [vmem:[%s4110_s5 + $0x8] ss:$16 sps:$4 sm:$0xff]  }
  0x9b   :  { %2772 = vmatpush3.bf16.msra.mxu0 %v3450_v56 }
  0x9c   :  { %2773 = vmatprep.subr.bf16.mxu0 %v3099_v36 }
  0x9d   :  { %2639 = vmatpush3.bf16.msra.mxu1 %v3335_v25  ;;  %v2899_v25 = vld [vmem:[%s4110_s5 + $0xc] ss:$16 sps:$4 sm:$0xff]  }
  0x9e   :  { %2640 = vmatprep.subr.bf16.mxu1 %v3353_v28  ;;  %v2900_v28 = vld [vmem:[%s4110_s5 + $0x20] ss:$16 sps:$4 sm:$0xff]  }
  0x9f   :  { %2774 = vmatpush3.bf16.msra.mxu0 %v3459_v58 }
  0xa0   :  { %2648 = vmatprep.subr.bf16.mxu0 %v3197_v2  ;;  %v906_v2 = vcombine.high %v3542_v43, %v3542_v43  ;;  %v2932_v43 = vld [vmem:[%s4110_s5 + $0xc4] ss:$16 sps:$4 sm:$0xff]  }
  0xa1   :  { %2641 = vmatpush3.bf16.msra.mxu1 %v3359_v30  ;;  %v2903_v30 = vld [vmem:[%s4110_s5 + $0x28] ss:$16 sps:$4 sm:$0xff]  }
  0xa2   :  { %2776 = vmatmul.mubr.bf16.vlgmr.msra.gmra.mrb[16].mxu0 %v765_v4  ;;  %2779 = vmatprep.subr.bf16.mxu1 %v3099_v36  ;;  %v3101_v4 = vmov 0  }
  0xa3   :  { %2649 = vmatpush3.bf16.msra.mxu0 %v3203_v3  ;;  %1022 = vmatprep.mubr.bf16.mxu0 %v944_v5  ;;  %v920_v3 = vrot.slane %v906_v2, %v3383_v39  ;;  %v2944_v5 = vld [vmem:[%s4112_s7 + $0x4] ss:$8 sps:$4 sm:$0xff]  }
  0xa4   :  { %983 = vmatmul.mubr.bf16.vlgmr.msra.gmra.mrb[16].mxu1 %v928_v8  ;;  %2650 = vmatprep.subr.bf16.mxu0 %v3221_v6  ;;  %v943_v6 = vcombine.high %v928_v8, %v928_v8 }
  0xa5   :  { %2780 = vmatpush3.bf16.msra.mxu1 %v3395_v44  ;;  %2795 = vmatprep.mubr.msk.bf16.mxu1 %vm3100_vm0, %v3099_v36  ;;  %v2909_v44 = vld [vmem:[%s4110_s5 + $0x48] ss:$16 sps:$4 sm:$0xff]  }
  0xa6   :  { %2781 = vmatprep.subr.bf16.mxu1 %v3099_v36 }
  0xa7   :  { %2651 = vmatpush3.bf16.msra.mxu0 %v3227_v7  ;;  %v935_v7 = vrot.slane %v920_v3, %v3383_v39  ;;  %v2906_v39 = vld [vmem:[%s4110_s5 + $0x40] ss:$16 sps:$4 sm:$0xff]  }
  0xa8   :  { %2652 = vmatprep.subr.bf16.mxu0 %v3245_v10  ;;  %v3638_v10 = vld [vmem:[%s4107_s2] ss:$0 sm:$0xff] }
  0xa9   :  { %2782 = vmatpush3.bf16.msra.mxu1 %v3403_v50  ;;  %v2914_v50 = vld [vmem:[%s4110_s5 + $0x64] ss:$16 sps:$4 sm:$0xff]  }
  0xaa   :  { %2783 = vmatprep.subr.bf16.mxu1 %v3099_v36 }
  0xab   :  { %2653 = vmatpush3.bf16.msra.mxu0 %v3251_v11 }
  0xac   :  { %2654 = vmatprep.subr.bf16.mxu0 %v3269_v14 }
  0xad   :  { %2784 = vmatpush3.bf16.msra.mxu1 %v3412_v52  ;;  %v2912_v52 = vld [vmem:[%s4110_s5 + $0x60] ss:$16 sps:$4 sm:$0xff]  }
  0xae   :  { %2785 = vmatprep.subr.bf16.mxu1 %v3099_v36 }
  0xaf   :  { %2655 = vmatpush3.bf16.msra.mxu0 %v3275_v15 }
  0xb0   :  { %2656 = vmatprep.subr.bf16.mxu0 %v3293_v18 }
  0xb1   :  { %2786 = vmatpush3.bf16.msra.mxu1 %v3423_v53  ;;  %v2915_v53 = vld [vmem:[%s4110_s5 + $0x68] ss:$16 sps:$4 sm:$0xff]  }
  0xb2   :  { %2787 = vmatprep.subr.bf16.mxu1 %v3099_v36 }
  0xb3   :  { %2657 = vmatpush3.bf16.msra.mxu0 %v3299_v19 }
  0xb4   :  { %2658 = vmatprep.subr.bf16.mxu0 %v3317_v22  ;;  %v2894_v22 = vld [vmem:[%s4110_s5] ss:$16 sps:$4 sm:$0xff]  }
  0xb5   :  { %2788 = vmatpush3.bf16.msra.mxu1 %v3432_v54 }
  0xb6   :  { %2789 = vmatprep.subr.bf16.mxu1 %v3099_v36 }
  0xb7   :  { %2659 = vmatpush3.bf16.msra.mxu0 %v3323_v23  ;;  %v2896_v23 = vld [vmem:[%s4110_s5 + $0x4] ss:$16 sps:$4 sm:$0xff]  }
  0xb8   :  { %2660 = vmatprep.subr.bf16.mxu0 %v3341_v26  ;;  %v2902_v26 = vld [vmem:[%s4110_s5 + $0x24] ss:$16 sps:$4 sm:$0xff]  }
  0xb9   :  { %2790 = vmatpush3.bf16.msra.mxu1 %v3441_v55 }
  0xba   :  { %2791 = vmatprep.subr.bf16.mxu1 %v3099_v36 }
  0xbb   :  { %2661 = vmatpush3.bf16.msra.mxu0 %v3347_v27  ;;  %v2905_v27 = vld [vmem:[%s4110_s5 + $0x2c] ss:$16 sps:$4 sm:$0xff]  }
  0xbc   :  { %2662 = vmatprep.subr.bf16.mxu0 %v3365_v31  ;;  %v2908_v31 = vld [vmem:[%s4110_s5 + $0x44] ss:$16 sps:$4 sm:$0xff]  }
  0xbd   :  { %2792 = vmatpush3.bf16.msra.mxu1 %v3450_v56 }
  0xbe   :  { %2793 = vmatprep.subr.bf16.mxu1 %v3099_v36 }
  0xbf   :  { %2663 = vmatpush3.bf16.msra.mxu0 %v3374_v35  ;;  %v2911_v35 = vld [vmem:[%s4110_s5 + $0x4c] ss:$16 sps:$4 sm:$0xff]  }
  0xc0   :  { %1290 = vmatprep.subr.bf16.mxu0 %v2896_v23 }
  0xc1   :  { %2794 = vmatpush3.bf16.msra.mxu1 %v3459_v58 }
  0xc2   :  { %1023 = vmatmul.mubr.bf16.vlgmr.msra.gmra.mrb[20].mxu0 %v943_v6  ;;  %1331 = vmatprep.subr.bf16.mxu1 %v2899_v25 }
  0xc3   :  { %1291 = vmatpush1.bf16.msra.mxu0 %v2894_v22  ;;  %1322 = vmatprep.mubr.bf16.mxu0 %v3101_v4 }
  0xc4   :  { %2796 = vmatmul.mubr.bf16.vlgmr.msra.gmra.mrb[20].mxu1 %v935_v7  ;;  %1292 = vmatprep.subr.bf16.mxu0 %v2902_v26 }
  0xc5   :  { %1332 = vmatpush1.bf16.msra.mxu1 %v2897_v24  ;;  %1363 = vmatprep.mubr.bf16.mxu1 %v3101_v4 }
  0xc6   :  { %1333 = vmatprep.subr.bf16.mxu1 %v2905_v27 }
  0xc7   :  { %1293 = vmatpush1.bf16.msra.mxu0 %v2900_v28 }
  0xc8   :  { %1294 = vmatprep.subr.bf16.mxu0 %v2908_v31 }
  0xc9   :  { %1334 = vmatpush1.bf16.msra.mxu1 %v2903_v30 }
  0xca   :  { %1335 = vmatprep.subr.bf16.mxu1 %v2911_v35 }
  0xcb   :  { %1295 = vmatpush1.bf16.msra.mxu0 %v2906_v39 }
  0xcc   :  { %1296 = vmatprep.subr.bf16.mxu0 %v2914_v50 }
  0xcd   :  { %1336 = vmatpush1.bf16.msra.mxu1 %v2909_v44 }
  0xce   :  { %1337 = vmatprep.subr.bf16.mxu1 %v2917_v51 }
  0xcf   :  { %1297 = vmatpush1.bf16.msra.mxu0 %v2912_v52 }
  0xd0   :  { %1298 = vmatprep.subr.bf16.mxu0 %v2920_v59 }
  0xd1   :  { %1338 = vmatpush1.bf16.msra.mxu1 %v2915_v53 }
  0xd2   :  { %1339 = vmatprep.subr.bf16.mxu1 %v2923_v60 }
  0xd3   :  { %1299 = vmatpush1.bf16.msra.mxu0 %v2918_v63 }
  0xd4   :  { %1300 = vmatprep.subr.bf16.mxu0 %v2926_v38 }
  0xd5   :  { %1340 = vmatpush1.bf16.msra.mxu1 %v2921_v33 }
  0xd6   :  { %1341 = vmatprep.subr.bf16.mxu1 %v2929_v40 }
  0xd7   :  { %1301 = vmatpush1.bf16.msra.mxu0 %v2924_v41 }
  0xd8   :  { %1302 = vmatprep.subr.bf16.mxu0 %v2932_v43 }
  0xd9   :  { %1342 = vmatpush1.bf16.msra.mxu1 %v2927_v42 }
  0xda   :  { %1343 = vmatprep.subr.bf16.mxu1 %v2935_v45 }
  0xdb   :  { %1303 = vmatpush1.bf16.msra.mxu0 %v2930_v46 }
  0xdc   :  { %1304 = vmatprep.subr.bf16.mxu0 %v2938_v49 }
  0xdd   :  { %1344 = vmatpush1.bf16.msra.mxu1 %v2933_v47 }
  0xde   :  { %1345 = vmatprep.subr.bf16.mxu1 %v2941_v1 }
  0xdf   :  { %1305 = vmatpush1.bf16.msra.mxu0 %v2936_v48 }
  0xe0   :  { %1776 = vmatprep.subr.bf16.mxu0 %v2944_v5 }
  0xe1   :  { %1346 = vmatpush1.bf16.msra.mxu1 %v2939_v0 }
  0xf5   :  { %v2483_v9 = vpop.f32.mrb[0].mxu0 }
  0xf6   :  { %v2484_v11 = vpop.f32.mrb[1].mxu0 }
  0xf7   :  { %v2485_v12 = vadd.f32 %v2484_v11, %v2483_v9  ;;  %v2486_v13 = vpop.f32.mrb[2].mxu0  ;;  %v2505_v14 = vpop.f32.mrb[0].mxu1 }
  0xf8   :  { %v2487_v15 = vpop.f32.mrb[3].mxu0  ;;  %v2506_v16 = vpop.f32.mrb[1].mxu1 }
  0xf9   :  { %v460_v17 = vadd.f32 %v2485_v12, %v3638_v10  ;;  %v2507_v18 = vadd.f32 %v2506_v16, %v2505_v14  ;;  %v2508_v19 = vpop.f32.mrb[2].mxu1  ;;  %v2331_v16 = vld [vmem:[%s4108_s3] ss:$0 sm:$0xff] }
  0xfa   :  { %v2509_v20 = vpop.f32.mrb[3].mxu1 }
  0xfb   :  { %v500_v21 = vadd.f32 %v2507_v18, %v460_v17 }
 0x115   :  { %v539_v54 = vpop.f32.mrb[4].mxu0 }
 0x116   :  { %v3689_v55 = vadd.f32 %v539_v54, %v500_v21  ;;  %v2737_v56 = vpop.f32.mrb[5].mxu0  ;;  %v2332_v21 = vld [vmem:[%s4109_s4] ss:$0 sm:$0xff] }
 0x117   :  { %v542_v57 = vpop.f32.mrb[6].mxu0  ;;  %v2536_v58 = vpop.f32.mrb[4].mxu1 }
 0x118   :  { %v2738_v61 = vpop.f32.mrb[7].mxu0  ;;  %v2537_v62 = vpop.f32.mrb[5].mxu1  ;;  %v545_v13 = vmax.f32 %v3689_v55, 0.0 }
 0x119   :  { %v2538_v29 = vadd.f32 %v2537_v62, %v2536_v58  ;;  %v2539_v32 = vpop.f32.mrb[6].mxu1 }
 0x11a   :  { %v2540_v37 = vpop.f32.mrb[7].mxu1  ;;  %v553_v19 = vmul.f32 %v2331_v16, %v545_v13  ;;  %v2951_v13 = vld [vmem:[%s4112_s7 + $0x30] ss:$8 sps:$4 sm:$0xff]  }
 0x11b   :  { %v644_v3 = vadd.f32 %v2538_v29, %v3638_v10 }
 0x11c   :  { %v561_v23 = vadd.f32 %v2332_v21, %v553_v19  ;;  %v2960_v19 = vld [vmem:[%s4112_s7 + $0x60] ss:$8 sps:$4 sm:$0xff]  }
 0x135   :  { %v2558_v8 = vpop.f32.mrb[8].mxu0 }
 0x136   :  { %v2559_v2 = vpop.f32.mrb[9].mxu0 }
 0x137   :  { %v2560_v6 = vadd.f32 %v2559_v2, %v2558_v8  ;;  %v2561_v7 = vpop.f32.mrb[10].mxu0  ;;  %v723_v9 = vpop.f32.mrb[8].mxu1 }
 0x138   :  { %v2562_v11 = vpop.f32.mrb[11].mxu0  ;;  %v2757_v12 = vpop.f32.mrb[9].mxu1  ;;  %v2945_v7 = vld [vmem:[%s4112_s7 + $0x10] ss:$8 sps:$4 sm:$0xff]  }
 0x139   :  { %v684_v14 = vadd.f32 %v2560_v6, %v644_v3  ;;  %v726_v15 = vpop.f32.mrb[10].mxu1  ;;  %v2947_v6 = vld [vmem:[%s4112_s7 + $0x14] ss:$8 sps:$4 sm:$0xff]   ;;  %v2948_v11 = vld [vmem:[%s4112_s7 + $0x20] ss:$8 sps:$4 sm:$0xff]  }
 0x13a   :  { %v2758_v17 = vpop.f32.mrb[11].mxu1  ;;  %v2953_v12 = vld [vmem:[%s4112_s7 + $0x34] ss:$8 sps:$4 sm:$0xff]   ;;  %v2954_v15 = vld [vmem:[%s4112_s7 + $0x40] ss:$8 sps:$4 sm:$0xff]  }
 0x13b   :  { %v724_v18 = vadd.f32 %v723_v9, %v684_v14  ;;  %v2950_v9 = vld [vmem:[%s4112_s7 + $0x24] ss:$8 sps:$4 sm:$0xff]   ;;  %v2957_v17 = vld [vmem:[%s4112_s7 + $0x50] ss:$8 sps:$4 sm:$0xff]  }
 0x13c   :  { %v2956_v14 = vld [vmem:[%s4112_s7 + $0x44] ss:$8 sps:$4 sm:$0xff]  }
 0x13d   :  { %v729_v20 = vmax.f32 %v724_v18, 0.0  ;;  %v2962_v18 = vld [vmem:[%s4112_s7 + $0x64] ss:$8 sps:$4 sm:$0xff]  }
 0x13f   :  { %v730_v22 = vmul.f32 %v2331_v16, %v729_v20  ;;  %v2965_v20 = vld [vmem:[%s4112_s7 + $0x74] ss:$8 sps:$4 sm:$0xff]  }
 0x141   :  { %v731_v24 = vadd.f32 %v2332_v21, %v730_v22  ;;  %v2968_v22 = vld [vmem:[%s4112_s7 + $0x84] ss:$8 sps:$4 sm:$0xff]  }
 0x143   :  { %v732_v25 = vmax.f32 %v561_v23, %v731_v24  ;;  %v2966_v23 = vld [vmem:[%s4112_s7 + $0x80] ss:$8 sps:$4 sm:$0xff]   ;;  %v2971_v24 = vld [vmem:[%s4112_s7 + $0x94] ss:$8 sps:$4 sm:$0xff]  }
 0x155   :  { %v2589_v26 = vpop.f32.mrb[12].mxu0 }
 0x156   :  { %v2590_v27 = vpop.f32.mrb[13].mxu0 }
 0x157   :  { %v2591_v28 = vadd.f32 %v2590_v27, %v2589_v26  ;;  %v2592_v30 = vpop.f32.mrb[14].mxu0  ;;  %v2611_v31 = vpop.f32.mrb[12].mxu1  ;;  %v2974_v26 = vld [vmem:[%s4112_s7 + $0xa4] ss:$8 sps:$4 sm:$0xff]   ;;  %v2972_v27 = vld [vmem:[%s4112_s7 + $0xa0] ss:$8 sps:$4 sm:$0xff]  }
 0x158   :  { %v2593_v35 = vpop.f32.mrb[15].mxu0  ;;  %v2612_v39 = vpop.f32.mrb[13].mxu1  ;;  %v2975_v30 = vld [vmem:[%s4112_s7 + $0xb0] ss:$8 sps:$4 sm:$0xff]  }
 0x159   :  { %v815_v44 = vadd.f32 %v2591_v28, %v3638_v10  ;;  %v2613_v50 = vadd.f32 %v2612_v39, %v2611_v31  ;;  %v2614_v51 = vpop.f32.mrb[14].mxu1  ;;  %v2977_v28 = vld [vmem:[%s4112_s7 + $0xb4] ss:$8 sps:$4 sm:$0xff]   ;;  %v2980_v31 = vld [vmem:[%s4112_s7 + $0xc4] ss:$8 sps:$4 sm:$0xff]  }
 0x15a   :  { %v2615_v52 = vpop.f32.mrb[15].mxu1  ;;  %v2978_v35 = vld [vmem:[%s4112_s7 + $0xc0] ss:$8 sps:$4 sm:$0xff]   ;;  %v2983_v39 = vld [vmem:[%s4112_s7 + $0xd4] ss:$8 sps:$4 sm:$0xff]  }
 0x15b   :  { %v855_v53 = vadd.f32 %v2613_v50, %v815_v44  ;;  %v2981_v44 = vld [vmem:[%s4112_s7 + $0xd0] ss:$8 sps:$4 sm:$0xff]   ;;  %v2986_v50 = vld [vmem:[%s4112_s7 + $0xe4] ss:$8 sps:$4 sm:$0xff]   ;;  %v2984_v51 = vld [vmem:[%s4112_s7 + $0xe0] ss:$8 sps:$4 sm:$0xff]  }
 0x15c   :  { %v2989_v52 = vld [vmem:[%s4112_s7 + $0xf4] ss:$8 sps:$4 sm:$0xff]  }
 0x175   :  { %v894_v54 = vpop.f32.mrb[16].mxu0 }
 0x176   :  { %v895_v55 = vadd.f32 %v894_v54, %v855_v53  ;;  %v2777_v56 = vpop.f32.mrb[17].mxu0  ;;  %v2987_v53 = vld [vmem:[%s4112_s7 + $0xf0] ss:$8 sps:$4 sm:$0xff]   ;;  %v2992_v54 = vld [vmem:[%s4112_s7 + $0x104] ss:$8 sps:$4 sm:$0xff]  }
 0x177   :  { %v897_v57 = vpop.f32.mrb[18].mxu0  ;;  %v2642_v58 = vpop.f32.mrb[16].mxu1  ;;  %v3039_v56 = vld [vmem:[%s4114_s9] sm:$0xff]  }
 0x178   :  { %v2778_v59 = vpop.f32.mrb[19].mxu0  ;;  %v2643_v60 = vpop.f32.mrb[17].mxu1  ;;  %v900_v43 = vmax.f32 %v895_v55, 0.0  ;;  %v3038_v55 = vld [vmem:[%s4114_s9 + $0x40] sm:$0xff]   ;;  %v3040_v57 = vld [vmem:[%s4114_s9 + $0x48] sm:$0xff]  }
 0x179   :  { %v2644_v61 = vadd.f32 %v2643_v60, %v2642_v58  ;;  %v2645_v62 = vpop.f32.mrb[18].mxu1  ;;  %2679 = vmatprep.subr.bf16.mxu1 %v3038_v55  ;;  %v3041_v58 = vld [vmem:[%s4114_s9 + $0x8] sm:$0xff]   ;;  %v3042_v59 = vld [vmem:[%s4114_s9 + $0x50] sm:$0xff]  }
 0x17a   :  { %v2646_v63 = vpop.f32.mrb[19].mxu1  ;;  %v901_v49 = vmul.f32 %v2331_v16, %v900_v43  ;;  %v3043_v60 = vld [vmem:[%s4114_s9 + $0x10] sm:$0xff]   ;;  %v3045_v62 = vld [vmem:[%s4114_s9 + $0x18] sm:$0xff]  }
 0x17b   :  { %v985_v33 = vadd.f32 %v2644_v61, %v3638_v10  ;;  %v2942_v10 = vld [vmem:[%s4112_s7] ss:$8 sps:$4 sm:$0xff]   ;;  %v3044_v61 = vld [vmem:[%s4114_s9 + $0x58] sm:$0xff]  }
 0x17c   :  { %v902_v4 = vadd.f32 %v2332_v21, %v901_v49  ;;  %v3046_v63 = vld [vmem:[%s4114_s9 + $0x60] sm:$0xff]   ;;  %v3031_v55 = vld [vmem:[%s4112_s7 + $0x1d4] ss:$8 sps:$4 sm:$0xff]  }
 0x195   :  { %v2664_v29 = vpop.f32.mrb[20].mxu0 }
 0x196   :  { %v2665_v32 = vpop.f32.mrb[21].mxu0 }
 0x197   :  { %v2666_v37 = vadd.f32 %v2665_v32, %v2664_v29  ;;  %v2667_v38 = vpop.f32.mrb[22].mxu0  ;;  %v1064_v40 = vpop.f32.mrb[20].mxu1  ;;  %v3047_v29 = vld [vmem:[%s4114_s9 + $0x20] sm:$0xff]   ;;  %v3048_v32 = vld [vmem:[%s4114_s9 + $0x68] sm:$0xff]  }
 0x198   :  { %v2668_v41 = vpop.f32.mrb[23].mxu0  ;;  %v2797_v42 = vpop.f32.mrb[21].mxu1  ;;  %v3888_v38 = vld [vmem:[%s4111_s6] sm:$0xf] }
 0x199   :  { %v1025_v45 = vadd.f32 %v2666_v37, %v985_v33  ;;  %v1067_v46 = vpop.f32.mrb[22].mxu1  ;;  %v3049_v33 = vld [vmem:[%s4114_s9 + $0x28] sm:$0xff]   ;;  %v1112_v37 = vsub.s32 0, %v3369_v34  ;;  %v1124_v41 = vsub.s32 3, %v3369_v34 }
 0x19a   :  { %v2798_v47 = vpop.f32.mrb[23].mxu1 }
 0x19b   :  { %v1065_v48 = vadd.f32 %v1064_v40, %v1025_v45  ;;  %v1116_v40 = vsub.s32 1, %v3369_v34  ;;  %v1113_v42 = vrot.slane %v3888_v38, %v1112_v37  ;;  %v1125_v45 = vrot.slane %v3888_v38, %v1124_v41  ;;  %v3053_v41 = vld [vmem:[%s4114_s9 + $0x38] sm:$0xff]  }
 0x19d   :  { %v1070_v0 = vmax.f32 %v1065_v48, 0.0  ;;  %v1117_v43 = vrot.slane %v3888_v38, %v1116_v40 }
 0x19f   :  { %v1071_v1 = vmul.f32 %v2331_v16, %v1070_v0  ;;  %v2959_v16 = vld [vmem:[%s4112_s7 + $0x54] ss:$8 sps:$4 sm:$0xff]  }
 0x1a1   :  { %v1072_v5 = vadd.f32 %v2332_v21, %v1071_v1  ;;  %v2963_v21 = vld [vmem:[%s4112_s7 + $0x70] ss:$8 sps:$4 sm:$0xff]  }
 0x1a3   :  { %v1073_v8 = vmax.f32 %v902_v4, %v1072_v5 }
 0x1a5   :  { %v1074_v2 = vmax.f32 %v732_v25, %v1073_v8  ;;  %v2969_v25 = vld [vmem:[%s4112_s7 + $0x90] ss:$8 sps:$4 sm:$0xff]  }
 0x1a7   :  { %v1075_v3 = vpack.c.bf16 %v1074_v2, %v1074_v2 }
 0x1a9   :  { %1323 = vmatmul.mubr.bf16.vlgmr.msra.gmra.mrb[24].mxu0 %v1075_v3  ;;  %1364 = vmatmul.mubr.bf16.vlgmr.msra.gmra.mrb[24].mxu1 %v1075_v3 }
 0x1aa   :  { %1777 = vmatpush1.bf16.msra.mxu0 %v2942_v10  ;;  %2680 = vmatpush3.bf16.msra.mxu1 %v3039_v56  ;;  %v3029_v56 = vld [vmem:[%s4112_s7 + $0x1d0] ss:$8 sps:$4 sm:$0xff]  }
 0x1ab   :  { %1778 = vmatprep.subr.bf16.mxu0 %v2947_v6  ;;  %2681 = vmatprep.subr.bf16.mxu1 %v3040_v57 }
 0x1ae   :  { %1779 = vmatpush1.bf16.msra.mxu0 %v2945_v7  ;;  %2682 = vmatpush3.bf16.msra.mxu1 %v3041_v58  ;;  %v3034_v58 = vld [vmem:[%s4112_s7 + $0x1e4] ss:$8 sps:$4 sm:$0xff]  }
 0x1af   :  { %1780 = vmatprep.subr.bf16.mxu0 %v2950_v9  ;;  %2683 = vmatprep.subr.bf16.mxu1 %v3042_v59  ;;  %v3032_v59 = vld [vmem:[%s4112_s7 + $0x1e0] ss:$8 sps:$4 sm:$0xff]  }
 0x1b2   :  { %1781 = vmatpush1.bf16.msra.mxu0 %v2948_v11  ;;  %2684 = vmatpush3.bf16.msra.mxu1 %v3043_v60  ;;  %v2990_v11 = vld [vmem:[%s4112_s7 + $0x100] ss:$8 sps:$4 sm:$0xff]  }
 0x1b3   :  { %1782 = vmatprep.subr.bf16.mxu0 %v2953_v12  ;;  %2685 = vmatprep.subr.bf16.mxu1 %v3044_v61  ;;  %v3037_v61 = vld [vmem:[%s4112_s7 + $0x1f4] ss:$8 sps:$4 sm:$0xff]  }
 0x1b6   :  { %1783 = vmatpush1.bf16.msra.mxu0 %v2951_v13  ;;  %2686 = vmatpush3.bf16.msra.mxu1 %v3045_v62  ;;  %v2995_v13 = vld [vmem:[%s4112_s7 + $0x114] ss:$8 sps:$4 sm:$0xff]   ;;  %v3035_v62 = vld [vmem:[%s4112_s7 + $0x1f0] ss:$8 sps:$4 sm:$0xff]  }
 0x1b7   :  { %1784 = vmatprep.subr.bf16.mxu0 %v2956_v14  ;;  %2687 = vmatprep.subr.bf16.mxu1 %v3046_v63 }
 0x1ba   :  { %1785 = vmatpush1.bf16.msra.mxu0 %v2954_v15  ;;  %2688 = vmatpush3.bf16.msra.mxu1 %v3047_v29  ;;  %v2993_v15 = vld [vmem:[%s4112_s7 + $0x110] ss:$8 sps:$4 sm:$0xff]  }
 0x1bb   :  { %1786 = vmatprep.subr.bf16.mxu0 %v2959_v16  ;;  %2689 = vmatprep.subr.bf16.mxu1 %v3048_v32  ;;  %v2998_v16 = vld [vmem:[%s4112_s7 + $0x124] ss:$8 sps:$4 sm:$0xff]   ;;  %v3050_v32 = vld [vmem:[%s4114_s9 + $0x70] sm:$0xff]  }
 0x1be   :  { %1787 = vmatpush1.bf16.msra.mxu0 %v2957_v17  ;;  %2690 = vmatpush3.bf16.msra.mxu1 %v3049_v33  ;;  %v2996_v17 = vld [vmem:[%s4112_s7 + $0x120] ss:$8 sps:$4 sm:$0xff]   ;;  %v3051_v33 = vld [vmem:[%s4114_s9 + $0x30] sm:$0xff]  }
 0x1bf   :  { %1788 = vmatprep.subr.bf16.mxu0 %v2962_v18  ;;  %v3001_v18 = vld [vmem:[%s4112_s7 + $0x134] ss:$8 sps:$4 sm:$0xff]   ;;  %2691 = vmatprep.subr.bf16.mxu1 %v3050_v32 }
 0x1c2   :  { %1789 = vmatpush1.bf16.msra.mxu0 %v2960_v19  ;;  %v2999_v19 = vld [vmem:[%s4112_s7 + $0x130] ss:$8 sps:$4 sm:$0xff]   ;;  %2692 = vmatpush3.bf16.msra.mxu1 %v3051_v33 }
 0x1c3   :  { %1790 = vmatprep.subr.bf16.mxu0 %v2965_v20  ;;  %v3004_v20 = vld [vmem:[%s4112_s7 + $0x144] ss:$8 sps:$4 sm:$0xff]  }
 0x1c6   :  { %1791 = vmatpush1.bf16.msra.mxu0 %v2963_v21  ;;  %v3002_v21 = vld [vmem:[%s4112_s7 + $0x140] ss:$8 sps:$4 sm:$0xff]  }
 0x1c7   :  { %1792 = vmatprep.subr.bf16.mxu0 %v2968_v22  ;;  %v3007_v22 = vld [vmem:[%s4112_s7 + $0x154] ss:$8 sps:$4 sm:$0xff]  }
 0x1ca   :  { %1793 = vmatpush1.bf16.msra.mxu0 %v2966_v23  ;;  %v3005_v23 = vld [vmem:[%s4112_s7 + $0x150] ss:$8 sps:$4 sm:$0xff]  }
 0x1cb   :  { %1794 = vmatprep.subr.bf16.mxu0 %v2971_v24  ;;  %v3010_v24 = vld [vmem:[%s4112_s7 + $0x164] ss:$8 sps:$4 sm:$0xff]  }
 0x1ce   :  { %1795 = vmatpush1.bf16.msra.mxu0 %v2969_v25  ;;  %v3008_v25 = vld [vmem:[%s4112_s7 + $0x160] ss:$8 sps:$4 sm:$0xff]  }
 0x1cf   :  { %1796 = vmatprep.subr.bf16.mxu0 %v2974_v26  ;;  %v3013_v26 = vld [vmem:[%s4112_s7 + $0x174] ss:$8 sps:$4 sm:$0xff]  }
 0x1d2   :  { %1797 = vmatpush1.bf16.msra.mxu0 %v2972_v27  ;;  %v3011_v27 = vld [vmem:[%s4112_s7 + $0x170] ss:$8 sps:$4 sm:$0xff]  }
 0x1d3   :  { %1798 = vmatprep.subr.bf16.mxu0 %v2977_v28  ;;  %v3016_v28 = vld [vmem:[%s4112_s7 + $0x184] ss:$8 sps:$4 sm:$0xff]  }
 0x1d6   :  { %1799 = vmatpush1.bf16.msra.mxu0 %v2975_v30  ;;  %v3014_v30 = vld [vmem:[%s4112_s7 + $0x180] ss:$8 sps:$4 sm:$0xff]  }
 0x1d7   :  { %1800 = vmatprep.subr.bf16.mxu0 %v2980_v31  ;;  %v3019_v31 = vld [vmem:[%s4112_s7 + $0x194] ss:$8 sps:$4 sm:$0xff]  }
 0x1da   :  { %1801 = vmatpush1.bf16.msra.mxu0 %v2978_v35  ;;  %v3017_v35 = vld [vmem:[%s4112_s7 + $0x190] ss:$8 sps:$4 sm:$0xff]  }
 0x1db   :  { %1802 = vmatprep.subr.bf16.mxu0 %v2983_v39  ;;  %v3022_v39 = vld [vmem:[%s4112_s7 + $0x1a4] ss:$8 sps:$4 sm:$0xff]  }
 0x1de   :  { %1803 = vmatpush1.bf16.msra.mxu0 %v2981_v44  ;;  %v3020_v44 = vld [vmem:[%s4112_s7 + $0x1a0] ss:$8 sps:$4 sm:$0xff]  }
 0x1df   :  { %1804 = vmatprep.subr.bf16.mxu0 %v2986_v50  ;;  %v3025_v50 = vld [vmem:[%s4112_s7 + $0x1b4] ss:$8 sps:$4 sm:$0xff]  }
 0x1e2   :  { %1805 = vmatpush1.bf16.msra.mxu0 %v2984_v51  ;;  %v3023_v51 = vld [vmem:[%s4112_s7 + $0x1b0] ss:$8 sps:$4 sm:$0xff]  }
 0x1e3   :  { %1806 = vmatprep.subr.bf16.mxu0 %v2989_v52  ;;  %v3028_v52 = vld [vmem:[%s4112_s7 + $0x1c4] ss:$8 sps:$4 sm:$0xff]  }
 0x1e6   :  { %1807 = vmatpush1.bf16.msra.mxu0 %v2987_v53  ;;  %v3026_v53 = vld [vmem:[%s4112_s7 + $0x1c0] ss:$8 sps:$4 sm:$0xff]  }
 0x1e7   :  { %1817 = vmatprep.subr.bf16.mxu0 %v2992_v54  ;;  %v1120_v54 = vsub.s32 2, %v3369_v34  ;;  %v3055_v34 = vld [vmem:[%s4116_s11 + $0x8] sm:$0xff]  }
 0x1e9   :  { %v1121_v57 = vrot.slane %v3888_v38, %v1120_v54  ;;  %v3052_v38 = vld [vmem:[%s4114_s9 + $0x78] sm:$0xff]  }
 0x1ea   :  { %2693 = vmatprep.subr.bf16.mxu1 %v3052_v38 }
 0x1eb   :  { %2694 = vmatpush3.bf16.msra.mxu1 %v3053_v41 }
 0x1ec   :  { %2799 = vmatprep.subr.bf16.mxu1 %v3099_v36 }
 0x27c   :  { %v1324_v46 = vpop.f32.mrb[24].mxu0  ;;  %v3899_v47 = vpop.f32.mrb[24].mxu1 }
 0x27d   :  { %v1325_v48 = vadd.f32 %v1324_v46, %v1113_v42  ;;  %v1326_v49 = vpop.f32.mrb[25].mxu0  ;;  %v1367_v0 = vpop.f32.mrb[25].mxu1  ;;  %v1366_v60 = vadd.f32 %v3899_v47, %v1121_v57  ;;  %v1444_v42 = vld [vmem:[%s4113_s8] sm:$0x3] }
 0x27e   :  { %v1327_v1 = vadd.f32 %v1326_v49, %v1117_v43  ;;  %v1368_v4 = vadd.f32 %v1367_v0, %v1125_v45  ;;  %v1328_v5 = vpop.f32.mrb[26].mxu0  ;;  %v1369_v8 = vpop.f32.mrb[26].mxu1  ;;  %v1449_v43 = vrot.slane %v1444_v42, %v1112_v37  ;;  %v1453_v45 = vrot.slane %v1444_v42, %v1116_v40  ;;  %v3056_v37 = vld [vmem:[%s4116_s11 + $0x10] sm:$0xff]   ;;  %v3057_v40 = vld [vmem:[%s4116_s11 + $0x18] sm:$0xff]  }
 0x27f   :  { %v1372_v2 = vmax.f32 %v1325_v48, 0.0  ;;  %v1329_v10 = vpop.f32.mrb[27].mxu0  ;;  %v1370_v3 = vpop.f32.mrb[27].mxu1  ;;  %v1374_v63 = vmax.f32 %v1366_v60, 0.0 }
 0x280   :  { %v1373_v6 = vmax.f32 %v1327_v1, 0.0  ;;  %v1375_v7 = vmax.f32 %v1368_v4, 0.0  ;;  %v3058_v3 = vld [vmem:[%s4116_s11 + $0x20] sm:$0xff]  }
 0x281   :  { %v1376_v12 = vpack.c.bf16 %v1372_v2, %v1372_v2  ;;  %v1378_v29 = vpack.c.bf16 %v1374_v63, %v1374_v63  ;;  %v3054_v2 = vld [vmem:[%s4116_s11] sm:$0xff]  }
 0x282   :  { %v1377_v9 = vpack.c.bf16 %v1373_v6, %v1373_v6  ;;  %v1379_v14 = vpack.c.bf16 %v1375_v7, %v1375_v7  ;;  %v3059_v6 = vld [vmem:[%s4116_s11 + $0x28] sm:$0xff]   ;;  %v3060_v7 = vld [vmem:[%s4116_s11 + $0x30] sm:$0xff]  }
 0x284   :  { %1808 = vmatprep.mubr.bf16.mxu0 %v1377_v9  ;;  %v3061_v9 = vld [vmem:[%s4116_s11 + $0x38] sm:$0xff]  }
 0x285   :  { %1809 = vmatmul.mubr.bf16.vlgmr.msra.gmra.mrb[28].mxu0 %v1376_v12  ;;  %v2432_v12 = vld [vmem:[%s4115_s10] ss:$0 sm:$0xff] }
 0x286   :  { %1818 = vmatpush1.bf16.msra.mxu0 %v2990_v11  ;;  %1849 = vmatprep.mubr.bf16.mxu0 %v1379_v14 }
 0x287   :  { %1819 = vmatprep.subr.bf16.mxu0 %v2995_v13 }
 0x28a   :  { %1820 = vmatpush1.bf16.msra.mxu0 %v2993_v15 }
 0x28b   :  { %1821 = vmatprep.subr.bf16.mxu0 %v2998_v16 }
 0x28e   :  { %1822 = vmatpush1.bf16.msra.mxu0 %v2996_v17 }
 0x28f   :  { %1823 = vmatprep.subr.bf16.mxu0 %v3001_v18 }
 0x292   :  { %1824 = vmatpush1.bf16.msra.mxu0 %v2999_v19  ;;  %v3062_v19 = vld [vmem:[%s4118_s13] sm:$0xff]  }
 0x293   :  { %1825 = vmatprep.subr.bf16.mxu0 %v3004_v20 }
 0x296   :  { %1826 = vmatpush1.bf16.msra.mxu0 %v3002_v21  ;;  %v3063_v21 = vld [vmem:[%s4118_s13 + $0x8] sm:$0xff]  }
 0x297   :  { %1827 = vmatprep.subr.bf16.mxu0 %v3007_v22  ;;  %v3064_v22 = vld [vmem:[%s4118_s13 + $0x10] sm:$0xff]  }
 0x29a   :  { %1828 = vmatpush1.bf16.msra.mxu0 %v3005_v23  ;;  %v3065_v23 = vld [vmem:[%s4118_s13 + $0x18] sm:$0xff]  }
 0x29b   :  { %1829 = vmatprep.subr.bf16.mxu0 %v3010_v24  ;;  %v3066_v24 = vld [vmem:[%s4118_s13 + $0x20] sm:$0xff]  }
 0x29e   :  { %1830 = vmatpush1.bf16.msra.mxu0 %v3008_v25  ;;  %v3067_v25 = vld [vmem:[%s4118_s13 + $0x28] sm:$0xff]  }
 0x29f   :  { %1831 = vmatprep.subr.bf16.mxu0 %v3013_v26  ;;  %v3068_v26 = vld [vmem:[%s4118_s13 + $0x30] sm:$0xff]  }
 0x2a2   :  { %1832 = vmatpush1.bf16.msra.mxu0 %v3011_v27  ;;  %v3069_v27 = vld [vmem:[%s4118_s13 + $0x38] sm:$0xff]  }
 0x2a3   :  { %1833 = vmatprep.subr.bf16.mxu0 %v3016_v28  ;;  %v2449_v28 = vld [vmem:[%s4117_s12] ss:$0 sm:$0xff]  ;;  %s3102_s12 = smov [#allocation2]  }
 0x2a4   :  { %s2282_s13 = sshll.u32 %s3102_s12, 4  ;;  %s2283_s13 = int_to_ptr.vmem [resolvable:$true] %s2282_s13 }
 0x2a5   :  { %p3079_p1 = scmp.lt.s32.totalorder %s2283_s13, %s2283_s13 }
 0x2a6   :  { %1834 = vmatpush1.bf16.msra.mxu0 %v3014_v30 }
 0x2a7   :  { %1835 = vmatprep.subr.bf16.mxu0 %v3019_v31 }
 0x2aa   :  { %1836 = vmatpush1.bf16.msra.mxu0 %v3017_v35 }
 0x2ab   :  { %1837 = vmatprep.subr.bf16.mxu0 %v3022_v39 }
 0x2ae   :  { %1838 = vmatpush1.bf16.msra.mxu0 %v3020_v44 }
 0x2af   :  { %1839 = vmatprep.subr.bf16.mxu0 %v3025_v50 }
 0x2b2   :  { %1840 = vmatpush1.bf16.msra.mxu0 %v3023_v51 }
 0x2b3   :  { %1841 = vmatprep.subr.bf16.mxu0 %v3028_v52 }
 0x2b6   :  { %1842 = vmatpush1.bf16.msra.mxu0 %v3026_v53 }
 0x2b7   :  { %1843 = vmatprep.subr.bf16.mxu0 %v3031_v55 }
 0x2ba   :  { %1844 = vmatpush1.bf16.msra.mxu0 %v3029_v56 }
 0x2bb   :  { %1845 = vmatprep.subr.bf16.mxu0 %v3034_v58 }
 0x2be   :  { %1846 = vmatpush1.bf16.msra.mxu0 %v3032_v59 }
 0x2bf   :  { %1847 = vmatprep.subr.bf16.mxu0 %v3037_v61 }
 0x2c2   :  { %1848 = vmatpush1.bf16.msra.mxu0 %v3035_v62 }
 0x2c5   :  { %1850 = vmatmul.mubr.bf16.vlgmr.msra.gmra.mrb[28].mxu0 %v1378_v29 }
 0x398   :  { %v1851_v46 = vpop.f32.mrb[28].mxu0 }
 0x399   :  { %v2839_v47 = vadd.f32 %v1851_v46, %v1449_v43  ;;  %v1853_v48 = vpop.f32.mrb[29].mxu0 }
 0x39a   :  { %v2840_v49 = vadd.f32 %v1853_v48, %v1453_v45  ;;  %v1855_v0 = vpop.f32.mrb[30].mxu0 }
 0x39b   :  { %v1858_v1 = vmax.f32 %v2839_v47, 0.0  ;;  %v1856_v4 = vpop.f32.mrb[31].mxu0 }
 0x39c   :  { %v1859_v5 = vmax.f32 %v2840_v49, 0.0 }
 0x39d   :  { %v1860_v10 = vpack.c.bf16 %v1858_v1, %v1858_v1 }
 0x39e   :  { %v1861_v8 = vpack.c.bf16 %v1859_v5, %v1859_v5 }
 0x3a0   :  { %2029 = vmatprep.mubr.bf16.mxu1 %v1861_v8 }
 0x3a1   :  { %2030 = vmatmul.mubr.bf16.vlgmr.msra.gmra.mrb[28].mxu1 %v1860_v10 }
 0x3a2   :  { %2800 = vmatpush3.bf16.msra.mxu1 %v3054_v2  ;;  %2815 = vmatprep.mubr.msk.bf16.mxu1 %vm3100_vm0, %v3099_v36 }
 0x3a3   :  { %2801 = vmatprep.subr.bf16.mxu1 %v3099_v36 }
 0x3a6   :  { %2802 = vmatpush3.bf16.msra.mxu1 %v3055_v34 }
 0x3a7   :  { %2803 = vmatprep.subr.bf16.mxu1 %v3099_v36 }
 0x3aa   :  { %2804 = vmatpush3.bf16.msra.mxu1 %v3056_v37 }
 0x3ab   :  { %2805 = vmatprep.subr.bf16.mxu1 %v3099_v36 }
 0x3ae   :  { %2806 = vmatpush3.bf16.msra.mxu1 %v3057_v40 }
 0x3af   :  { %2807 = vmatprep.subr.bf16.mxu1 %v3099_v36 }
 0x3b2   :  { %2808 = vmatpush3.bf16.msra.mxu1 %v3058_v3 }
 0x3b3   :  { %2809 = vmatprep.subr.bf16.mxu1 %v3099_v36 }
 0x3b6   :  { %2810 = vmatpush3.bf16.msra.mxu1 %v3059_v6 }
 0x3b7   :  { %2811 = vmatprep.subr.bf16.mxu1 %v3099_v36 }
 0x3ba   :  { %2812 = vmatpush3.bf16.msra.mxu1 %v3060_v7 }
 0x3bb   :  { %2813 = vmatprep.subr.bf16.mxu1 %v3099_v36 }
 0x3be   :  { %2814 = vmatpush3.bf16.msra.mxu1 %v3061_v9 }
 0x3bf   :  { %2819 = vmatprep.subr.bf16.mxu1 %v3099_v36 }
 0x474   :  { %v2695_v11 = vpop.f32.mrb[28].mxu1 }
 0x475   :  { %v2696_v13 = vpop.f32.mrb[29].mxu1 }
 0x476   :  { %v2697_v14 = vadd.f32 %v2696_v13, %v2695_v11  ;;  %v2698_v15 = vpop.f32.mrb[30].mxu1 }
 0x477   :  { %v2699_v16 = vpop.f32.mrb[31].mxu1 }
 0x478   :  { %v2032_v17 = vadd.f32 %v2697_v14, %v2432_v12 }
 0x47a   :  { %v2037_v18 = vmax.f32 %v2032_v17, 0.0 }
 0x47c   :  { %v2038_v20 = vpack.c.bf16 %v2037_v18, %v2037_v18 }
 0x47e   :  { %2816 = vmatmul.mubr.bf16.vlgmr.msra.gmra.mrb[32].mxu1 %v2038_v20 }
 0x47f   :  { %2820 = vmatpush3.bf16.msra.mxu1 %v3062_v19  ;;  %2835 = vmatprep.mubr.msk.bf16.mxu1 %vm3100_vm0, %v3099_v36 }
 0x480   :  { %2821 = vmatprep.subr.bf16.mxu1 %v3099_v36 }
 0x483   :  { %2822 = vmatpush3.bf16.msra.mxu1 %v3063_v21 }
 0x484   :  { %2823 = vmatprep.subr.bf16.mxu1 %v3099_v36 }
 0x487   :  { %2824 = vmatpush3.bf16.msra.mxu1 %v3064_v22 }
 0x488   :  { %2825 = vmatprep.subr.bf16.mxu1 %v3099_v36 }
 0x48b   :  { %2826 = vmatpush3.bf16.msra.mxu1 %v3065_v23 }
 0x48c   :  { %2827 = vmatprep.subr.bf16.mxu1 %v3099_v36 }
 0x48f   :  { %2828 = vmatpush3.bf16.msra.mxu1 %v3066_v24 }
 0x490   :  { %2829 = vmatprep.subr.bf16.mxu1 %v3099_v36 }
 0x493   :  { %2830 = vmatpush3.bf16.msra.mxu1 %v3067_v25 }
 0x494   :  { %2831 = vmatprep.subr.bf16.mxu1 %v3099_v36 }
 0x497   :  { %2832 = vmatpush3.bf16.msra.mxu1 %v3068_v26 }
 0x498   :  { %2833 = vmatprep.subr.bf16.mxu1 %v3099_v36  ;;  %v2458_v36 = vld [vmem:[%s4119_s14] ss:$0 sm:$0xff]  ;;  %s3074_s14 = scalar_lea.vmem %s2283_s13, 32 }
 0x499   :  { %p3075_p0 = scmp.ne.s32.totalorder %s2283_s13, %s3074_s14  ;;  %p3080_p2 = scmp.lt.s32.totalorder %s3074_s14, %s3074_s14 }
 0x49b   :  { %2834 = vmatpush3.bf16.msra.mxu1 %v3069_v27  ;;  %p3081_p3 = por %p3080_p2, %p3079_p1 }
 0x49d   :  { %p3082_p4 = pnand %p3081_p3, %p3075_p0 }
 0x551   :  { %v2144_v30 = vpop.f32.mrb[32].mxu1 }
 0x552   :  { %v2145_v31 = vadd.f32 %v2449_v28, %v2144_v30  ;;  %v2817_v35 = vpop.f32.mrb[33].mxu1 }
 0x553   :  { %v2147_v39 = vpop.f32.mrb[34].mxu1 }
 0x554   :  { %v2150_v44 = vmax.f32 %v2145_v31, 0.0  ;;  %v2818_v50 = vpop.f32.mrb[35].mxu1 }
 0x556   :  { %v2151_v51 = vpack.c.bf16 %v2150_v44, %v2150_v44 }
 0x558   :  { %2836 = vmatmul.mubr.bf16.vlgmr.msra.gmra.mrb[36].mxu1 %v2151_v51 }
 0x62b   :  { %v2257_v52 = vpop.f32.mrb[36].mxu1 }
 0x62c   :  { %v2258_v53 = vadd.f32 %v2458_v36, %v2257_v52  ;;  %v2837_v54 = vpop.f32.mrb[37].mxu1 }
 0x62d   :  { %v2260_v55 = vpop.f32.mrb[38].mxu1 }
 0x62e   :  { %v2838_v56 = vpop.f32.mrb[39].mxu1  ;;  %v2264_v57 = vsel %vm2263_vm1, %v2258_v53, -inf }
 0x62f   :  { %2265 = vmax.xlane.f32.xlu0 %v2264_v57 }
 0x6bc   :  { %v2266_v58 = vpop.xlane.xlu0 %2265 }
 0x6bd   :  { %v2267_v59 = vsub.f32 %v2258_v53, %v2266_v58 }
 0x6bf   :  { %v2268_v60 = vmul.f32 1.442695, %v2267_v59 }
 0x6c1   :  { %3070 = vpow2.f32 %v2268_v60 }
 0x6cb   :  { %v3071_v61 = vpop.eup %3070 }
 0x6cc   :  { %v2270_v62 = vsel %vm2263_vm1, %v3071_v61, 0.0 }
 0x6cd   :  { %2271 = vadd.xlane.f32.xlu0 %v2270_v62 }
 0x75a   :  { %v2272_v63 = vpop.xlane.xlu0 %2271 }
 0x75b   :  { %3072 = vrcp.f32 %v2272_v63 }
 0x765   :  { %v3073_v29 = vpop.eup %3072 }
 0x766   :  { %v2274_v32 = vmul.f32 %v3073_v29, %v3071_v61 }
 0x768   :  { %2275 = vst [vmem:[#allocation2] sm:$0x3] %v2274_v32 }
 0x769   :  { %3085 = shalt.err (!%p3082_p4)
}
 0x76a   :  { %s3086_s3 = scalar_lea.hbm %s4120_s15, 32 }
 0x76b   :  { %p3087_p5 = scmp.ne.s32.totalorder %s4120_s15, %s3086_s3  ;;  %p3090_p6 = scmp.lt.u32.totalorder %s3086_s3, %s4120_s15 }
 0x76d   :  { %p3092_p7 = pnand %p3090_p6, %p3087_p5 }
 0x76f   :  { %3095 = shalt.err (!%p3092_p7)
}
 0x770   :  { %2285 = dma.vmem_to_hbm [thread:$0]  %s2283_s13, 32, %s4120_s15, [#allocation3]  }
 0x771   :  { %3096 = dma.done.wait [#allocation3], 32  }
 0x772   :  { %3097 = vsyncadd [#allocation3], 4294967264 }
 0x773   :  { %2289 = vsyncpa [#allocation3], 1 }

</bundles_post_ra>
